<compile_context>
chip_gen: v7x
topology: tpu7x:2x2x1
jax: 0.10.0
libtpu: 0.0.40
codegen_flags: <defaults>
</compile_context>

<pallas_src>
import jax
import jax.numpy as jnp
from jax.experimental import pallas as pl
from jax.experimental.pallas import tpu as pltpu

EPS = 1e-5  # nn.BatchNorm1d default eps

# -------- original / padded dimensions --------
P_IN, P_IN_PAD = 205, 256
H_P1, H_P1_PAD = 88, 128
SC_IN, SC_IN_PAD = 2278, 2304
H_SC, H_SC_PAD = 984, 1024
H_OUT, H_OUT_PAD = 111, 128
OUT, OUT_PAD = 1, 128

TK = 768  # K tile for the sc-branch first matmul (2304 / 768 = 3 grid steps)


def _bn_train_onepass(x, gamma, beta):
    """BatchNorm1d training-mode forward, single-pass batch stats."""
    inv_n = 1.0 / x.shape[0]
    mean = jnp.sum(x, axis=0, keepdims=True) * inv_n
    ex2 = jnp.sum(x * x, axis=0, keepdims=True) * inv_n
    var = jnp.maximum(ex2 - mean * mean, 0.0)  # biased variance
    return (x - mean) * (jax.lax.rsqrt(var + EPS) * gamma) + beta


def classify_kernel(
    param_ref, sc_ref,
    wp1_ref, bp1_ref, gp1_ref, bep1_ref,
    wp2_ref, bp2_ref, gp2_ref, bep2_ref,
    ws1_ref, bs1_ref, gs1_ref, bes1_ref,
    ws2_ref, bs2_ref, gs2_ref, bes2_ref,
    wo_ref, bo_ref,
    out_ref,
    acc_ref,
):
    k = pl.program_id(0)

    @pl.when(k == 0)
    def _():
        acc_ref[...] = jnp.zeros_like(acc_ref)

    # Streamed partial product of the big sc-branch matmul (overlaps with the
    # DMA of the next ws1 tile thanks to Pallas double-buffering).
    acc_ref[...] += jnp.dot(sc_ref[...], ws1_ref[...],
                            preferred_element_type=jnp.float32)

    @pl.when(k == pl.num_programs(0) - 1)
    def _():
        # ---- sc branch: finish layer 1, then layer 2 ----
        h = jnp.maximum(acc_ref[...] + bs1_ref[...], 0.0)
        h = _bn_train_onepass(h, gs1_ref[...], bes1_ref[...])
        h = jnp.dot(h, ws2_ref[...], preferred_element_type=jnp.float32)
        h = jnp.maximum(h + bs2_ref[...], 0.0)
        s_emb = _bn_train_onepass(h, gs2_ref[...], bes2_ref[...])

        # ---- param branch (small, runs once) ----
        p = jnp.dot(param_ref[...], wp1_ref[...],
                    preferred_element_type=jnp.float32)
        p = jnp.maximum(p + bp1_ref[...], 0.0)
        p = _bn_train_onepass(p, gp1_ref[...], bep1_ref[...])
        p = jnp.dot(p, wp2_ref[...], preferred_element_type=jnp.float32)
        p = jnp.maximum(p + bp2_ref[...], 0.0)
        p_emb = _bn_train_onepass(p, gp2_ref[...], bep2_ref[...])

        # ---- output head (wo padded to 128 lanes -> lane-dense store) ----
        z = jnp.dot(p_emb + s_emb, wo_ref[...],
                    preferred_element_type=jnp.float32) + bo_ref[...]
        out_ref[...] = jax.nn.sigmoid(z)


def _pad_to(x, shape):
    pads = [(0, t - s) for s, t in zip(x.shape, shape)]
    return jnp.pad(x, pads)


def pad_params(params):
    """Pad the 18 PyTorch-shaped arrays to (8,128)-aligned kernel shapes."""
    (wp1, bp1, gp1, bep1, wp2, bp2, gp2, bep2,
     ws1, bs1, gs1, bes1, ws2, bs2, gs2, bes2, wo, bo) = params
    return (
        _pad_to(wp1, (P_IN_PAD, H_P1_PAD)), _pad_to(bp1, (1, H_P1_PAD)),
        _pad_to(gp1, (1, H_P1_PAD)), _pad_to(bep1, (1, H_P1_PAD)),
        _pad_to(wp2, (H_P1_PAD, H_OUT_PAD)), _pad_to(bp2, (1, H_OUT_PAD)),
        _pad_to(gp2, (1, H_OUT_PAD)), _pad_to(bep2, (1, H_OUT_PAD)),
        _pad_to(ws1, (SC_IN_PAD, H_SC_PAD)), _pad_to(bs1, (1, H_SC_PAD)),
        _pad_to(gs1, (1, H_SC_PAD)), _pad_to(bes1, (1, H_SC_PAD)),
        _pad_to(ws2, (H_SC_PAD, H_OUT_PAD)), _pad_to(bs2, (1, H_OUT_PAD)),
        _pad_to(gs2, (1, H_OUT_PAD)), _pad_to(bes2, (1, H_OUT_PAD)),
        _pad_to(wo, (H_OUT_PAD, OUT_PAD)), _pad_to(bo, (1, OUT_PAD)),
    )


def _resident_spec(arr):
    """Full-block spec with a constant index_map: DMA'd once, stays in VMEM."""
    nd = arr.ndim
    return pl.BlockSpec(arr.shape, lambda k, nd=nd: (0,) * nd)


def classify_nan_model_2(parameter, sc_mat, padded_params, *, tk=TK):
    """parameter: (B,205) f32, sc_mat: (B,2278) f32, padded_params from pad_params."""
    assert SC_IN_PAD % tk == 0 and tk % 128 == 0
    B = parameter.shape[0]
    pp = tuple(padded_params)

    param_p = _pad_to(parameter, (B, P_IN_PAD))
    sc_p = _pad_to(sc_mat, (B, SC_IN_PAD))

    in_specs = [
        _resident_spec(param_p),                           # parameter
        pl.BlockSpec((B, tk), lambda k: (0, k)),           # sc_mat: K tiles
        _resident_spec(pp[0]), _resident_spec(pp[1]),      # wp1, bp1
        _resident_spec(pp[2]), _resident_spec(pp[3]),      # gp1, bep1
        _resident_spec(pp[4]), _resident_spec(pp[5]),      # wp2, bp2
        _resident_spec(pp[6]), _resident_spec(pp[7]),      # gp2, bep2
        pl.BlockSpec((tk, H_SC_PAD), lambda k: (k, 0)),    # ws1: K tiles
        _resident_spec(pp[9]), _resident_spec(pp[10]),     # bs1, gs1
        _resident_spec(pp[11]),                            # bes1
        _resident_spec(pp[12]), _resident_spec(pp[13]),    # ws2, bs2
        _resident_spec(pp[14]), _resident_spec(pp[15]),    # gs2, bes2
        _resident_spec(pp[16]), _resident_spec(pp[17]),    # wo, bo
    ]

    out_padded = pl.pallas_call(
        classify_kernel,
        out_shape=jax.ShapeDtypeStruct((B, OUT_PAD), jnp.float32),
        grid_spec=pltpu.PrefetchScalarGridSpec(
            num_scalar_prefetch=0,
            grid=(SC_IN_PAD // tk,),
            in_specs=in_specs,
            out_specs=pl.BlockSpec((B, OUT_PAD), lambda k: (0, 0)),
            scratch_shapes=[pltpu.VMEM((B, H_SC_PAD), jnp.float32)],
        ),
        compiler_params=pltpu.CompilerParams(
            dimension_semantics=("arbitrary",),
            vmem_limit_bytes=24 << 20,
        ),
    )(param_p, sc_p, *pp)

    return out_padded[:, :OUT]


# ----------------- PyTorch-matching init & pure-JAX reference -----------------
def _init_linear(key, fan_in, fan_out):
    """nn.Linear default init (uniform +-1/sqrt(fan_in)); W pre-transposed."""
    k1, k2 = jax.random.split(key)
    bound = 1.0 / (fan_in ** 0.5)
    w = jax.random.uniform(k1, (fan_in, fan_out), jnp.float32, -bound, bound)
    b = jax.random.uniform(k2, (1, fan_out), jnp.float32, -bound, bound)
    return w, b


def _init_bn(n):
    return jnp.ones((1, n), jnp.float32), jnp.zeros((1, n), jnp.float32)


def init_params(key):
    keys = jax.random.split(key, 5)
    wp1, bp1 = _init_linear(keys[0], P_IN, H_P1)
    gp1, bep1 = _init_bn(H_P1)
    wp2, bp2 = _init_linear(keys[1], H_P1, H_OUT)
    gp2, bep2 = _init_bn(H_OUT)
    ws1, bs1 = _init_linear(keys[2], SC_IN, H_SC)
    gs1, bes1 = _init_bn(H_SC)
    ws2, bs2 = _init_linear(keys[3], H_SC, H_OUT)
    gs2, bes2 = _init_bn(H_OUT)
    wo, bo = _init_linear(keys[4], H_OUT, OUT)
    return (wp1, bp1, gp1, bep1, wp2, bp2, gp2, bep2,
            ws1, bs1, gs1, bes1, ws2, bs2, gs2, bes2, wo, bo)


def _bn_ref(x, gamma, beta):
    mean = jnp.mean(x, axis=0, keepdims=True)
    var = jnp.mean((x - mean) ** 2, axis=0, keepdims=True)
    return (x - mean) * jax.lax.rsqrt(var + EPS) * gamma + beta


def reference_forward(parameter, sc_mat, params):
    (wp1, bp1, gp1, bep1, wp2, bp2, gp2, bep2,
     ws1, bs1, gs1, bes1, ws2, bs2, gs2, bes2, wo, bo) = params

    def branch(x, w1, b1, g1, be1, w2, b2, g2, be2):
        h = _bn_ref(jnp.maximum(x @ w1 + b1, 0.0), g1, be1)
        h = _bn_ref(jnp.maximum(h @ w2 + b2, 0.0), g2, be2)
        return h

    p = branch(parameter, wp1, bp1, gp1, bep1, wp2, bp2, gp2, bep2)
    s = branch(sc_mat, ws1, bs1, gs1, bes1, ws2, bs2, gs2, bes2)
    return jax.nn.sigmoid((p + s) @ wo + bo)


if __name__ == "__main__":
    key = jax.random.PRNGKey(0)
    k_param, k_sc, k_w = jax.random.split(key, 3)

    B = 8
    parameter = jax.random.normal(k_param, (B, P_IN), jnp.float32)
    sc_mat = jax.random.normal(k_sc, (B, SC_IN), jnp.float32)
    params = init_params(k_w)
    padded_params = pad_params(params)   # one-time padding, done outside the call

    out = classify_nan_model_2(parameter, sc_mat, padded_params)
    out = jax.block_until_ready(out)

    ref = jax.block_until_ready(reference_forward(parameter, sc_mat, params))
    assert out.shape == (B, OUT)
    assert jnp.allclose(out, ref, atol=1e-4, rtol=1e-4), (
        f"max abs diff {jnp.max(jnp.abs(out - ref))}")

    print("KERNEL_OK")
</pallas_src>

<mosaic_0001>
module attributes {stable_mosaic.version = 11 : i64} {
  func.func @classify_kernel(%arg0: i32, %arg1: memref<8x256xf32, #tpu.memory_space<vmem>>, %arg2: memref<8x768xf32, #tpu.memory_space<vmem>>, %arg3: memref<256x128xf32, #tpu.memory_space<vmem>>, %arg4: memref<1x128xf32, #tpu.memory_space<vmem>>, %arg5: memref<1x128xf32, #tpu.memory_space<vmem>>, %arg6: memref<1x128xf32, #tpu.memory_space<vmem>>, %arg7: memref<128x128xf32, #tpu.memory_space<vmem>>, %arg8: memref<1x128xf32, #tpu.memory_space<vmem>>, %arg9: memref<1x128xf32, #tpu.memory_space<vmem>>, %arg10: memref<1x128xf32, #tpu.memory_space<vmem>>, %arg11: memref<768x1024xf32, #tpu.memory_space<vmem>>, %arg12: memref<1x1024xf32, #tpu.memory_space<vmem>>, %arg13: memref<1x1024xf32, #tpu.memory_space<vmem>>, %arg14: memref<1x1024xf32, #tpu.memory_space<vmem>>, %arg15: memref<1024x128xf32, #tpu.memory_space<vmem>>, %arg16: memref<1x128xf32, #tpu.memory_space<vmem>>, %arg17: memref<1x128xf32, #tpu.memory_space<vmem>>, %arg18: memref<1x128xf32, #tpu.memory_space<vmem>>, %arg19: memref<128x128xf32, #tpu.memory_space<vmem>>, %arg20: memref<1x128xf32, #tpu.memory_space<vmem>>, %arg21: memref<8x128xf32, #tpu.memory_space<vmem>>, %arg22: memref<8x1024xf32, #tpu.memory_space<vmem>>) attributes {dimension_semantics = [#tpu.dimension_semantics<arbitrary>], iteration_bounds = array<i64: 3>, scalar_prefetch = 0 : i64, scratch_operands = 1 : i64, tpu.core_type = #tpu.core_type<tc>, window_params = [{pipeline_mode = #tpu.pipeline_mode<synchronous>, transform_indices = @transform_0, window_bounds = array<i64: 8, 256>}, {transform_indices = @transform_1, window_bounds = array<i64: 8, 768>}, {pipeline_mode = #tpu.pipeline_mode<synchronous>, transform_indices = @transform_2, window_bounds = array<i64: 256, 128>}, {pipeline_mode = #tpu.pipeline_mode<synchronous>, transform_indices = @transform_3, window_bounds = array<i64: 1, 128>}, {pipeline_mode = #tpu.pipeline_mode<synchronous>, transform_indices = @transform_4, window_bounds = array<i64: 1, 128>}, {pipeline_mode = #tpu.pipeline_mode<synchronous>, transform_indices = @transform_5, window_bounds = array<i64: 1, 128>}, {pipeline_mode = #tpu.pipeline_mode<synchronous>, transform_indices = @transform_6, window_bounds = array<i64: 128, 128>}, {pipeline_mode = #tpu.pipeline_mode<synchronous>, transform_indices = @transform_7, window_bounds = array<i64: 1, 128>}, {pipeline_mode = #tpu.pipeline_mode<synchronous>, transform_indices = @transform_8, window_bounds = array<i64: 1, 128>}, {pipeline_mode = #tpu.pipeline_mode<synchronous>, transform_indices = @transform_9, window_bounds = array<i64: 1, 128>}, {transform_indices = @transform_10, window_bounds = array<i64: 768, 1024>}, {pipeline_mode = #tpu.pipeline_mode<synchronous>, transform_indices = @transform_11, window_bounds = array<i64: 1, 1024>}, {pipeline_mode = #tpu.pipeline_mode<synchronous>, transform_indices = @transform_12, window_bounds = array<i64: 1, 1024>}, {pipeline_mode = #tpu.pipeline_mode<synchronous>, transform_indices = @transform_13, window_bounds = array<i64: 1, 1024>}, {pipeline_mode = #tpu.pipeline_mode<synchronous>, transform_indices = @transform_14, window_bounds = array<i64: 1024, 128>}, {pipeline_mode = #tpu.pipeline_mode<synchronous>, transform_indices = @transform_15, window_bounds = array<i64: 1, 128>}, {pipeline_mode = #tpu.pipeline_mode<synchronous>, transform_indices = @transform_16, window_bounds = array<i64: 1, 128>}, {pipeline_mode = #tpu.pipeline_mode<synchronous>, transform_indices = @transform_17, window_bounds = array<i64: 1, 128>}, {pipeline_mode = #tpu.pipeline_mode<synchronous>, transform_indices = @transform_18, window_bounds = array<i64: 128, 128>}, {pipeline_mode = #tpu.pipeline_mode<synchronous>, transform_indices = @transform_19, window_bounds = array<i64: 1, 128>}, {pipeline_mode = #tpu.pipeline_mode<synchronous>, transform_indices = @transform_20, window_bounds = array<i64: 8, 128>}]} {
    %c0_i32 = arith.constant 0 : i32
    %0 = arith.cmpi eq, %arg0, %c0_i32 : i32
    %1 = arith.extui %0 : i1 to i32
    %c0_i32_0 = arith.constant 0 : i32
    %2 = arith.cmpi ne, %1, %c0_i32_0 : i32
    scf.if %2 {
      %cst_9 = arith.constant 0.000000e+00 : f32
      %12 = vector.broadcast %cst_9 : f32 to vector<8x1024xf32>
      %c0_10 = arith.constant 0 : index
      %c0_11 = arith.constant 0 : index
      %13 = vector.load %arg22[%c0_10, %c0_11] : memref<8x1024xf32, #tpu.memory_space<vmem>>, vector<8x1024xf32>
      tpu.vector_store %arg22[%c0_10, %c0_11], %12 {strides = array<i32>} : memref<8x1024xf32, #tpu.memory_space<vmem>>, vector<8x1024xf32>,
    } else {
    }
    %c0 = arith.constant 0 : index
    %c0_1 = arith.constant 0 : index
    %3 = vector.load %arg22[%c0, %c0_1] : memref<8x1024xf32, #tpu.memory_space<vmem>>, vector<8x1024xf32>
    %c0_2 = arith.constant 0 : index
    %c0_3 = arith.constant 0 : index
    %4 = vector.load %arg2[%c0_2, %c0_3] : memref<8x768xf32, #tpu.memory_space<vmem>>, vector<8x768xf32>
    %c0_4 = arith.constant 0 : index
    %c0_5 = arith.constant 0 : index
    %5 = vector.load %arg11[%c0_4, %c0_5] : memref<768x1024xf32, #tpu.memory_space<vmem>>, vector<768x1024xf32>
    %cst = arith.constant dense<0.000000e+00> : vector<8x1024xf32>
    %6 = tpu.matmul %4, %5, %cst {dimension_numbers = #tpu.dot_dimension_numbers<[1], [0], [0], [1], [0, 0, 1, 1], [], []>} : vector<8x768xf32>, vector<768x1024xf32>, vector<8x1024xf32> -> vector<8x1024xf32>
    %7 = arith.addf %3, %6 : vector<8x1024xf32>
    %c0_6 = arith.constant 0 : index
    %c0_7 = arith.constant 0 : index
    %8 = vector.load %arg22[%c0_6, %c0_7] : memref<8x1024xf32, #tpu.memory_space<vmem>>, vector<8x1024xf32>
    tpu.vector_store %arg22[%c0_6, %c0_7], %7 {strides = array<i32>} : memref<8x1024xf32, #tpu.memory_space<vmem>>, vector<8x1024xf32>,
    %c2_i32 = arith.constant 2 : i32
    %9 = arith.cmpi eq, %arg0, %c2_i32 : i32
    %10 = arith.extui %9 : i1 to i32
    %c0_i32_8 = arith.constant 0 : i32
    %11 = arith.cmpi ne, %10, %c0_i32_8 : i32
    scf.if %11 {
      %c0_9 = arith.constant 0 : index
      %c0_10 = arith.constant 0 : index
      %12 = vector.load %arg22[%c0_9, %c0_10] : memref<8x1024xf32, #tpu.memory_space<vmem>>, vector<8x1024xf32>
      %c0_11 = arith.constant 0 : index
      %c0_12 = arith.constant 0 : index
      %13 = vector.load %arg12[%c0_11, %c0_12] : memref<1x1024xf32, #tpu.memory_space<vmem>>, vector<1x1024xf32>
      %14 = vector.broadcast %13 : vector<1x1024xf32> to vector<8x1024xf32>
      %15 = arith.addf %12, %14 : vector<8x1024xf32>
      %cst_13 = arith.constant 0.000000e+00 : f32
      %16 = vector.broadcast %cst_13 : f32 to vector<8x1024xf32>
      %17 = arith.maximumf %15, %16 : vector<8x1024xf32>
      %c0_14 = arith.constant 0 : index
      %c0_15 = arith.constant 0 : index
      %18 = vector.load %arg13[%c0_14, %c0_15] : memref<1x1024xf32, #tpu.memory_space<vmem>>, vector<1x1024xf32>
      %c0_16 = arith.constant 0 : index
      %c0_17 = arith.constant 0 : index
      %19 = vector.load %arg14[%c0_16, %c0_17] : memref<1x1024xf32, #tpu.memory_space<vmem>>, vector<1x1024xf32>
      %cst_18 = arith.constant dense<0.000000e+00> : vector<1024xf32>
      %20 = vector.multi_reduction <add>, %17, %cst_18 [0] : vector<8x1024xf32> to vector<1024xf32>
      %21 = vector.shape_cast %20 : vector<1024xf32> to vector<1x1024xf32>
      %cst_19 = arith.constant 1.250000e-01 : f32
      %22 = vector.broadcast %cst_19 : f32 to vector<1x1024xf32>
      %23 = arith.mulf %21, %22 : vector<1x1024xf32>
      %24 = arith.mulf %17, %17 : vector<8x1024xf32>
      %cst_20 = arith.constant dense<0.000000e+00> : vector<1024xf32>
      %25 = vector.multi_reduction <add>, %24, %cst_20 [0] : vector<8x1024xf32> to vector<1024xf32>
      %26 = vector.shape_cast %25 : vector<1024xf32> to vector<1x1024xf32>
      %cst_21 = arith.constant 1.250000e-01 : f32
      %27 = vector.broadcast %cst_21 : f32 to vector<1x1024xf32>
      %28 = arith.mulf %26, %27 : vector<1x1024xf32>
      %29 = arith.mulf %23, %23 : vector<1x1024xf32>
      %30 = arith.subf %28, %29 : vector<1x1024xf32>
      %cst_22 = arith.constant 0.000000e+00 : f32
      %31 = vector.broadcast %cst_22 : f32 to vector<1x1024xf32>
      %32 = arith.maximumf %30, %31 : vector<1x1024xf32>
      %33 = vector.broadcast %23 : vector<1x1024xf32> to vector<8x1024xf32>
      %34 = arith.subf %17, %33 : vector<8x1024xf32>
      %cst_23 = arith.constant 9.99999974E-6 : f32
      %35 = vector.broadcast %cst_23 : f32 to vector<1x1024xf32>
      %36 = arith.addf %32, %35 : vector<1x1024xf32>
      %37 = math.rsqrt %36 : vector<1x1024xf32>
      %38 = arith.mulf %37, %18 : vector<1x1024xf32>
      %39 = vector.broadcast %38 : vector<1x1024xf32> to vector<8x1024xf32>
      %40 = arith.mulf %34, %39 : vector<8x1024xf32>
      %41 = vector.broadcast %19 : vector<1x1024xf32> to vector<8x1024xf32>
      %42 = arith.addf %40, %41 : vector<8x1024xf32>
      %c0_24 = arith.constant 0 : index
      %c0_25 = arith.constant 0 : index
      %43 = vector.load %arg15[%c0_24, %c0_25] : memref<1024x128xf32, #tpu.memory_space<vmem>>, vector<1024x128xf32>
      %cst_26 = arith.constant dense<0.000000e+00> : vector<8x128xf32>
      %44 = tpu.matmul %42, %43, %cst_26 {dimension_numbers = #tpu.dot_dimension_numbers<[1], [0], [0], [1], [0, 0, 1, 1], [], []>} : vector<8x1024xf32>, vector<1024x128xf32>, vector<8x128xf32> -> vector<8x128xf32>
      %c0_27 = arith.constant 0 : index
      %c0_28 = arith.constant 0 : index
      %45 = vector.load %arg16[%c0_27, %c0_28] : memref<1x128xf32, #tpu.memory_space<vmem>>, vector<1x128xf32>
      %46 = vector.broadcast %45 : vector<1x128xf32> to vector<8x128xf32>
      %47 = arith.addf %44, %46 : vector<8x128xf32>
      %cst_29 = arith.constant 0.000000e+00 : f32
      %48 = vector.broadcast %cst_29 : f32 to vector<8x128xf32>
      %49 = arith.maximumf %47, %48 : vector<8x128xf32>
      %c0_30 = arith.constant 0 : index
      %c0_31 = arith.constant 0 : index
      %50 = vector.load %arg17[%c0_30, %c0_31] : memref<1x128xf32, #tpu.memory_space<vmem>>, vector<1x128xf32>
      %c0_32 = arith.constant 0 : index
      %c0_33 = arith.constant 0 : index
      %51 = vector.load %arg18[%c0_32, %c0_33] : memref<1x128xf32, #tpu.memory_space<vmem>>, vector<1x128xf32>
      %cst_34 = arith.constant dense<0.000000e+00> : vector<128xf32>
      %52 = vector.multi_reduction <add>, %49, %cst_34 [0] : vector<8x128xf32> to vector<128xf32>
      %53 = vector.shape_cast %52 : vector<128xf32> to vector<1x128xf32>
      %cst_35 = arith.constant 1.250000e-01 : f32
      %54 = vector.broadcast %cst_35 : f32 to vector<1x128xf32>
      %55 = arith.mulf %53, %54 : vector<1x128xf32>
      %56 = arith.mulf %49, %49 : vector<8x128xf32>
      %cst_36 = arith.constant dense<0.000000e+00> : vector<128xf32>
      %57 = vector.multi_reduction <add>, %56, %cst_36 [0] : vector<8x128xf32> to vector<128xf32>
      %58 = vector.shape_cast %57 : vector<128xf32> to vector<1x128xf32>
      %cst_37 = arith.constant 1.250000e-01 : f32
      %59 = vector.broadcast %cst_37 : f32 to vector<1x128xf32>
      %60 = arith.mulf %58, %59 : vector<1x128xf32>
      %61 = arith.mulf %55, %55 : vector<1x128xf32>
      %62 = arith.subf %60, %61 : vector<1x128xf32>
      %cst_38 = arith.constant 0.000000e+00 : f32
      %63 = vector.broadcast %cst_38 : f32 to vector<1x128xf32>
      %64 = arith.maximumf %62, %63 : vector<1x128xf32>
      %65 = vector.broadcast %55 : vector<1x128xf32> to vector<8x128xf32>
      %66 = arith.subf %49, %65 : vector<8x128xf32>
      %cst_39 = arith.constant 9.99999974E-6 : f32
      %67 = vector.broadcast %cst_39 : f32 to vector<1x128xf32>
      %68 = arith.addf %64, %67 : vector<1x128xf32>
      %69 = math.rsqrt %68 : vector<1x128xf32>
      %70 = arith.mulf %69, %50 : vector<1x128xf32>
      %71 = vector.broadcast %70 : vector<1x128xf32> to vector<8x128xf32>
      %72 = arith.mulf %66, %71 : vector<8x128xf32>
      %73 = vector.broadcast %51 : vector<1x128xf32> to vector<8x128xf32>
      %74 = arith.addf %72, %73 : vector<8x128xf32>
      %c0_40 = arith.constant 0 : index
      %c0_41 = arith.constant 0 : index
      %75 = vector.load %arg1[%c0_40, %c0_41] : memref<8x256xf32, #tpu.memory_space<vmem>>, vector<8x256xf32>
      %c0_42 = arith.constant 0 : index
      %c0_43 = arith.constant 0 : index
      %76 = vector.load %arg3[%c0_42, %c0_43] : memref<256x128xf32, #tpu.memory_space<vmem>>, vector<256x128xf32>
      %cst_44 = arith.constant dense<0.000000e+00> : vector<8x128xf32>
      %77 = tpu.matmul %75, %76, %cst_44 {dimension_numbers = #tpu.dot_dimension_numbers<[1], [0], [0], [1], [0, 0, 1, 1], [], []>} : vector<8x256xf32>, vector<256x128xf32>, vector<8x128xf32> -> vector<8x128xf32>
      %c0_45 = arith.constant 0 : index
      %c0_46 = arith.constant 0 : index
      %78 = vector.load %arg4[%c0_45, %c0_46] : memref<1x128xf32, #tpu.memory_space<vmem>>, vector<1x128xf32>
      %79 = vector.broadcast %78 : vector<1x128xf32> to vector<8x128xf32>
      %80 = arith.addf %77, %79 : vector<8x128xf32>
      %cst_47 = arith.constant 0.000000e+00 : f32
      %81 = vector.broadcast %cst_47 : f32 to vector<8x128xf32>
      %82 = arith.maximumf %80, %81 : vector<8x128xf32>
      %c0_48 = arith.constant 0 : index
      %c0_49 = arith.constant 0 : index
      %83 = vector.load %arg5[%c0_48, %c0_49] : memref<1x128xf32, #tpu.memory_space<vmem>>, vector<1x128xf32>
      %c0_50 = arith.constant 0 : index
      %c0_51 = arith.constant 0 : index
      %84 = vector.load %arg6[%c0_50, %c0_51] : memref<1x128xf32, #tpu.memory_space<vmem>>, vector<1x128xf32>
      %cst_52 = arith.constant dense<0.000000e+00> : vector<128xf32>
      %85 = vector.multi_reduction <add>, %82, %cst_52 [0] : vector<8x128xf32> to vector<128xf32>
      %86 = vector.shape_cast %85 : vector<128xf32> to vector<1x128xf32>
      %cst_53 = arith.constant 1.250000e-01 : f32
      %87 = vector.broadcast %cst_53 : f32 to vector<1x128xf32>
      %88 = arith.mulf %86, %87 : vector<1x128xf32>
      %89 = arith.mulf %82, %82 : vector<8x128xf32>
      %cst_54 = arith.constant dense<0.000000e+00> : vector<128xf32>
      %90 = vector.multi_reduction <add>, %89, %cst_54 [0] : vector<8x128xf32> to vector<128xf32>
      %91 = vector.shape_cast %90 : vector<128xf32> to vector<1x128xf32>
      %cst_55 = arith.constant 1.250000e-01 : f32
      %92 = vector.broadcast %cst_55 : f32 to vector<1x128xf32>
      %93 = arith.mulf %91, %92 : vector<1x128xf32>
      %94 = arith.mulf %88, %88 : vector<1x128xf32>
      %95 = arith.subf %93, %94 : vector<1x128xf32>
      %cst_56 = arith.constant 0.000000e+00 : f32
      %96 = vector.broadcast %cst_56 : f32 to vector<1x128xf32>
      %97 = arith.maximumf %95, %96 : vector<1x128xf32>
      %98 = vector.broadcast %88 : vector<1x128xf32> to vector<8x128xf32>
      %99 = arith.subf %82, %98 : vector<8x128xf32>
      %cst_57 = arith.constant 9.99999974E-6 : f32
      %100 = vector.broadcast %cst_57 : f32 to vector<1x128xf32>
      %101 = arith.addf %97, %100 : vector<1x128xf32>
      %102 = math.rsqrt %101 : vector<1x128xf32>
      %103 = arith.mulf %102, %83 : vector<1x128xf32>
      %104 = vector.broadcast %103 : vector<1x128xf32> to vector<8x128xf32>
      %105 = arith.mulf %99, %104 : vector<8x128xf32>
      %106 = vector.broadcast %84 : vector<1x128xf32> to vector<8x128xf32>
      %107 = arith.addf %105, %106 : vector<8x128xf32>
      %c0_58 = arith.constant 0 : index
      %c0_59 = arith.constant 0 : index
      %108 = vector.load %arg7[%c0_58, %c0_59] : memref<128x128xf32, #tpu.memory_space<vmem>>, vector<128x128xf32>
      %cst_60 = arith.constant dense<0.000000e+00> : vector<8x128xf32>
      %109 = tpu.matmul %107, %108, %cst_60 {dimension_numbers = #tpu.dot_dimension_numbers<[1], [0], [0], [1], [0, 0, 1, 1], [], []>} : vector<8x128xf32>, vector<128x128xf32>, vector<8x128xf32> -> vector<8x128xf32>
      %c0_61 = arith.constant 0 : index
      %c0_62 = arith.constant 0 : index
      %110 = vector.load %arg8[%c0_61, %c0_62] : memref<1x128xf32, #tpu.memory_space<vmem>>, vector<1x128xf32>
      %111 = vector.broadcast %110 : vector<1x128xf32> to vector<8x128xf32>
      %112 = arith.addf %109, %111 : vector<8x128xf32>
      %cst_63 = arith.constant 0.000000e+00 : f32
      %113 = vector.broadcast %cst_63 : f32 to vector<8x128xf32>
      %114 = arith.maximumf %112, %113 : vector<8x128xf32>
      %c0_64 = arith.constant 0 : index
      %c0_65 = arith.constant 0 : index
      %115 = vector.load %arg9[%c0_64, %c0_65] : memref<1x128xf32, #tpu.memory_space<vmem>>, vector<1x128xf32>
      %c0_66 = arith.constant 0 : index
      %c0_67 = arith.constant 0 : index
      %116 = vector.load %arg10[%c0_66, %c0_67] : memref<1x128xf32, #tpu.memory_space<vmem>>, vector<1x128xf32>
      %cst_68 = arith.constant dense<0.000000e+00> : vector<128xf32>
      %117 = vector.multi_reduction <add>, %114, %cst_68 [0] : vector<8x128xf32> to vector<128xf32>
      %118 = vector.shape_cast %117 : vector<128xf32> to vector<1x128xf32>
      %cst_69 = arith.constant 1.250000e-01 : f32
      %119 = vector.broadcast %cst_69 : f32 to vector<1x128xf32>
      %120 = arith.mulf %118, %119 : vector<1x128xf32>
      %121 = arith.mulf %114, %114 : vector<8x128xf32>
      %cst_70 = arith.constant dense<0.000000e+00> : vector<128xf32>
      %122 = vector.multi_reduction <add>, %121, %cst_70 [0] : vector<8x128xf32> to vector<128xf32>
      %123 = vector.shape_cast %122 : vector<128xf32> to vector<1x128xf32>
      %cst_71 = arith.constant 1.250000e-01 : f32
      %124 = vector.broadcast %cst_71 : f32 to vector<1x128xf32>
      %125 = arith.mulf %123, %124 : vector<1x128xf32>
      %126 = arith.mulf %120, %120 : vector<1x128xf32>
      %127 = arith.subf %125, %126 : vector<1x128xf32>
      %cst_72 = arith.constant 0.000000e+00 : f32
      %128 = vector.broadcast %cst_72 : f32 to vector<1x128xf32>
      %129 = arith.maximumf %127, %128 : vector<1x128xf32>
      %130 = vector.broadcast %120 : vector<1x128xf32> to vector<8x128xf32>
      %131 = arith.subf %114, %130 : vector<8x128xf32>
      %cst_73 = arith.constant 9.99999974E-6 : f32
      %132 = vector.broadcast %cst_73 : f32 to vector<1x128xf32>
      %133 = arith.addf %129, %132 : vector<1x128xf32>
      %134 = math.rsqrt %133 : vector<1x128xf32>
      %135 = arith.mulf %134, %115 : vector<1x128xf32>
      %136 = vector.broadcast %135 : vector<1x128xf32> to vector<8x128xf32>
      %137 = arith.mulf %131, %136 : vector<8x128xf32>
      %138 = vector.broadcast %116 : vector<1x128xf32> to vector<8x128xf32>
      %139 = arith.addf %137, %138 : vector<8x128xf32>
      %140 = arith.addf %139, %74 : vector<8x128xf32>
      %c0_74 = arith.constant 0 : index
      %c0_75 = arith.constant 0 : index
      %141 = vector.load %arg19[%c0_74, %c0_75] : memref<128x128xf32, #tpu.memory_space<vmem>>, vector<128x128xf32>
      %cst_76 = arith.constant dense<0.000000e+00> : vector<8x128xf32>
      %142 = tpu.matmul %140, %141, %cst_76 {dimension_numbers = #tpu.dot_dimension_numbers<[1], [0], [0], [1], [0, 0, 1, 1], [], []>} : vector<8x128xf32>, vector<128x128xf32>, vector<8x128xf32> -> vector<8x128xf32>
      %c0_77 = arith.constant 0 : index
      %c0_78 = arith.constant 0 : index
      %143 = vector.load %arg20[%c0_77, %c0_78] : memref<1x128xf32, #tpu.memory_space<vmem>>, vector<1x128xf32>
      %144 = vector.broadcast %143 : vector<1x128xf32> to vector<8x128xf32>
      %145 = arith.addf %142, %144 : vector<8x128xf32>
      %146 = arith.negf %145 : vector<8x128xf32>
      %147 = math.exp %146 : vector<8x128xf32>
      %cst_79 = arith.constant 1.000000e+00 : f32
      %148 = vector.broadcast %cst_79 : f32 to vector<8x128xf32>
      %149 = arith.addf %148, %147 : vector<8x128xf32>
      %150 = arith.divf %148, %149 : vector<8x128xf32>
      %c0_80 = arith.constant 0 : index
      %c0_81 = arith.constant 0 : index
      %151 = vector.load %arg21[%c0_80, %c0_81] : memref<8x128xf32, #tpu.memory_space<vmem>>, vector<8x128xf32>
      tpu.vector_store %arg21[%c0_80, %c0_81], %150 {strides = array<i32>} : memref<8x128xf32, #tpu.memory_space<vmem>>, vector<8x128xf32>,
    } else {
    }
    return
  }
  func.func @transform_0(%arg0: i32) -> (i32, i32) {
    %c0_i32 = arith.constant 0 : i32
    %c0_i32_0 = arith.constant 0 : i32
    %c0_i32_1 = arith.constant 0 : i32
    return %c0_i32, %c0_i32_0 : i32, i32
  }
  func.func @transform_1(%arg0: i32) -> (i32, i32) {
    %c0_i32 = arith.constant 0 : i32
    %c0_i32_0 = arith.constant 0 : i32
    return %c0_i32, %arg0 : i32, i32
  }
  func.func @transform_2(%arg0: i32) -> (i32, i32) {
    %c0_i32 = arith.constant 0 : i32
    %c0_i32_0 = arith.constant 0 : i32
    %c0_i32_1 = arith.constant 0 : i32
    return %c0_i32, %c0_i32_0 : i32, i32
  }
  func.func @transform_3(%arg0: i32) -> (i32, i32) {
    %c0_i32 = arith.constant 0 : i32
    %c0_i32_0 = arith.constant 0 : i32
    %c0_i32_1 = arith.constant 0 : i32
    return %c0_i32, %c0_i32_0 : i32, i32
  }
  func.func @transform_4(%arg0: i32) -> (i32, i32) {
    %c0_i32 = arith.constant 0 : i32
    %c0_i32_0 = arith.constant 0 : i32
    %c0_i32_1 = arith.constant 0 : i32
    return %c0_i32, %c0_i32_0 : i32, i32
  }
  func.func @transform_5(%arg0: i32) -> (i32, i32) {
    %c0_i32 = arith.constant 0 : i32
    %c0_i32_0 = arith.constant 0 : i32
    %c0_i32_1 = arith.constant 0 : i32
    return %c0_i32, %c0_i32_0 : i32, i32
  }
  func.func @transform_6(%arg0: i32) -> (i32, i32) {
    %c0_i32 = arith.constant 0 : i32
    %c0_i32_0 = arith.constant 0 : i32
    %c0_i32_1 = arith.constant 0 : i32
    return %c0_i32, %c0_i32_0 : i32, i32
  }
  func.func @transform_7(%arg0: i32) -> (i32, i32) {
    %c0_i32 = arith.constant 0 : i32
    %c0_i32_0 = arith.constant 0 : i32
    %c0_i32_1 = arith.constant 0 : i32
    return %c0_i32, %c0_i32_0 : i32, i32
  }
  func.func @transform_8(%arg0: i32) -> (i32, i32) {
    %c0_i32 = arith.constant 0 : i32
    %c0_i32_0 = arith.constant 0 : i32
    %c0_i32_1 = arith.constant 0 : i32
    return %c0_i32, %c0_i32_0 : i32, i32
  }
  func.func @transform_9(%arg0: i32) -> (i32, i32) {
    %c0_i32 = arith.constant 0 : i32
    %c0_i32_0 = arith.constant 0 : i32
    %c0_i32_1 = arith.constant 0 : i32
    return %c0_i32, %c0_i32_0 : i32, i32
  }
  func.func @transform_10(%arg0: i32) -> (i32, i32) {
    %c0_i32 = arith.constant 0 : i32
    %c0_i32_0 = arith.constant 0 : i32
    return %arg0, %c0_i32 : i32, i32
  }
  func.func @transform_11(%arg0: i32) -> (i32, i32) {
    %c0_i32 = arith.constant 0 : i32
    %c0_i32_0 = arith.constant 0 : i32
    %c0_i32_1 = arith.constant 0 : i32
    return %c0_i32, %c0_i32_0 : i32, i32
  }
  func.func @transform_12(%arg0: i32) -> (i32, i32) {
    %c0_i32 = arith.constant 0 : i32
    %c0_i32_0 = arith.constant 0 : i32
    %c0_i32_1 = arith.constant 0 : i32
    return %c0_i32, %c0_i32_0 : i32, i32
  }
  func.func @transform_13(%arg0: i32) -> (i32, i32) {
    %c0_i32 = arith.constant 0 : i32
    %c0_i32_0 = arith.constant 0 : i32
    %c0_i32_1 = arith.constant 0 : i32
    return %c0_i32, %c0_i32_0 : i32, i32
  }
  func.func @transform_14(%arg0: i32) -> (i32, i32) {
    %c0_i32 = arith.constant 0 : i32
    %c0_i32_0 = arith.constant 0 : i32
    %c0_i32_1 = arith.constant 0 : i32
    return %c0_i32, %c0_i32_0 : i32, i32
  }
  func.func @transform_15(%arg0: i32) -> (i32, i32) {
    %c0_i32 = arith.constant 0 : i32
    %c0_i32_0 = arith.constant 0 : i32
    %c0_i32_1 = arith.constant 0 : i32
    return %c0_i32, %c0_i32_0 : i32, i32
  }
  func.func @transform_16(%arg0: i32) -> (i32, i32) {
    %c0_i32 = arith.constant 0 : i32
    %c0_i32_0 = arith.constant 0 : i32
    %c0_i32_1 = arith.constant 0 : i32
    return %c0_i32, %c0_i32_0 : i32, i32
  }
  func.func @transform_17(%arg0: i32) -> (i32, i32) {
    %c0_i32 = arith.constant 0 : i32
    %c0_i32_0 = arith.constant 0 : i32
    %c0_i32_1 = arith.constant 0 : i32
    return %c0_i32, %c0_i32_0 : i32, i32
  }
  func.func @transform_18(%arg0: i32) -> (i32, i32) {
    %c0_i32 = arith.constant 0 : i32
    %c0_i32_0 = arith.constant 0 : i32
    %c0_i32_1 = arith.constant 0 : i32
    return %c0_i32, %c0_i32_0 : i32, i32
  }
  func.func @transform_19(%arg0: i32) -> (i32, i32) {
    %c0_i32 = arith.constant 0 : i32
    %c0_i32_0 = arith.constant 0 : i32
    %c0_i32_1 = arith.constant 0 : i32
    return %c0_i32, %c0_i32_0 : i32, i32
  }
  func.func @transform_20(%arg0: i32) -> (i32, i32) {
    %c0_i32 = arith.constant 0 : i32
    %c0_i32_0 = arith.constant 0 : i32
    %c0_i32_1 = arith.constant 0 : i32
    return %c0_i32, %c0_i32_0 : i32, i32
  }
}

</mosaic_0001>

<bundles_post_ra>
// kernel: tpu_custom_call.1
= control target key start
LH: loop header
LB: loop body
LE: loop exit
PB: predicated region body
PF: predicated region fallthrough
CT: control target
= control target key end

     0   :  { %s8141_s0 = inlined_call_operand.hbm [shape: f32[8,256], index: 0, kind: input, shape index: {}]   ;;  %s8142_s1 = inlined_call_operand.hbm [shape: f32[8,2304], index: 1, kind: input, shape index: {}]   ;;  %s8143_s2 = inlined_call_operand.hbm [shape: f32[256,128], index: 2, kind: input, shape index: {}]   ;;  %s8144_s3 = inlined_call_operand.hbm [shape: f32[1,128], index: 3, kind: input, shape index: {}]   ;;  %s8145_s4 = inlined_call_operand.hbm [shape: f32[1,128], index: 4, kind: input, shape index: {}]   ;;  %s8146_s5 = inlined_call_operand.hbm [shape: f32[1,128], index: 5, kind: input, shape index: {}]   ;;  %s8147_s6 = inlined_call_operand.hbm [shape: f32[128,128], index: 6, kind: input, shape index: {}]   ;;  %s8148_s7 = inlined_call_operand.hbm [shape: f32[1,128], index: 7, kind: input, shape index: {}]   ;;  %s8149_s8 = inlined_call_operand.hbm [shape: f32[1,128], index: 8, kind: input, shape index: {}]   ;;  %s8150_s9 = inlined_call_operand.hbm [shape: f32[1,128], index: 9, kind: input, shape index: {}]   ;;  %s8151_s10 = inlined_call_operand.hbm [shape: f32[2304,1024], index: 10, kind: input, shape index: {}]   ;;  %s8152_s11 = inlined_call_operand.hbm [shape: f32[1,1024], index: 11, kind: input, shape index: {}]   ;;  %s8153_s12 = inlined_call_operand.hbm [shape: f32[1,1024], index: 12, kind: input, shape index: {}]   ;;  %s8154_s13 = inlined_call_operand.hbm [shape: f32[1,1024], index: 13, kind: input, shape index: {}]   ;;  %s8155_s14 = inlined_call_operand.hbm [shape: f32[1024,128], index: 14, kind: input, shape index: {}]   ;;  %s8156_s15 = inlined_call_operand.hbm [shape: f32[1,128], index: 15, kind: input, shape index: {}]   ;;  %s8157_s16 = inlined_call_operand.hbm [shape: f32[1,128], index: 16, kind: input, shape index: {}]   ;;  %s8158_s17 = inlined_call_operand.hbm [shape: f32[1,128], index: 17, kind: input, shape index: {}]   ;;  %s8159_s18 = inlined_call_operand.hbm [shape: f32[128,128], index: 18, kind: input, shape index: {}]   ;;  %s8160_s19 = inlined_call_operand.hbm [shape: f32[1,128], index: 19, kind: input, shape index: {}]   ;;  %s8161_s20 = inlined_call_operand.hbm [shape: f32[8,128], index: 20, kind: output, shape index: {}]  }
   0x1   :  { %8189 = sst [smem:[#allocation55_spill]] %s8141_s0 }
   0x2   :  { %8190 = sst [smem:[#allocation56_spill]] %s8142_s1 }
   0x3   :  { %8191 = sst [smem:[#allocation57_spill]] %s8143_s2 }
   0x4   :  { %8192 = sst [smem:[#allocation58_spill]] %s8144_s3 }
   0x5   :  { %8193 = sst [smem:[#allocation59_spill]] %s8145_s4 }
   0x6   :  { %8194 = sst [smem:[#allocation60_spill]] %s8146_s5 }
   0x7   :  { %8195 = sst [smem:[#allocation61_spill]] %s8147_s6 }
   0x8   :  { %8196 = sst [smem:[#allocation62_spill]] %s8148_s7 }
   0x9   :  { %8197 = sst [smem:[#allocation63_spill]] %s8149_s8 }
   0xa   :  { %8198 = sst [smem:[#allocation64_spill]] %s8150_s9 }
   0xb   :  { %8199 = sst [smem:[#allocation65_spill]] %s8151_s10 }
   0xc   :  { %8200 = sst [smem:[#allocation66_spill]] %s8158_s17 }
   0xd   :  { %8201 = sst [smem:[#allocation67_spill]] %s8160_s19 }
   0xe   :  { %8202 = sst [smem:[#allocation68_spill]] %s8161_s20 }
   0xf   :  { %25 = vsyncpa [#allocation4], 0 }
  0x10   :  { %26 = vsyncpa [#allocation7], 0 }
  0x11   :  { %28 = vsyncpa [#allocation7 + $0x1], 0 }
  0x12   :  { %29 = vsyncpa [#allocation10], 0 }
  0x13   :  { %30 = vsyncpa [#allocation13], 0 }
  0x14   :  { %31 = vsyncpa [#allocation16], 0 }
  0x15   :  { %32 = vsyncpa [#allocation19], 0 }
  0x16   :  { %33 = vsyncpa [#allocation27], 0 }
  0x17   :  { %34 = vsyncpa [#allocation30], 0 }
  0x18   :  { %35 = vsyncpa [#allocation5], 0  ;;  %s6452_s1 = smov 0   ;;  %s6454_s22 = smov 0  }
  0x19   :  { %s6456_s23 = smov 0   ;;  %s6458_s24 = smov 0  }
  0x1a LB: > { %8203 = sst [smem:[#allocation49_spill]] %s6304_s1  ;;  %s6318_s2 = smov [#allocation8]   ;;  %s6316_s24 = sphi %s6458_s24, %s6857_s24   ;;  %s6312_s23 = sphi %s6456_s23, %s8280_s23   ;;  %s6308_s22 = sphi %s6454_s22, %s8279_s22   ;;  %s6304_s1 = sphi %s6452_s1, %s8278_s1  }
  0x1b   : > { %8204 = sst [smem:[#allocation50_spill]] %s6308_s22  ;;  %s520_s25 = sshll.u32 %s6318_s2, 4  ;;  %s6479_s25 = int_to_ptr.vmem [resolvable:$true] %s520_s25 }
  0x1c   : > { %8205 = sst [smem:[#allocation51_spill]] %s6312_s23  ;;  %s6473_s3 = sadd.s32 4294967295, %s6316_s24  }
  0x1d   : > { %8206 = sst [smem:[#allocation52_spill]] %s6316_s24  ;;  %p4025_p0 = scmp.ge.s32.totalorder %s6316_s24, 1 }
  0x1e   : > { %8207 = sst [smem:[#allocation53_spill]] %s6473_s3  ;;  %p8179_p1 = scmp.eq.s32.totalorder %s6473_s3, 0 }
  0x1f   : > { %p497_p2 = scmp.lt.s32.totalorder %s6316_s24, 4  ;;  %s6319_s27 = smov [#allocation9]  }
  0x20   : > { %s534_s28 = sshll.u32 %s6319_s27, 4  ;;  %s6320_s29 = smov [#allocation12]   ;;  %s6493_s28 = int_to_ptr.vmem [resolvable:$true] %s534_s28 }
  0x21   : > { %p6481_p4 = pnand %p4025_p0, %p497_p2  ;;  %s556_s30 = sshll.u32 %s6320_s29, 4  ;;  %s6495_s30 = int_to_ptr.vmem [resolvable:$true] %s556_s30 }
  0x22   : > { %s8211_s2 = sld [smem:[#allocation57_spill]] }
  0x23   : > { %s8208_s26 = scalar_select %p6481_p4, 1, 0 }
  0x24   : > { %p5440_p5 = pneg %p6481_p4 }
  0x25   : > { %8209 = sst [smem:[#allocation54_spill]] %s8208_s26 }
  0x26   : > { %p6489_p6 = pnand %p5440_p5, %p8179_p1 }
  0x28   : > { %s5632_s20 = scalar_lea.hbm %s8211_s2, 4096  ;;  %p6505_p8 = pneg %p6489_p6 }
  0x29   : > { %p5633_p7 = scmp.ne.s32.totalorder %s8211_s2, %s5632_s20  ;;  %p5639_p11 = scmp.lt.u32.totalorder %s5632_s20, %s8211_s2 }
  0x2b   : > { %p5635_p9 = pnand %p6505_p8, %p5633_p7 }
  0x2d   : > { %p5636_p10 = pneg %p5635_p9 }
  0x2f   : > { %p5641_p12 = pnand %p5639_p11, %p5636_p10 }
  0x31   : > { %5644 = shalt.err (!%p5641_p12)
}
  0x32   : > { %s5645_s10 = scalar_lea.vmem %s6479_s25, 4096  ;;  %p5653_p5 = scmp.lt.s32.totalorder %s6479_s25, %s6479_s25 }
  0x33   : > { %p5646_p13 = scmp.ne.s32.totalorder %s6479_s25, %s5645_s10  ;;  %p5654_p3 = scmp.lt.s32.totalorder %s5645_s10, %s5645_s10 }
  0x35   : > { %p5648_p0 = pnand %p5646_p13, %p6505_p8  ;;  %p5655_p7 = por %p5654_p3, %p5653_p5 }
  0x37   : > { %p5649_p2 = pneg %p5648_p0 }
  0x39   : > { %p5656_p9 = pnand %p5655_p7, %p5649_p2 }
  0x3b   : > { %5659 = shalt.err (!%p5656_p9)
}
  0x3c   : > { %s8181_s26 = smov 128   ;;  %s8183_s20 = smov 8  }
  0x3d   : > { %5446 = dma.hbm_to_vmem [thread:$0]  (!%p6489_p6), %s8211_s2, 4096, %s6479_s25, [#allocation7], %s8181_s26, %s8181_s26, %s8183_s20  }
  0x3e   : > { %s8213_s1 = sld [smem:[#allocation58_spill]] }
  0x44   : > { %s8214_s19 = smov %s8213_s1  ;;  %s5660_s10 = scalar_lea.hbm %s8213_s1, 16 }
  0x45   : > { %p5661_p3 = scmp.ne.s32.totalorder %s8214_s19, %s5660_s10  ;;  %p5667_p12 = scmp.lt.u32.totalorder %s5660_s10, %s8214_s19 }
  0x47   : > { %p5663_p10 = pnand %p5661_p3, %p6505_p8 }
  0x49   : > { %p5664_p11 = pneg %p5663_p10 }
  0x4b   : > { %p5669_p13 = pnand %p5667_p12, %p5664_p11 }
  0x4d   : > { %5672 = shalt.err (!%p5669_p13)
}
  0x4e   : > { %s5673_s25 = scalar_lea.vmem %s6493_s28, 16  ;;  %s5680_s1 = scalar_lea.vmem %s6493_s28, 32 }
  0x4f   : > { %p5674_p0 = scmp.ne.s32.totalorder %s6493_s28, %s5673_s25  ;;  %p5681_p7 = scmp.lt.s32.totalorder %s6493_s28, %s6493_s28 }
  0x50   : > { %p5682_p9 = scmp.lt.s32.totalorder %s5680_s1, %s5673_s25 }
  0x51   : > { %p5676_p2 = pnand %p5674_p0, %p6505_p8 }
  0x52   : > { %p5683_p3 = por %p5682_p9, %p5681_p7 }
  0x53   : > { %p5677_p5 = pneg %p5676_p2 }
  0x55   : > { %p5684_p10 = pnand %p5683_p3, %p5677_p5 }
  0x57   : > { %5687 = shalt.err (!%p5684_p10)
}
  0x58   : > { %5449 = dma.hbm_to_vmem [thread:$0]  (!%p6489_p6), %s8214_s19, 16, %s6493_s28, [#allocation10]  }
  0x59   : > { %s8215_s5 = sld [smem:[#allocation60_spill]] }
  0x5f   : > { %s5688_s3 = scalar_lea.hbm %s8215_s5, 16 }
  0x60   : > { %p5689_p11 = scmp.ne.s32.totalorder %s8215_s5, %s5688_s3  ;;  %p5695_p0 = scmp.lt.u32.totalorder %s5688_s3, %s8215_s5 }
  0x62   : > { %p5691_p12 = pnand %p5689_p11, %p6505_p8 }
  0x64   : > { %p5692_p13 = pneg %p5691_p12 }
  0x66   : > { %p5697_p2 = pnand %p5695_p0, %p5692_p13 }
  0x68   : > { %5700 = shalt.err (!%p5697_p2)
}
  0x69   : > { %s5701_s28 = scalar_lea.vmem %s6495_s30, 16  ;;  %s5708_s25 = scalar_lea.vmem %s6495_s30, 32 }
  0x6a   : > { %p5702_p5 = scmp.ne.s32.totalorder %s6495_s30, %s5701_s28  ;;  %p5709_p3 = scmp.lt.s32.totalorder %s6495_s30, %s6495_s30 }
  0x6b   : > { %p5710_p10 = scmp.lt.s32.totalorder %s5708_s25, %s5701_s28 }
  0x6c   : > { %p5704_p7 = pnand %p5702_p5, %p6505_p8 }
  0x6d   : > { %p5711_p11 = por %p5710_p10, %p5709_p3 }
  0x6e   : > { %p5705_p9 = pneg %p5704_p7 }
  0x70   : > { %p5712_p12 = pnand %p5711_p11, %p5705_p9 }
  0x72   : > { %5715 = shalt.err (!%p5712_p12)
}
  0x73   : > { %5455 = dma.hbm_to_vmem [thread:$0]  (!%p6489_p6), %s8215_s5, 16, %s6495_s30, [#allocation13]  }
  0x74   : > { %s6323_s22 = smov [#allocation15]   ;;  %s6324_s24 = smov [#allocation3]  }
  0x75   : > { %s580_s23 = sshll.u32 %s6323_s22, 4  ;;  %s510_s3 = sshll.u32 %s6324_s24, 4  ;;  %s581_s23 = int_to_ptr.vmem [resolvable:$true] %s580_s23  ;;  %s511_s3 = int_to_ptr.vmem [resolvable:$true] %s510_s3 }
  0x76   : > { %s8216_s7 = sld [smem:[#allocation62_spill]] }
  0x7c   : > { %s5716_s29 = scalar_lea.hbm %s8216_s7, 16 }
  0x7d   : > { %p5717_p13 = scmp.ne.s32.totalorder %s8216_s7, %s5716_s29  ;;  %p5723_p5 = scmp.lt.u32.totalorder %s5716_s29, %s8216_s7 }
  0x7f   : > { %p5719_p0 = pnand %p5717_p13, %p6505_p8 }
  0x81   : > { %p5720_p2 = pneg %p5719_p0 }
  0x83   : > { %p5725_p7 = pnand %p5723_p5, %p5720_p2 }
  0x85   : > { %5728 = shalt.err (!%p5725_p7)
}
  0x86   : > { %s5729_s30 = scalar_lea.vmem %s581_s23, 16  ;;  %s5736_s17 = scalar_lea.vmem %s581_s23, 32 }
  0x87   : > { %p5730_p9 = scmp.ne.s32.totalorder %s581_s23, %s5729_s30  ;;  %p5737_p11 = scmp.lt.s32.totalorder %s581_s23, %s581_s23 }
  0x88   : > { %p5738_p12 = scmp.lt.s32.totalorder %s5736_s17, %s5729_s30 }
  0x89   : > { %p5732_p3 = pnand %p5730_p9, %p6505_p8 }
  0x8a   : > { %p5739_p1 = por %p5738_p12, %p5737_p11 }
  0x8b   : > { %p5733_p10 = pneg %p5732_p3 }
  0x8d   : > { %p5740_p4 = pnand %p5739_p1, %p5733_p10 }
  0x8f   : > { %5743 = shalt.err (!%p5740_p4)
}
  0x90   : > { %5461 = dma.hbm_to_vmem [thread:$0]  (!%p6489_p6), %s8216_s7, 16, %s581_s23, [#allocation16]  }
  0x91   : > { %s8217_s29 = sld [smem:[#allocation55_spill]] }
  0x97   : > { %s5744_s10 = scalar_lea.hbm %s8217_s29, 256 }
  0x98   : > { %p5745_p13 = scmp.ne.s32.totalorder %s8217_s29, %s5744_s10  ;;  %p5751_p4 = scmp.lt.u32.totalorder %s5744_s10, %s8217_s29 }
  0x9a   : > { %p5747_p0 = pnand %p5745_p13, %p6505_p8 }
  0x9c   : > { %p5748_p1 = pneg %p5747_p0 }
  0x9e   : > { %p5753_p2 = pnand %p5751_p4, %p5748_p1 }
  0xa0   : > { %5756 = shalt.err (!%p5753_p2)
}
  0xa1   : > { %s5757_s17 = scalar_lea.vmem %s511_s3, 256  ;;  %p5765_p3 = scmp.lt.s32.totalorder %s511_s3, %s511_s3 }
  0xa2   : > { %p5758_p5 = scmp.ne.s32.totalorder %s511_s3, %s5757_s17  ;;  %p5766_p10 = scmp.lt.s32.totalorder %s5757_s17, %s5757_s17 }
  0xa4   : > { %p5760_p7 = pnand %p5758_p5, %p6505_p8  ;;  %p5767_p11 = por %p5766_p10, %p5765_p3 }
  0xa6   : > { %p5761_p9 = pneg %p5760_p7 }
  0xa8   : > { %p5768_p12 = pnand %p5767_p11, %p5761_p9 }
  0xaa   : > { %5771 = shalt.err (!%p5768_p12)
}
  0xab   : > { %5443 = dma.hbm_to_vmem [thread:$0]  (!%p6489_p6), %s8217_s29, 256, %s511_s3, [#allocation4]  }
  0xac   : > { %s6325_s24 = smov [#allocation11]   ;;  %s6326_s21 = smov [#allocation14]  }
  0xad   : > { %s545_s0 = sshll.u32 %s6325_s24, 4  ;;  %s566_s10 = sshll.u32 %s6326_s21, 4  ;;  %s546_s0 = int_to_ptr.vmem [resolvable:$true] %s545_s0  ;;  %s567_s10 = int_to_ptr.vmem [resolvable:$true] %s566_s10 }
  0xae   : > { %s8218_s1 = sld [smem:[#allocation59_spill]] }
  0xb4   : > { %s8219_s30 = smov %s8218_s1  ;;  %s5772_s26 = scalar_lea.hbm %s8218_s1, 16 }
  0xb5   : > { %p5773_p13 = scmp.ne.s32.totalorder %s8219_s30, %s5772_s26  ;;  %p5779_p4 = scmp.lt.u32.totalorder %s5772_s26, %s8219_s30 }
  0xb7   : > { %p5775_p0 = pnand %p5773_p13, %p6505_p8 }
  0xb9   : > { %p5776_p1 = pneg %p5775_p0 }
  0xbb   : > { %p5781_p2 = pnand %p5779_p4, %p5776_p1 }
  0xbd   : > { %5784 = shalt.err (!%p5781_p2)
}
  0xbe   : > { %s5785_s3 = scalar_lea.vmem %s546_s0, 16  ;;  %s5792_s22 = scalar_lea.vmem %s546_s0, 32 }
  0xbf   : > { %p5786_p5 = scmp.ne.s32.totalorder %s546_s0, %s5785_s3  ;;  %p5793_p3 = scmp.lt.s32.totalorder %s546_s0, %s546_s0 }
  0xc0   : > { %p5794_p10 = scmp.lt.s32.totalorder %s5792_s22, %s5785_s3 }
  0xc1   : > { %p5788_p7 = pnand %p5786_p5, %p6505_p8 }
  0xc2   : > { %p5795_p11 = por %p5794_p10, %p5793_p3 }
  0xc3   : > { %p5789_p9 = pneg %p5788_p7 }
  0xc5   : > { %p5796_p12 = pnand %p5795_p11, %p5789_p9 }
  0xc7   : > { %5799 = shalt.err (!%p5796_p12)
}
  0xc8   : > { %5452 = dma.hbm_to_vmem [thread:$0]  (!%p6489_p6), %s8219_s30, 16, %s546_s0, [#allocation10]  }
  0xc9   : > { %s8220_s6 = sld [smem:[#allocation61_spill]] }
  0xcf   : > { %s5800_s21 = scalar_lea.hbm %s8220_s6, 2048 }
  0xd0   : > { %p5801_p13 = scmp.ne.s32.totalorder %s8220_s6, %s5800_s21  ;;  %p5807_p4 = scmp.lt.u32.totalorder %s5800_s21, %s8220_s6 }
  0xd2   : > { %p5803_p0 = pnand %p5801_p13, %p6505_p8 }
  0xd4   : > { %p5804_p1 = pneg %p5803_p0 }
  0xd6   : > { %p5809_p2 = pnand %p5807_p4, %p5804_p1 }
  0xd8   : > { %5812 = shalt.err (!%p5809_p2)
}
  0xd9   : > { %s5813_s23 = scalar_lea.vmem %s567_s10, 2048  ;;  %p5821_p3 = scmp.lt.s32.totalorder %s567_s10, %s567_s10 }
  0xda   : > { %p5814_p5 = scmp.ne.s32.totalorder %s567_s10, %s5813_s23  ;;  %p5822_p10 = scmp.lt.s32.totalorder %s5813_s23, %s5813_s23 }
  0xdc   : > { %p5816_p7 = pnand %p5814_p5, %p6505_p8  ;;  %p5823_p11 = por %p5822_p10, %p5821_p3 }
  0xde   : > { %p5817_p9 = pneg %p5816_p7 }
  0xe0   : > { %p5824_p12 = pnand %p5823_p11, %p5817_p9 }
  0xe2   : > { %5827 = shalt.err (!%p5824_p12)
}
  0xe3   : > { %s8221_s0 = smov 8   ;;  %s8222_s3 = smov 128  }
  0xe4   : > { %5458 = dma.hbm_to_vmem [thread:$0]  (!%p6489_p6), %s8220_s6, 2048, %s567_s10, [#allocation13], %s8222_s3, %s8222_s3, %s8221_s0  }
  0xe5   : > { %s6327_s24 = smov [#allocation17]   ;;  %s6328_s26 = smov [#allocation18]  }
  0xe6   : > { %s591_s2 = sshll.u32 %s6327_s24, 4  ;;  %s602_s21 = sshll.u32 %s6328_s26, 4  ;;  %s592_s2 = int_to_ptr.vmem [resolvable:$true] %s591_s2  ;;  %s603_s21 = int_to_ptr.vmem [resolvable:$true] %s602_s21 }
  0xe7   : > { %s8223_s8 = sld [smem:[#allocation63_spill]] }
  0xed   : > { %s5828_s1 = scalar_lea.hbm %s8223_s8, 16 }
  0xee   : > { %p5829_p13 = scmp.ne.s32.totalorder %s8223_s8, %s5828_s1  ;;  %p5835_p4 = scmp.lt.u32.totalorder %s5828_s1, %s8223_s8 }
  0xf0   : > { %p5831_p0 = pnand %p5829_p13, %p6505_p8 }
  0xf2   : > { %p5832_p1 = pneg %p5831_p0 }
  0xf4   : > { %p5837_p2 = pnand %p5835_p4, %p5832_p1 }
  0xf6   : > { %5840 = shalt.err (!%p5837_p2)
}
  0xf7   : > { %s5841_s10 = scalar_lea.vmem %s592_s2, 16  ;;  %s5848_s20 = scalar_lea.vmem %s592_s2, 32 }
  0xf8   : > { %p5842_p5 = scmp.ne.s32.totalorder %s592_s2, %s5841_s10  ;;  %p5849_p3 = scmp.lt.s32.totalorder %s592_s2, %s592_s2 }
  0xf9   : > { %p5850_p10 = scmp.lt.s32.totalorder %s5848_s20, %s5841_s10 }
  0xfa   : > { %p5844_p7 = pnand %p5842_p5, %p6505_p8 }
  0xfb   : > { %p5851_p11 = por %p5850_p10, %p5849_p3 }
  0xfc   : > { %p5845_p9 = pneg %p5844_p7 }
  0xfe   : > { %p5852_p12 = pnand %p5851_p11, %p5845_p9 }
 0x100   : > { %5855 = shalt.err (!%p5852_p12)
}
 0x101   : > { %5464 = dma.hbm_to_vmem [thread:$0]  (!%p6489_p6), %s8223_s8, 16, %s592_s2, [#allocation16]  }
 0x102   : > { %s8224_s9 = sld [smem:[#allocation64_spill]] }
 0x108   : > { %s5856_s25 = scalar_lea.hbm %s8224_s9, 16 }
 0x109   : > { %p5857_p13 = scmp.ne.s32.totalorder %s8224_s9, %s5856_s25  ;;  %p5863_p4 = scmp.lt.u32.totalorder %s5856_s25, %s8224_s9 }
 0x10b   : > { %p5859_p0 = pnand %p5857_p13, %p6505_p8 }
 0x10d   : > { %p5860_p1 = pneg %p5859_p0 }
 0x10f   : > { %p5865_p2 = pnand %p5863_p4, %p5860_p1 }
 0x111   : > { %5868 = shalt.err (!%p5865_p2)
}
 0x112   : > { %s5869_s10 = scalar_lea.vmem %s603_s21, 16  ;;  %s5876_s2 = scalar_lea.vmem %s603_s21, 32 }
 0x113   : > { %p5870_p5 = scmp.ne.s32.totalorder %s603_s21, %s5869_s10  ;;  %p5877_p3 = scmp.lt.s32.totalorder %s603_s21, %s603_s21 }
 0x114   : > { %p5878_p10 = scmp.lt.s32.totalorder %s5876_s2, %s5869_s10 }
 0x115   : > { %p5872_p7 = pnand %p5870_p5, %p6505_p8 }
 0x116   : > { %p5879_p11 = por %p5878_p10, %p5877_p3 }
 0x117   : > { %p5873_p9 = pneg %p5872_p7 }
 0x119   : > { %p5880_p12 = pnand %p5879_p11, %p5873_p9 }
 0x11b   : > { %5883 = shalt.err (!%p5880_p12)
}
 0x11c   : > { %5467 = dma.hbm_to_vmem [thread:$0]  (!%p6489_p6), %s8224_s9, 16, %s603_s21, [#allocation19]  }
 0x11d   : > { %s6329_s26 = smov [#allocation21]   ;;  %s6330_s28 = smov [#allocation26]  }
 0x11e   : > { %s613_s5 = sshll.u32 %s6329_s26, 4  ;;  %s670_s25 = sshll.u32 %s6330_s28, 4  ;;  %s614_s5 = int_to_ptr.vmem [resolvable:$true] %s613_s5  ;;  %s671_s25 = int_to_ptr.vmem [resolvable:$true] %s670_s25 }
 0x11f   : > { %s5884_s23 = scalar_lea.hbm %s8152_s11, 128 }
 0x120   : > { %p5885_p13 = scmp.ne.s32.totalorder %s8152_s11, %s5884_s23  ;;  %p5891_p4 = scmp.lt.u32.totalorder %s5884_s23, %s8152_s11 }
 0x122   : > { %p5887_p0 = pnand %p5885_p13, %p6505_p8 }
 0x124   : > { %p5888_p1 = pneg %p5887_p0 }
 0x126   : > { %p5893_p2 = pnand %p5891_p4, %p5888_p1 }
 0x128   : > { %5896 = shalt.err (!%p5893_p2)
}
 0x129   : > { %s5897_s21 = scalar_lea.vmem %s614_s5, 128  ;;  %p5905_p3 = scmp.lt.s32.totalorder %s614_s5, %s614_s5 }
 0x12a   : > { %p5898_p5 = scmp.ne.s32.totalorder %s614_s5, %s5897_s21  ;;  %p5906_p10 = scmp.lt.s32.totalorder %s5897_s21, %s5897_s21 }
 0x12c   : > { %p5900_p7 = pnand %p5898_p5, %p6505_p8  ;;  %p5907_p11 = por %p5906_p10, %p5905_p3 }
 0x12e   : > { %p5901_p9 = pneg %p5900_p7 }
 0x130   : > { %p5908_p12 = pnand %p5907_p11, %p5901_p9 }
 0x132   : > { %5911 = shalt.err (!%p5908_p12)
}
 0x133   : > { %5470 = dma.hbm_to_vmem [thread:$0]  (!%p6489_p6), %s8152_s11, 128, %s614_s5, [#allocation7]  }
 0x134   : > { %s5912_s17 = scalar_lea.hbm %s8157_s16, 16 }
 0x135   : > { %p5913_p13 = scmp.ne.s32.totalorder %s8157_s16, %s5912_s17  ;;  %p5919_p4 = scmp.lt.u32.totalorder %s5912_s17, %s8157_s16 }
 0x137   : > { %p5915_p0 = pnand %p5913_p13, %p6505_p8 }
 0x139   : > { %p5916_p1 = pneg %p5915_p0 }
 0x13b   : > { %p5921_p2 = pnand %p5919_p4, %p5916_p1 }
 0x13d   : > { %5924 = shalt.err (!%p5921_p2)
}
 0x13e   : > { %s5925_s20 = scalar_lea.vmem %s671_s25, 16  ;;  %s5932_s5 = scalar_lea.vmem %s671_s25, 32 }
 0x13f   : > { %p5926_p5 = scmp.ne.s32.totalorder %s671_s25, %s5925_s20  ;;  %p5933_p3 = scmp.lt.s32.totalorder %s671_s25, %s671_s25 }
 0x140   : > { %p5934_p10 = scmp.lt.s32.totalorder %s5932_s5, %s5925_s20 }
 0x141   : > { %p5928_p7 = pnand %p5926_p5, %p6505_p8 }
 0x142   : > { %p5935_p11 = por %p5934_p10, %p5933_p3 }
 0x143   : > { %p5929_p9 = pneg %p5928_p7 }
 0x145   : > { %p5936_p12 = pnand %p5935_p11, %p5929_p9 }
 0x147   : > { %5939 = shalt.err (!%p5936_p12)
}
 0x148   : > { %5485 = dma.hbm_to_vmem [thread:$0]  (!%p6489_p6), %s8157_s16, 16, %s671_s25, [#allocation27]  }
 0x149   : > { %s6331_s26 = smov [#allocation29]   ;;  %s6332_s1 = smov [#allocation22]  }
 0x14a   : > { %s691_s28 = sshll.u32 %s6331_s26, 4  ;;  %s624_s17 = sshll.u32 %s6332_s1, 4  ;;  %s692_s28 = int_to_ptr.vmem [resolvable:$true] %s691_s28  ;;  %s625_s17 = int_to_ptr.vmem [resolvable:$true] %s624_s17 }
 0x14b   : > { %s5940_s10 = scalar_lea.hbm %s8159_s18, 2048 }
 0x14c   : > { %p5941_p13 = scmp.ne.s32.totalorder %s8159_s18, %s5940_s10  ;;  %p5947_p4 = scmp.lt.u32.totalorder %s5940_s10, %s8159_s18 }
 0x14e   : > { %p5943_p0 = pnand %p5941_p13, %p6505_p8 }
 0x150   : > { %p5944_p1 = pneg %p5943_p0 }
 0x152   : > { %p5949_p2 = pnand %p5947_p4, %p5944_p1 }
 0x154   : > { %5952 = shalt.err (!%p5949_p2)
}
 0x155   : > { %s5953_s25 = scalar_lea.vmem %s692_s28, 2048  ;;  %p5961_p3 = scmp.lt.s32.totalorder %s692_s28, %s692_s28 }
 0x156   : > { %p5954_p5 = scmp.ne.s32.totalorder %s692_s28, %s5953_s25  ;;  %p5962_p10 = scmp.lt.s32.totalorder %s5953_s25, %s5953_s25 }
 0x158   : > { %p5956_p7 = pnand %p5954_p5, %p6505_p8  ;;  %p5963_p11 = por %p5962_p10, %p5961_p3 }
 0x15a   : > { %p5957_p9 = pneg %p5956_p7 }
 0x15c   : > { %p5964_p12 = pnand %p5963_p11, %p5957_p9 }
 0x15e   : > { %5967 = shalt.err (!%p5964_p12)
}
 0x15f   : > { %5491 = dma.hbm_to_vmem [thread:$0]  (!%p6489_p6), %s8159_s18, 2048, %s692_s28, [#allocation30], %s8222_s3, %s8222_s3, %s8221_s0  }
 0x160   : > { %s5968_s22 = scalar_lea.hbm %s8153_s12, 128 }
 0x161   : > { %p5969_p13 = scmp.ne.s32.totalorder %s8153_s12, %s5968_s22  ;;  %p5975_p4 = scmp.lt.u32.totalorder %s5968_s22, %s8153_s12 }
 0x163   : > { %p5971_p0 = pnand %p5969_p13, %p6505_p8 }
 0x165   : > { %p5972_p1 = pneg %p5971_p0 }
 0x167   : > { %p5977_p2 = pnand %p5975_p4, %p5972_p1 }
 0x169   : > { %5980 = shalt.err (!%p5977_p2)
}
 0x16a   : > { %s5981_s21 = scalar_lea.vmem %s625_s17, 128  ;;  %p5989_p3 = scmp.lt.s32.totalorder %s625_s17, %s625_s17 }
 0x16b   : > { %p5982_p5 = scmp.ne.s32.totalorder %s625_s17, %s5981_s21  ;;  %p5990_p10 = scmp.lt.s32.totalorder %s5981_s21, %s5981_s21 }
 0x16d   : > { %p5984_p7 = pnand %p5982_p5, %p6505_p8  ;;  %p5991_p11 = por %p5990_p10, %p5989_p3 }
 0x16f   : > { %p5985_p9 = pneg %p5984_p7 }
 0x171   : > { %p5992_p12 = pnand %p5991_p11, %p5985_p9 }
 0x173   : > { %5995 = shalt.err (!%p5992_p12)
}
 0x174   : > { %5473 = dma.hbm_to_vmem [thread:$0]  (!%p6489_p6), %s8153_s12, 128, %s625_s17, [#allocation10]  }
 0x175   : > { %s6333_s24 = smov [#allocation23]   ;;  %s6334_s1 = smov [#allocation24]  }
 0x176   : > { %s635_s26 = sshll.u32 %s6333_s24, 4  ;;  %s645_s23 = sshll.u32 %s6334_s1, 4  ;;  %s636_s26 = int_to_ptr.vmem [resolvable:$true] %s635_s26  ;;  %s646_s23 = int_to_ptr.vmem [resolvable:$true] %s645_s23 }
 0x177   : > { %s5996_s2 = scalar_lea.hbm %s8154_s13, 128 }
 0x178   : > { %p5997_p13 = scmp.ne.s32.totalorder %s8154_s13, %s5996_s2  ;;  %p6003_p4 = scmp.lt.u32.totalorder %s5996_s2, %s8154_s13 }
 0x17a   : > { %p5999_p0 = pnand %p5997_p13, %p6505_p8 }
 0x17c   : > { %p6000_p1 = pneg %p5999_p0 }
 0x17e   : > { %p6005_p2 = pnand %p6003_p4, %p6000_p1 }
 0x180   : > { %6008 = shalt.err (!%p6005_p2)
}
 0x181   : > { %s6009_s17 = scalar_lea.vmem %s636_s26, 128  ;;  %p6017_p3 = scmp.lt.s32.totalorder %s636_s26, %s636_s26 }
 0x182   : > { %p6010_p5 = scmp.ne.s32.totalorder %s636_s26, %s6009_s17  ;;  %p6018_p10 = scmp.lt.s32.totalorder %s6009_s17, %s6009_s17 }
 0x184   : > { %p6012_p7 = pnand %p6010_p5, %p6505_p8  ;;  %p6019_p11 = por %p6018_p10, %p6017_p3 }
 0x186   : > { %p6013_p9 = pneg %p6012_p7 }
 0x188   : > { %p6020_p12 = pnand %p6019_p11, %p6013_p9 }
 0x18a   : > { %6023 = shalt.err (!%p6020_p12)
}
 0x18b   : > { %5476 = dma.hbm_to_vmem [thread:$0]  (!%p6489_p6), %s8154_s13, 128, %s636_s26, [#allocation13]  }
 0x18c   : > { %s6024_s10 = scalar_lea.hbm %s8155_s14, 16384 }
 0x18d   : > { %p6025_p13 = scmp.ne.s32.totalorder %s8155_s14, %s6024_s10  ;;  %p6031_p4 = scmp.lt.u32.totalorder %s6024_s10, %s8155_s14 }
 0x18f   : > { %p6027_p0 = pnand %p6025_p13, %p6505_p8 }
 0x191   : > { %p6028_p1 = pneg %p6027_p0 }
 0x193   : > { %p6033_p2 = pnand %p6031_p4, %p6028_p1 }
 0x195   : > { %6036 = shalt.err (!%p6033_p2)
}
 0x196   : > { %s6037_s28 = scalar_lea.vmem %s646_s23, 16384  ;;  %p6045_p3 = scmp.lt.s32.totalorder %s646_s23, %s646_s23 }
 0x197   : > { %p6038_p5 = scmp.ne.s32.totalorder %s646_s23, %s6037_s28  ;;  %p6046_p10 = scmp.lt.s32.totalorder %s6037_s28, %s6037_s28 }
 0x199   : > { %p6040_p7 = pnand %p6038_p5, %p6505_p8  ;;  %p6047_p11 = por %p6046_p10, %p6045_p3 }
 0x19b   : > { %p6041_p9 = pneg %p6040_p7 }
 0x19d   : > { %p6048_p12 = pnand %p6047_p11, %p6041_p9 }
 0x19f   : > { %6051 = shalt.err (!%p6048_p12)
}
 0x1a0   : > { %5479 = dma.hbm_to_vmem [thread:$0]  (!%p6489_p6), %s8155_s14, 16384, %s646_s23, [#allocation16], %s8222_s3, %s8222_s3, %s8221_s0  }
 0x1a1   : > { %s6335_s25 = smov [#allocation25]   ;;  %s6336_s1 = smov [#allocation28]  }
 0x1a2   : > { %s659_s24 = sshll.u32 %s6335_s25, 4  ;;  %s681_s22 = sshll.u32 %s6336_s1, 4  ;;  %s660_s24 = int_to_ptr.vmem [resolvable:$true] %s659_s24  ;;  %s682_s22 = int_to_ptr.vmem [resolvable:$true] %s681_s22 }
 0x1a3   : > { %s6052_s20 = scalar_lea.hbm %s8156_s15, 16 }
 0x1a4   : > { %p6053_p13 = scmp.ne.s32.totalorder %s8156_s15, %s6052_s20  ;;  %p6059_p4 = scmp.lt.u32.totalorder %s6052_s20, %s8156_s15 }
 0x1a6   : > { %p6055_p0 = pnand %p6053_p13, %p6505_p8 }
 0x1a8   : > { %p6056_p1 = pneg %p6055_p0 }
 0x1aa   : > { %p6061_p2 = pnand %p6059_p4, %p6056_p1 }
 0x1ac   : > { %6064 = shalt.err (!%p6061_p2)
}
 0x1ad   : > { %s6065_s0 = scalar_lea.vmem %s660_s24, 16  ;;  %s6072_s3 = scalar_lea.vmem %s660_s24, 32 }
 0x1ae   : > { %p6066_p5 = scmp.ne.s32.totalorder %s660_s24, %s6065_s0  ;;  %p6073_p3 = scmp.lt.s32.totalorder %s660_s24, %s660_s24 }
 0x1af   : > { %p6074_p10 = scmp.lt.s32.totalorder %s6072_s3, %s6065_s0 }
 0x1b0   : > { %p6068_p7 = pnand %p6066_p5, %p6505_p8 }
 0x1b1   : > { %p6075_p11 = por %p6074_p10, %p6073_p3 }
 0x1b2   : > { %p6069_p9 = pneg %p6068_p7 }
 0x1b4   : > { %p6076_p12 = pnand %p6075_p11, %p6069_p9 }
 0x1b6   : > { %6079 = shalt.err (!%p6076_p12)
}
 0x1b7   : > { %5482 = dma.hbm_to_vmem [thread:$0]  (!%p6489_p6), %s8156_s15, 16, %s660_s24, [#allocation19]  }
 0x1b8   : > { %s8225_s10 = sld [smem:[#allocation66_spill]] }
 0x1be   : > { %s6080_s2 = scalar_lea.hbm %s8225_s10, 16 }
 0x1bf   : > { %p6081_p13 = scmp.ne.s32.totalorder %s8225_s10, %s6080_s2  ;;  %p6087_p4 = scmp.lt.u32.totalorder %s6080_s2, %s8225_s10 }
 0x1c1   : > { %p6083_p0 = pnand %p6081_p13, %p6505_p8 }
 0x1c3   : > { %p6084_p1 = pneg %p6083_p0 }
 0x1c5   : > { %p6089_p2 = pnand %p6087_p4, %p6084_p1 }
 0x1c7   : > { %6092 = shalt.err (!%p6089_p2)
}
 0x1c8   : > { %s6093_s26 = scalar_lea.vmem %s682_s22, 16  ;;  %s6100_s24 = scalar_lea.vmem %s682_s22, 32 }
 0x1c9   : > { %p6094_p5 = scmp.ne.s32.totalorder %s682_s22, %s6093_s26  ;;  %p6101_p3 = scmp.lt.s32.totalorder %s682_s22, %s682_s22 }
 0x1ca   : > { %p6102_p10 = scmp.lt.s32.totalorder %s6100_s24, %s6093_s26 }
 0x1cb   : > { %p6096_p7 = pnand %p6094_p5, %p6505_p8 }
 0x1cc   : > { %p6103_p11 = por %p6102_p10, %p6101_p3 }
 0x1cd   : > { %p6097_p9 = pneg %p6096_p7 }
 0x1cf   : > { %p6104_p12 = pnand %p6103_p11, %p6097_p9 }
 0x1d1   : > { %6107 = shalt.err (!%p6104_p12)
}
 0x1d2   : > { %5488 = dma.hbm_to_vmem [thread:$0]  (!%p6489_p6), %s8225_s10, 16, %s682_s22, [#allocation27]  }
 0x1d3   : > { %s6337_s23 = smov [#allocation31]   ;;  %s8226_s2 = sld [smem:[#allocation67_spill]] }
 0x1d4   : > { %s705_s17 = sshll.u32 %s6337_s23, 4  ;;  %s706_s17 = int_to_ptr.vmem [resolvable:$true] %s705_s17 }
 0x1d9   : > { %s6108_s20 = scalar_lea.hbm %s8226_s2, 16 }
 0x1da   : > { %p6109_p13 = scmp.ne.s32.totalorder %s8226_s2, %s6108_s20  ;;  %p6115_p4 = scmp.lt.u32.totalorder %s6108_s20, %s8226_s2 }
 0x1dc   : > { %p6111_p0 = pnand %p6109_p13, %p6505_p8 }
 0x1de   : > { %p6112_p1 = pneg %p6111_p0 }
 0x1e0   : > { %p6117_p2 = pnand %p6115_p4, %p6112_p1 }
 0x1e2   : > { %6120 = shalt.err (!%p6117_p2)
}
 0x1e3   : > { %s6121_s22 = scalar_lea.vmem %s706_s17, 16  ;;  %s6128_s24 = scalar_lea.vmem %s706_s17, 32 }
 0x1e4   : > { %p6122_p5 = scmp.ne.s32.totalorder %s706_s17, %s6121_s22  ;;  %p6129_p3 = scmp.lt.s32.totalorder %s706_s17, %s706_s17 }
 0x1e5   : > { %p6130_p10 = scmp.lt.s32.totalorder %s6128_s24, %s6121_s22 }
 0x1e6   : > { %p6124_p7 = pnand %p6122_p5, %p6505_p8 }
 0x1e7   : > { %p6131_p11 = por %p6130_p10, %p6129_p3 }
 0x1e8   : > { %p6125_p9 = pneg %p6124_p7 }
 0x1ea   : > { %p6132_p12 = pnand %p6131_p11, %p6125_p9 }
 0x1ec   : > { %6135 = shalt.err (!%p6132_p12)
}
 0x1ed   : > { %s8227_s23 = sld [smem:[#allocation52_spill]]  ;;  %s8228_s25 = sld [smem:[#allocation51_spill]] }
 0x1ee   : > { %s8229_s1 = sld [smem:[#allocation50_spill]]  ;;  %s8230_s27 = sld [smem:[#allocation49_spill]] }
 0x1ef   : > { %s8231_s20 = sld [smem:[#allocation53_spill]] }
 0x1f0   : > { %5494 = dma.hbm_to_vmem [thread:$0]  (!%p6489_p6), %s8226_s2, 16, %s706_s17, [#allocation30]  }
 0x1f3   : > { %s6857_s24 = sadd.s32 1, %s8227_s23   ;;  %s69_s4 = sadd.s32 1, %s8228_s25 }
 0x1f4   : > { %s66_s5 = ssub.s32 %s8227_s23, %s6857_s24  ;;  %p76_p8 = scmp.ne.s32.totalorder %s8228_s25, %s8229_s1 }
 0x1f5   : > { %p67_p13 = scmp.eq.s32.totalorder %s66_s5, 0  ;;  %p77_p0 = scmp.eq.s32.totalorder %s8227_s23, 0 }
 0x1f6   : > { %p82_p1 = scmp.ne.s32.totalorder %s8229_s1, %s8230_s27  ;;  %p5520_p4 = scmp.lt.s32.totalorder %s8227_s23, 3 }
 0x1f7   : > { %s6869_s21 = scalar_select %p67_p13, %s8228_s25, %s69_s4  }
 0x1f8   : > { %p78_p2 = por %p77_p0, %p76_p8  ;;  %p8232_p5 = scmp.eq.s32.totalorder %s8231_s20, 0 }
 0x1f9   : > { %s8186_s26 = sand.u32 1, %s8228_s25   ;;  %s4081_s0 = smul.u32 768, %s8227_s23 }
 0x1fa   : > { %p6873_p7 = por %p8232_p5, %p82_p1  ;;  %s5356_s22 = smul.u32 48, %s8186_s26 }
 0x1fb   : > { %p6882_p6 = pnand %p5520_p4, %p78_p2  ;;  %s8235_s27 = sld [smem:[#allocation56_spill]] }
 0x1fc   : > { %s720_s20 = scalar_lea.vmem [#allocation6], %s5356_s22  ;;  %s8236_s26 = sand.u32 1, %s8227_s23  }
 0x1fd   : > { %s728_s17 = sshll.u32 %s720_s20, 4  ;;  %s717_s2 = scalar_lea.sflag [#allocation7], %s8236_s26  ;;  %s6891_s17 = int_to_ptr.vmem [resolvable:$true] %s728_s17 }
 0x1fe   : > { %p6138_p3 = pneg %p6882_p6 }
 0x201   : > { %s6889_s4 = scalar_lea.hbm %s8235_s27, %s4081_s0  ;;  %s6141_s1 = scalar_lea.hbm %s8235_s27, 2304 }
 0x202   : > { %s6136_s6 = scalar_lea.hbm %s6889_s4, 768  ;;  %p6142_p12 = scmp.lt.u32.totalorder %s6889_s4, %s8235_s27 }
 0x203   : > { %p6137_p9 = scmp.ne.s32.totalorder %s6889_s4, %s6136_s6  ;;  %p6143_p8 = scmp.lt.u32.totalorder %s6141_s1, %s6136_s6 }
 0x204   : > { %p6145_p0 = scmp.lt.u32.totalorder %s6136_s6, %s6889_s4 }
 0x205   : > { %p6139_p10 = pnand %p6138_p3, %p6137_p9  ;;  %p6144_p13 = por %p6143_p8, %p6142_p12 }
 0x207   : > { %p6140_p11 = pneg %p6139_p10  ;;  %p6146_p1 = por %p6145_p0, %p6144_p13 }
 0x209   : > { %p6147_p4 = pnand %p6146_p1, %p6140_p11 }
 0x20b   : > { %6150 = shalt.err (!%p6147_p4)
}
 0x20c   : > { %s6151_s26 = scalar_lea.vmem %s6891_s17, 768  ;;  %s6338_s22 = smov [#allocation6]  }
 0x20d   : > { %p6152_p2 = scmp.ne.s32.totalorder %s6891_s17, %s6151_s26  ;;  %s6156_s20 = sshll.u32 %s6338_s22, 4  ;;  %s6157_s20 = int_to_ptr.vmem [resolvable:$false] %s6156_s20 }
 0x20e   : > { %s6158_s7 = scalar_lea.vmem %s6157_s20, 1536  ;;  %p6159_p10 = scmp.lt.s32.totalorder %s6891_s17, %s6157_s20 }
 0x20f   : > { %p6154_p5 = pnand %p6152_p2, %p6138_p3  ;;  %p6160_p12 = scmp.lt.s32.totalorder %s6158_s7, %s6151_s26 }
 0x211   : > { %p6155_p9 = pneg %p6154_p5  ;;  %p6161_p8 = por %p6160_p12, %p6159_p10 }
 0x213   : > { %p6162_p13 = pnand %p6161_p8, %p6155_p9 }
 0x215   : > { %6165 = shalt.err (!%p6162_p13)
}
 0x216   : > { %5498 = dma.hbm_to_vmem [thread:$0]  (!%p6882_p6), %s6889_s4, 768, %s6891_s17, %s717_s2  }
 0x217   : > { %s8237_s6 = sand.u32 1, %s8228_s25   ;;  %s4084_s0 = smul.u32 98304, %s8227_s23 }
 0x218   : > { %s5357_s8 = smul.u32 6144, %s8237_s6  ;;  %s8238_s26 = sld [smem:[#allocation65_spill]] }
 0x219   : > { %s8239_s9 = sand.u32 1, %s8227_s23  }
 0x21a   : > { %s739_s5 = scalar_lea.vmem [#allocation20], %s5357_s8  ;;  %s6932_s10 = scalar_lea.sflag [#allocation4], %s8239_s9 }
 0x21b   : > { %s747_s1 = sshll.u32 %s739_s5, 4  ;;  %s6928_s1 = int_to_ptr.vmem [resolvable:$true] %s747_s1 }
 0x21e   : > { %s6926_s7 = scalar_lea.hbm %s8238_s26, %s4084_s0  ;;  %s6171_s4 = scalar_lea.hbm %s8238_s26, 294912 }
 0x21f   : > { %s6166_s2 = scalar_lea.hbm %s6926_s7, 98304  ;;  %p6172_p4 = scmp.lt.u32.totalorder %s6926_s7, %s8238_s26 }
 0x220   : > { %p6167_p11 = scmp.ne.s32.totalorder %s6926_s7, %s6166_s2  ;;  %p6173_p2 = scmp.lt.u32.totalorder %s6171_s4, %s6166_s2 }
 0x221   : > { %p6175_p9 = scmp.lt.u32.totalorder %s6166_s2, %s6926_s7 }
 0x222   : > { %p6169_p0 = pnand %p6167_p11, %p6138_p3  ;;  %p6174_p5 = por %p6173_p2, %p6172_p4 }
 0x224   : > { %p6170_p1 = pneg %p6169_p0  ;;  %p6176_p10 = por %p6175_p9, %p6174_p5 }
 0x226   : > { %p6177_p12 = pnand %p6176_p10, %p6170_p1 }
 0x228   : > { %6180 = shalt.err (!%p6177_p12)
}
 0x229   : > { %s6181_s9 = scalar_lea.vmem %s6928_s1, 98304  ;;  %s6339_s23 = smov [#allocation20]  }
 0x22a   : > { %p6182_p8 = scmp.ne.s32.totalorder %s6928_s1, %s6181_s9  ;;  %s6186_s0 = sshll.u32 %s6339_s23, 4  ;;  %s6187_s0 = int_to_ptr.vmem [resolvable:$false] %s6186_s0 }
 0x22b   : > { %s6188_s5 = scalar_lea.vmem %s6187_s0, 196608  ;;  %p6189_p0 = scmp.lt.s32.totalorder %s6928_s1, %s6187_s0 }
 0x22c   : > { %p6184_p13 = pnand %p6182_p8, %p6138_p3  ;;  %p6190_p4 = scmp.lt.s32.totalorder %s6188_s5, %s6181_s9 }
 0x22e   : > { %p6185_p11 = pneg %p6184_p13  ;;  %p6191_p2 = por %p6190_p4, %p6189_p0 }
 0x230   : > { %p6192_p5 = pnand %p6191_p2, %p6185_p11 }
 0x232   : > { %6195 = shalt.err (!%p6192_p5)
}
 0x233   : > { %s6340_s22 = smov 1024   ;;  %s6341_s20 = smov 64  }
 0x234   : > { %5501 = dma.hbm_to_vmem [thread:$0]  (!%p6882_p6), %s6926_s7, 98304, %s6928_s1, %s6932_s10, %s6340_s22, %s6340_s22, %s6341_s20  }
 0x235   : > { %s8240_s2 = sld [smem:[#allocation54_spill]] }
 0x23b   : > { %p8241_p3 = scmp.ne.s32.totalorder %s8240_s2, 0 }
 0x23c   : > { %s8242_s25 = sld [smem:[#allocation53_spill]] (!%p8241_p3) }
 0x23d   : > { %759 = sbr.rel (%p8241_p3) target bundleno = 2155 (0x86b), region = 100 }
 0x242   : > { %p8243_p1 = scmp.eq.s32.totalorder (!%p8241_p3), %s8242_s25, 0 }
 0x244   : > { %6239 = dma.done.wait (%p8243_p1), [#allocation4], 256   ;;  %p8244_p9 = pmov %p8243_p1 }
 0x245   : > { %s8245_s17 = sld [smem:[#allocation50_spill]]  ;;  %s765_s4 = sand.u32 1, %s8242_s25  }
 0x246   : > { %6241 = vsyncadd (%p8244_p9), [#allocation4], 4294967040  ;;  %s766_s9 = scalar_lea.sflag [#allocation7], %s765_s4 }
 0x24b   : > { %s767_s6 = sand.u32 1, %s8245_s17  }
 0x24c   : > { %s5358_s8 = smul.u32 48, %s767_s6 }
 0x24e   : > { %s6966_s23 = scalar_lea.vmem [#allocation6], %s5358_s8 }
 0x24f   : > { %6243 = dma.done.wait (%p6873_p7), %s766_s9, 768  }
 0x250   : > { %6245 = vsyncadd (%p6873_p7), %s766_s9, 4294966528  ;;  %p8246_p6 = pmov %p8243_p1 }
 0x251   : > { %p8247_p10 = pmov %p8243_p1 }
 0x252   : > { %6247 = dma.done.wait (%p8246_p6), [#allocation7], 4096  }
 0x253   : > { %6249 = vsyncadd (%p8247_p10), [#allocation7], 4294963200  ;;  %p8248_p12 = pmov %p8243_p1 }
 0x254   : > { %p8249_p8 = pmov %p8243_p1 }
 0x255   : > { %6251 = dma.done.wait (%p8248_p12), [#allocation10], 32  }
 0x256   : > { %6253 = vsyncadd (%p8249_p8), [#allocation10], 4294967264  ;;  %p8250_p13 = pmov %p8243_p1 }
 0x257   : > { %p8251_p11 = pmov %p8243_p1 }
 0x258   : > { %6255 = dma.done.wait (%p8250_p13), [#allocation13], 2064  }
 0x259   : > { %6257 = vsyncadd (%p8251_p11), [#allocation13], 4294965232  ;;  %p8252_p0 = pmov %p8243_p1 }
 0x25b   : > { %6259 = dma.done.wait (%p8252_p0), [#allocation16], 32   ;;  %p8253_p4 = pmov %p8252_p0 }
 0x25c   : > { %p8254_p2 = pmov %p8252_p0 }
 0x25d   : > { %6261 = vsyncadd (%p8253_p4), [#allocation16], 4294967264 }
 0x25e   : > { %6263 = dma.done.wait (%p8254_p2), [#allocation19], 16   ;;  %p8255_p5 = pmov %p8252_p0 }
 0x25f   : > { %s5359_s10 = smul.u32 6144, %s767_s6  ;;  %s807_s3 = scalar_lea.sflag [#allocation4], %s765_s4 }
 0x260   : > { %6265 = vsyncadd (%p8255_p5), [#allocation19], 4294967280 }
 0x261   : > { %s6992_s1 = scalar_lea.vmem [#allocation20], %s5359_s10 }
 0x262   : > { %6267 = dma.done.wait (%p6873_p7), %s807_s3, 98304  }
 0x263   : > { %6269 = vsyncadd (%p6873_p7), %s807_s3, 4294868992  ;;  %p8256_p3 = pmov %p8252_p0 }
 0x264   : > { %p8257_p1 = pmov %p8252_p0 }
 0x265   : > { %6271 = dma.done.wait (%p8256_p3), [#allocation7], 128  }
 0x266   : > { %6273 = vsyncadd (%p8257_p1), [#allocation7], 4294967168  ;;  %p8258_p9 = pmov %p8252_p0 }
 0x267   : > { %p8259_p6 = pmov %p8252_p0 }
 0x268   : > { %6275 = dma.done.wait (%p8258_p9), [#allocation10], 128  }
 0x269   : > { %6277 = vsyncadd (%p8259_p6), [#allocation10], 4294967168  ;;  %p8260_p10 = pmov %p8252_p0 }
 0x26a   : > { %p8261_p12 = pmov %p8252_p0 }
 0x26b   : > { %6279 = dma.done.wait (%p8260_p10), [#allocation13], 128  }
 0x26c   : > { %6281 = vsyncadd (%p8261_p12), [#allocation13], 4294967168  ;;  %p8262_p7 = pmov %p8252_p0 }
 0x26d   : > { %p8263_p8 = pmov %p8252_p0 }
 0x26e   : > { %6283 = dma.done.wait (%p8262_p7), [#allocation16], 16384  }
 0x26f   : > { %6285 = vsyncadd (%p8263_p8), [#allocation16], 4294950912  ;;  %p8264_p13 = pmov %p8252_p0 }
 0x270   : > { %p8265_p11 = pmov %p8252_p0 }
 0x271   : > { %6287 = dma.done.wait (%p8264_p13), [#allocation19], 16  }
 0x272   : > { %6289 = vsyncadd (%p8265_p11), [#allocation19], 4294967280 }
 0x273   : > { %6291 = dma.done.wait (%p8252_p0), [#allocation27], 32   ;;  %p8266_p4 = pmov %p8252_p0 }
 0x274   : > { %p8267_p2 = pmov %p8252_p0 }
 0x275   : > { %6293 = vsyncadd (%p8266_p4), [#allocation27], 4294967264 }
 0x276   : > { %6295 = dma.done.wait (%p8267_p2), [#allocation30], 2064   ;;  %p8268_p5 = pmov %p8252_p0 }
 0x277   : > { %p8269_p3 = scmp.ne.s32.totalorder %s8242_s25, 0 }
 0x278   : > { %6297 = vsyncadd (%p8268_p5), [#allocation30], 4294965232  ;;  %v6342_v0 = vmov (!%p8269_p3), 0.0  }
 0x279   : > { %908 = sbr.rel (%p8269_p3) target bundleno = 640 (0x280), region = 184  ;;  %909 = vst [vmem:[#allocation2] sm:$0xff] (!%p8269_p3), %v6342_v0  ;;  %910 = vst [vmem:[#allocation2 + $0x8] sm:$0xff] (!%p8269_p3), %v6342_v0 }
 0x27a   : > { %911 = vst [vmem:[#allocation2 + $0x10] sm:$0xff] (!%p8269_p3), %v6342_v0  ;;  %912 = vst [vmem:[#allocation2 + $0x18] sm:$0xff] (!%p8269_p3), %v6342_v0 }
 0x27b   : > { %913 = vst [vmem:[#allocation2 + $0x20] sm:$0xff] (!%p8269_p3), %v6342_v0  ;;  %914 = vst [vmem:[#allocation2 + $0x28] sm:$0xff] (!%p8269_p3), %v6342_v0 }
 0x27c   : > { %915 = vst [vmem:[#allocation2 + $0x30] sm:$0xff] (!%p8269_p3), %v6342_v0  ;;  %916 = vst [vmem:[#allocation2 + $0x38] sm:$0xff] (!%p8269_p3), %v6342_v0 }
 0x280 PF: > { %v932_v1 = vld [vmem:[%s6992_s1 + $0x8] sm:$0xff]  ;;  %v934_v3 = vld [vmem:[%s6992_s1 + $0x18] sm:$0xff]  ;;  %v931_v6 = vld [vmem:[%s6992_s1] sm:$0xff]  ;;  %s8270_s28 = sld [smem:[#allocation53_spill]] }
 0x281   : > { %v940_v2 = vld [vmem:[%s6992_s1 + $0x48] sm:$0xff]  ;;  %v942_v5 = vld [vmem:[%s6992_s1 + $0x58] sm:$0xff]  ;;  %v939_v7 = vld [vmem:[%s6992_s1 + $0x40] sm:$0xff] }
 0x282   : > { %v4364_v4 = vpack.c.bf16 %v940_v2, %v932_v1  ;;  %v4556_v8 = vpack.c.bf16 %v942_v5, %v934_v3  ;;  %v4366_v9 = vpack.c.bf16 %v939_v7, %v931_v6  ;;  %v933_v10 = vld [vmem:[%s6992_s1 + $0x10] sm:$0xff]  ;;  %v948_v12 = vld [vmem:[%s6992_s1 + $0x88] sm:$0xff]  ;;  %v950_v15 = vld [vmem:[%s6992_s1 + $0x98] sm:$0xff] }
 0x283   : > { %v941_v11 = vld [vmem:[%s6992_s1 + $0x50] sm:$0xff]  ;;  %v956_v14 = vld [vmem:[%s6992_s1 + $0xc8] sm:$0xff]  ;;  %v958_v16 = vld [vmem:[%s6992_s1 + $0xd8] sm:$0xff] }
 0x284   : > { %4365 = vmatprep.subr.bf16.mxu0 %v4364_v4  ;;  %v4558_v13 = vpack.c.bf16 %v941_v11, %v933_v10  ;;  %4557 = vmatprep.subr.bf16.mxu1 %v4556_v8  ;;  %v4368_v17 = vpack.c.bf16 %v956_v14, %v948_v12  ;;  %v4560_v18 = vpack.c.bf16 %v958_v16, %v950_v15  ;;  %v947_v19 = vld [vmem:[%s6992_s1 + $0x80] sm:$0xff]  ;;  %v949_v21 = vld [vmem:[%s6992_s1 + $0x90] sm:$0xff]  ;;  %v964_v24 = vld [vmem:[%s6992_s1 + $0x108] sm:$0xff] }
 0x285   : > { %4367 = vmatpush1.bf16.msra.mxu0 %v4366_v9  ;;  %v955_v20 = vld [vmem:[%s6992_s1 + $0xc0] sm:$0xff]  ;;  %v957_v23 = vld [vmem:[%s6992_s1 + $0xd0] sm:$0xff]  ;;  %v972_v25 = vld [vmem:[%s6992_s1 + $0x148] sm:$0xff] }
 0x286   : > { %4559 = vmatpush1.bf16.msra.mxu1 %v4558_v13  ;;  %v4370_v22 = vpack.c.bf16 %v955_v20, %v947_v19  ;;  %4369 = vmatprep.subr.bf16.mxu0 %v4368_v17  ;;  %v4562_v26 = vpack.c.bf16 %v957_v23, %v949_v21  ;;  %v4372_v27 = vpack.c.bf16 %v972_v25, %v964_v24  ;;  %v966_v28 = vld [vmem:[%s6992_s1 + $0x118] sm:$0xff]  ;;  %v963_v30 = vld [vmem:[%s6992_s1 + $0x100] sm:$0xff]  ;;  %v965_v33 = vld [vmem:[%s6992_s1 + $0x110] sm:$0xff]  ;;  %p4068_p1 = scmp.ne.s32.totalorder %s8270_s28, 2 }
 0x287   : > { %4561 = vmatprep.subr.bf16.mxu1 %v4560_v18  ;;  %v974_v29 = vld [vmem:[%s6992_s1 + $0x158] sm:$0xff]  ;;  %v971_v32 = vld [vmem:[%s6992_s1 + $0x140] sm:$0xff]  ;;  %v973_v34 = vld [vmem:[%s6992_s1 + $0x150] sm:$0xff]  ;;  %vm6344_vm0 = vmmov (!%p4068_p1), 0  }
 0x288   : > { %v4564_v31 = vpack.c.bf16 %v974_v29, %v966_v28  ;;  %v4374_v35 = vpack.c.bf16 %v971_v32, %v963_v30  ;;  %v980_v36 = vld [vmem:[%s6992_s1 + $0x188] sm:$0xff]  ;;  %v982_v38 = vld [vmem:[%s6992_s1 + $0x198] sm:$0xff]  ;;  %v4566_v39 = vpack.c.bf16 %v973_v34, %v965_v33  ;;  %v979_v42 = vld [vmem:[%s6992_s1 + $0x180] sm:$0xff] }
 0x289   : > { %4371 = vmatpush1.bf16.msra.mxu0 %v4370_v22  ;;  %v988_v37 = vld [vmem:[%s6992_s1 + $0x1c8] sm:$0xff]  ;;  %v990_v41 = vld [vmem:[%s6992_s1 + $0x1d8] sm:$0xff]  ;;  %v987_v43 = vld [vmem:[%s6992_s1 + $0x1c0] sm:$0xff] }
 0x28a   : > { %4563 = vmatpush1.bf16.msra.mxu1 %v4562_v26  ;;  %4373 = vmatprep.subr.bf16.mxu0 %v4372_v27  ;;  %v4376_v40 = vpack.c.bf16 %v988_v37, %v980_v36  ;;  %v4568_v44 = vpack.c.bf16 %v990_v41, %v982_v38  ;;  %v981_v45 = vld [vmem:[%s6992_s1 + $0x190] sm:$0xff]  ;;  %v996_v47 = vld [vmem:[%s6992_s1 + $0x208] sm:$0xff]  ;;  %v998_v49 = vld [vmem:[%s6992_s1 + $0x218] sm:$0xff]  ;;  %v4378_v51 = vpack.c.bf16 %v987_v43, %v979_v42 }
 0x28b   : > { %4565 = vmatprep.subr.bf16.mxu1 %v4564_v31  ;;  %v989_v46 = vld [vmem:[%s6992_s1 + $0x1d0] sm:$0xff]  ;;  %v1004_v48 = vld [vmem:[%s6992_s1 + $0x248] sm:$0xff]  ;;  %v1006_v50 = vld [vmem:[%s6992_s1 + $0x258] sm:$0xff] }
 0x28c   : > { %v4570_v52 = vpack.c.bf16 %v989_v46, %v981_v45  ;;  %v4380_v53 = vpack.c.bf16 %v1004_v48, %v996_v47  ;;  %v995_v54 = vld [vmem:[%s6992_s1 + $0x200] sm:$0xff]  ;;  %v997_v56 = vld [vmem:[%s6992_s1 + $0x210] sm:$0xff]  ;;  %v4572_v57 = vpack.c.bf16 %v1006_v50, %v998_v49  ;;  %v1012_v59 = vld [vmem:[%s6992_s1 + $0x288] sm:$0xff] }
 0x28d   : > { %4375 = vmatpush1.bf16.msra.mxu0 %v4374_v35  ;;  %v1003_v55 = vld [vmem:[%s6992_s1 + $0x240] sm:$0xff]  ;;  %v1005_v58 = vld [vmem:[%s6992_s1 + $0x250] sm:$0xff]  ;;  %v1020_v60 = vld [vmem:[%s6992_s1 + $0x2c8] sm:$0xff] }
 0x28e   : > { %4567 = vmatpush1.bf16.msra.mxu1 %v4566_v39  ;;  %4377 = vmatprep.subr.bf16.mxu0 %v4376_v40  ;;  %v1014_v61 = vld [vmem:[%s6992_s1 + $0x298] sm:$0xff]  ;;  %v4382_v63 = vpack.c.bf16 %v1003_v55, %v995_v54  ;;  %v4574_v0 = vpack.c.bf16 %v1005_v58, %v997_v56  ;;  %v4384_v1 = vpack.c.bf16 %v1020_v60, %v1012_v59  ;;  %v1011_v2 = vld [vmem:[%s6992_s1 + $0x280] sm:$0xff]  ;;  %v1013_v4 = vld [vmem:[%s6992_s1 + $0x290] sm:$0xff] }
 0x28f   : > { %4569 = vmatprep.subr.bf16.mxu1 %v4568_v44  ;;  %v1022_v62 = vld [vmem:[%s6992_s1 + $0x2d8] sm:$0xff]  ;;  %v1019_v3 = vld [vmem:[%s6992_s1 + $0x2c0] sm:$0xff]  ;;  %v1021_v6 = vld [vmem:[%s6992_s1 + $0x2d0] sm:$0xff] }
 0x290   : > { %v4576_v5 = vpack.c.bf16 %v1022_v62, %v1014_v61  ;;  %v1028_v7 = vld [vmem:[%s6992_s1 + $0x308] sm:$0xff]  ;;  %v1030_v9 = vld [vmem:[%s6992_s1 + $0x318] sm:$0xff]  ;;  %v4386_v11 = vpack.c.bf16 %v1019_v3, %v1011_v2  ;;  %v4578_v12 = vpack.c.bf16 %v1021_v6, %v1013_v4  ;;  %v1027_v14 = vld [vmem:[%s6992_s1 + $0x300] sm:$0xff] }
 0x291   : > { %4379 = vmatpush1.bf16.msra.mxu0 %v4378_v51  ;;  %v1036_v8 = vld [vmem:[%s6992_s1 + $0x348] sm:$0xff]  ;;  %v1038_v10 = vld [vmem:[%s6992_s1 + $0x358] sm:$0xff]  ;;  %v1035_v15 = vld [vmem:[%s6992_s1 + $0x340] sm:$0xff] }
 0x292   : > { %4571 = vmatpush1.bf16.msra.mxu1 %v4570_v52  ;;  %4381 = vmatprep.subr.bf16.mxu0 %v4380_v53  ;;  %v4388_v13 = vpack.c.bf16 %v1036_v8, %v1028_v7  ;;  %v1029_v16 = vld [vmem:[%s6992_s1 + $0x310] sm:$0xff]  ;;  %v4580_v17 = vpack.c.bf16 %v1038_v10, %v1030_v9  ;;  %v1044_v19 = vld [vmem:[%s6992_s1 + $0x388] sm:$0xff]  ;;  %v1046_v21 = vld [vmem:[%s6992_s1 + $0x398] sm:$0xff]  ;;  %v4390_v23 = vpack.c.bf16 %v1035_v15, %v1027_v14 }
 0x293   : > { %4573 = vmatprep.subr.bf16.mxu1 %v4572_v57  ;;  %v1037_v18 = vld [vmem:[%s6992_s1 + $0x350] sm:$0xff]  ;;  %v1052_v20 = vld [vmem:[%s6992_s1 + $0x3c8] sm:$0xff]  ;;  %v1054_v22 = vld [vmem:[%s6992_s1 + $0x3d8] sm:$0xff] }
 0x294   : > { %v4582_v24 = vpack.c.bf16 %v1037_v18, %v1029_v16  ;;  %v4392_v25 = vpack.c.bf16 %v1052_v20, %v1044_v19  ;;  %v1043_v26 = vld [vmem:[%s6992_s1 + $0x380] sm:$0xff]  ;;  %v1045_v28 = vld [vmem:[%s6992_s1 + $0x390] sm:$0xff]  ;;  %v4584_v29 = vpack.c.bf16 %v1054_v22, %v1046_v21  ;;  %v1060_v31 = vld [vmem:[%s6992_s1 + $0x408] sm:$0xff] }
 0x295   : > { %4383 = vmatpush1.bf16.msra.mxu0 %v4382_v63  ;;  %v1051_v27 = vld [vmem:[%s6992_s1 + $0x3c0] sm:$0xff]  ;;  %v1053_v30 = vld [vmem:[%s6992_s1 + $0x3d0] sm:$0xff]  ;;  %v1068_v32 = vld [vmem:[%s6992_s1 + $0x448] sm:$0xff] }
 0x296   : > { %4575 = vmatpush1.bf16.msra.mxu1 %v4574_v0  ;;  %4385 = vmatprep.subr.bf16.mxu0 %v4384_v1  ;;  %v1062_v33 = vld [vmem:[%s6992_s1 + $0x418] sm:$0xff]  ;;  %v4394_v35 = vpack.c.bf16 %v1051_v27, %v1043_v26  ;;  %v4586_v36 = vpack.c.bf16 %v1053_v30, %v1045_v28  ;;  %v4396_v37 = vpack.c.bf16 %v1068_v32, %v1060_v31  ;;  %v1059_v38 = vld [vmem:[%s6992_s1 + $0x400] sm:$0xff]  ;;  %v1061_v40 = vld [vmem:[%s6992_s1 + $0x410] sm:$0xff] }
 0x297   : > { %4577 = vmatprep.subr.bf16.mxu1 %v4576_v5  ;;  %v1070_v34 = vld [vmem:[%s6992_s1 + $0x458] sm:$0xff]  ;;  %v1067_v39 = vld [vmem:[%s6992_s1 + $0x440] sm:$0xff]  ;;  %v1069_v42 = vld [vmem:[%s6992_s1 + $0x450] sm:$0xff] }
 0x298   : > { %v4588_v41 = vpack.c.bf16 %v1070_v34, %v1062_v33  ;;  %v1076_v43 = vld [vmem:[%s6992_s1 + $0x488] sm:$0xff]  ;;  %v1078_v45 = vld [vmem:[%s6992_s1 + $0x498] sm:$0xff]  ;;  %v4398_v47 = vpack.c.bf16 %v1067_v39, %v1059_v38  ;;  %v4590_v48 = vpack.c.bf16 %v1069_v42, %v1061_v40  ;;  %v1075_v50 = vld [vmem:[%s6992_s1 + $0x480] sm:$0xff] }
 0x299   : > { %4387 = vmatpush1.bf16.msra.mxu0 %v4386_v11  ;;  %v1084_v44 = vld [vmem:[%s6992_s1 + $0x4c8] sm:$0xff]  ;;  %v1086_v46 = vld [vmem:[%s6992_s1 + $0x4d8] sm:$0xff]  ;;  %v1083_v51 = vld [vmem:[%s6992_s1 + $0x4c0] sm:$0xff] }
 0x29a   : > { %4579 = vmatpush1.bf16.msra.mxu1 %v4578_v12  ;;  %4389 = vmatprep.subr.bf16.mxu0 %v4388_v13  ;;  %v4400_v49 = vpack.c.bf16 %v1084_v44, %v1076_v43  ;;  %v1077_v52 = vld [vmem:[%s6992_s1 + $0x490] sm:$0xff]  ;;  %v4592_v53 = vpack.c.bf16 %v1086_v46, %v1078_v45  ;;  %v1092_v55 = vld [vmem:[%s6992_s1 + $0x508] sm:$0xff]  ;;  %v1094_v57 = vld [vmem:[%s6992_s1 + $0x518] sm:$0xff]  ;;  %v4402_v59 = vpack.c.bf16 %v1083_v51, %v1075_v50 }
 0x29b   : > { %4581 = vmatprep.subr.bf16.mxu1 %v4580_v17  ;;  %v1085_v54 = vld [vmem:[%s6992_s1 + $0x4d0] sm:$0xff]  ;;  %v1100_v56 = vld [vmem:[%s6992_s1 + $0x548] sm:$0xff]  ;;  %v1102_v58 = vld [vmem:[%s6992_s1 + $0x558] sm:$0xff] }
 0x29c   : > { %v4594_v60 = vpack.c.bf16 %v1085_v54, %v1077_v52  ;;  %v4404_v61 = vpack.c.bf16 %v1100_v56, %v1092_v55  ;;  %v1091_v62 = vld [vmem:[%s6992_s1 + $0x500] sm:$0xff]  ;;  %v1093_v0 = vld [vmem:[%s6992_s1 + $0x510] sm:$0xff]  ;;  %v4596_v1 = vpack.c.bf16 %v1102_v58, %v1094_v57  ;;  %v1108_v3 = vld [vmem:[%s6992_s1 + $0x588] sm:$0xff] }
 0x29d   : > { %4391 = vmatpush1.bf16.msra.mxu0 %v4390_v23  ;;  %v1099_v63 = vld [vmem:[%s6992_s1 + $0x540] sm:$0xff]  ;;  %v1101_v2 = vld [vmem:[%s6992_s1 + $0x550] sm:$0xff]  ;;  %v1116_v4 = vld [vmem:[%s6992_s1 + $0x5c8] sm:$0xff] }
 0x29e   : > { %4583 = vmatpush1.bf16.msra.mxu1 %v4582_v24  ;;  %4393 = vmatprep.subr.bf16.mxu0 %v4392_v25  ;;  %v1110_v5 = vld [vmem:[%s6992_s1 + $0x598] sm:$0xff]  ;;  %v4406_v7 = vpack.c.bf16 %v1099_v63, %v1091_v62  ;;  %v1107_v8 = vld [vmem:[%s6992_s1 + $0x580] sm:$0xff]  ;;  %v4598_v9 = vpack.c.bf16 %v1101_v2, %v1093_v0  ;;  %v4408_v10 = vpack.c.bf16 %v1116_v4, %v1108_v3  ;;  %v1109_v12 = vld [vmem:[%s6992_s1 + $0x590] sm:$0xff] }
 0x29f   : > { %4585 = vmatprep.subr.bf16.mxu1 %v4584_v29  ;;  %v1118_v6 = vld [vmem:[%s6992_s1 + $0x5d8] sm:$0xff]  ;;  %v1115_v11 = vld [vmem:[%s6992_s1 + $0x5c0] sm:$0xff]  ;;  %v1117_v13 = vld [vmem:[%s6992_s1 + $0x5d0] sm:$0xff] }
 0x2a0   : > { %v4600_v14 = vpack.c.bf16 %v1118_v6, %v1110_v5  ;;  %v1124_v15 = vld [vmem:[%s6992_s1 + $0x608] sm:$0xff]  ;;  %v1126_v18 = vld [vmem:[%s6992_s1 + $0x618] sm:$0xff]  ;;  %v4410_v20 = vpack.c.bf16 %v1115_v11, %v1107_v8  ;;  %v4602_v21 = vpack.c.bf16 %v1117_v13, %v1109_v12  ;;  %v1123_v23 = vld [vmem:[%s6992_s1 + $0x600] sm:$0xff] }
 0x2a1   : > { %4395 = vmatpush1.bf16.msra.mxu0 %v4394_v35  ;;  %v1132_v16 = vld [vmem:[%s6992_s1 + $0x648] sm:$0xff]  ;;  %v1134_v19 = vld [vmem:[%s6992_s1 + $0x658] sm:$0xff]  ;;  %v1131_v24 = vld [vmem:[%s6992_s1 + $0x640] sm:$0xff] }
 0x2a2   : > { %4587 = vmatpush1.bf16.msra.mxu1 %v4586_v36  ;;  %4397 = vmatprep.subr.bf16.mxu0 %v4396_v37  ;;  %v926_v17 = vld [vmem:[%s6966_s23 + $0x8] sm:$0xff]  ;;  %v4412_v22 = vpack.c.bf16 %v1132_v16, %v1124_v15  ;;  %v4604_v26 = vpack.c.bf16 %v1134_v19, %v1126_v18  ;;  %v4414_v32 = vpack.c.bf16 %v1131_v24, %v1123_v23  ;;  %v925_v16 = vld [vmem:[%s6966_s23] sm:$0xff] }
 0x2a3   : > { %4589 = vmatprep.subr.bf16.mxu1 %v4588_v41  ;;  %1763 = vmatprep.mubr.f32.mxu0 %v926_v17  ;;  %v1125_v25 = vld [vmem:[%s6992_s1 + $0x610] sm:$0xff]  ;;  %v1140_v28 = vld [vmem:[%s6992_s1 + $0x688] sm:$0xff]  ;;  %v1142_v30 = vld [vmem:[%s6992_s1 + $0x698] sm:$0xff] }
 0x2a4   : > { %1976 = vmatprep.mubr.f32.mxu1 %v926_v17  ;;  %v1133_v27 = vld [vmem:[%s6992_s1 + $0x650] sm:$0xff]  ;;  %v1148_v29 = vld [vmem:[%s6992_s1 + $0x6c8] sm:$0xff]  ;;  %v1150_v31 = vld [vmem:[%s6992_s1 + $0x6d8] sm:$0xff] }
 0x2a5   : > { %4399 = vmatpush1.bf16.msra.mxu0 %v4398_v47  ;;  %v4606_v33 = vpack.c.bf16 %v1133_v27, %v1125_v25  ;;  %v4416_v34 = vpack.c.bf16 %v1148_v29, %v1140_v28  ;;  %v1139_v35 = vld [vmem:[%s6992_s1 + $0x680] sm:$0xff]  ;;  %v1141_v37 = vld [vmem:[%s6992_s1 + $0x690] sm:$0xff]  ;;  %v4608_v38 = vpack.c.bf16 %v1150_v31, %v1142_v30  ;;  %v1156_v40 = vld [vmem:[%s6992_s1 + $0x708] sm:$0xff] }
 0x2a6   : > { %4591 = vmatpush1.bf16.msra.mxu1 %v4590_v48  ;;  %4401 = vmatprep.subr.bf16.mxu0 %v4400_v49  ;;  %v1147_v36 = vld [vmem:[%s6992_s1 + $0x6c0] sm:$0xff]  ;;  %v1149_v39 = vld [vmem:[%s6992_s1 + $0x6d0] sm:$0xff]  ;;  %v1164_v41 = vld [vmem:[%s6992_s1 + $0x748] sm:$0xff] }
 0x2a7   : > { %4593 = vmatprep.subr.bf16.mxu1 %v4592_v53  ;;  %v1158_v42 = vld [vmem:[%s6992_s1 + $0x718] sm:$0xff]  ;;  %v4418_v44 = vpack.c.bf16 %v1147_v36, %v1139_v35  ;;  %v4610_v45 = vpack.c.bf16 %v1149_v39, %v1141_v37  ;;  %v4420_v46 = vpack.c.bf16 %v1164_v41, %v1156_v40  ;;  %v1155_v47 = vld [vmem:[%s6992_s1 + $0x700] sm:$0xff]  ;;  %v1157_v49 = vld [vmem:[%s6992_s1 + $0x710] sm:$0xff] }
 0x2a8   : > { %v1166_v43 = vld [vmem:[%s6992_s1 + $0x758] sm:$0xff]  ;;  %v1163_v48 = vld [vmem:[%s6992_s1 + $0x740] sm:$0xff]  ;;  %v1165_v51 = vld [vmem:[%s6992_s1 + $0x750] sm:$0xff] }
 0x2a9   : > { %4403 = vmatpush1.bf16.msra.mxu0 %v4402_v59  ;;  %v4612_v50 = vpack.c.bf16 %v1166_v43, %v1158_v42  ;;  %v1172_v52 = vld [vmem:[%s6992_s1 + $0x788] sm:$0xff]  ;;  %v1174_v54 = vld [vmem:[%s6992_s1 + $0x798] sm:$0xff]  ;;  %v4422_v56 = vpack.c.bf16 %v1163_v48, %v1155_v47  ;;  %v4614_v57 = vpack.c.bf16 %v1165_v51, %v1157_v49  ;;  %v1171_v59 = vld [vmem:[%s6992_s1 + $0x780] sm:$0xff] }
 0x2aa   : > { %4595 = vmatpush1.bf16.msra.mxu1 %v4594_v60  ;;  %4405 = vmatprep.subr.bf16.mxu0 %v4404_v61  ;;  %v1180_v53 = vld [vmem:[%s6992_s1 + $0x7c8] sm:$0xff]  ;;  %v1182_v55 = vld [vmem:[%s6992_s1 + $0x7d8] sm:$0xff]  ;;  %v1179_v60 = vld [vmem:[%s6992_s1 + $0x7c0] sm:$0xff] }
 0x2ab   : > { %4597 = vmatprep.subr.bf16.mxu1 %v4596_v1  ;;  %v4424_v58 = vpack.c.bf16 %v1180_v53, %v1172_v52  ;;  %v1173_v61 = vld [vmem:[%s6992_s1 + $0x790] sm:$0xff]  ;;  %v4616_v62 = vpack.c.bf16 %v1182_v55, %v1174_v54  ;;  %v1188_v0 = vld [vmem:[%s6992_s1 + $0x808] sm:$0xff]  ;;  %v1190_v2 = vld [vmem:[%s6992_s1 + $0x818] sm:$0xff]  ;;  %v4426_v4 = vpack.c.bf16 %v1179_v60, %v1171_v59 }
 0x2ac   : > { %v1181_v63 = vld [vmem:[%s6992_s1 + $0x7d0] sm:$0xff]  ;;  %v1196_v1 = vld [vmem:[%s6992_s1 + $0x848] sm:$0xff]  ;;  %v1198_v3 = vld [vmem:[%s6992_s1 + $0x858] sm:$0xff] }
 0x2ad   : > { %4407 = vmatpush1.bf16.msra.mxu0 %v4406_v7  ;;  %v4618_v5 = vpack.c.bf16 %v1181_v63, %v1173_v61  ;;  %v4428_v6 = vpack.c.bf16 %v1196_v1, %v1188_v0  ;;  %v1187_v7 = vld [vmem:[%s6992_s1 + $0x800] sm:$0xff]  ;;  %v1197_v11 = vld [vmem:[%s6992_s1 + $0x850] sm:$0xff]  ;;  %v1204_v12 = vld [vmem:[%s6992_s1 + $0x888] sm:$0xff] }
 0x2ae   : > { %4599 = vmatpush1.bf16.msra.mxu1 %v4598_v9  ;;  %4409 = vmatprep.subr.bf16.mxu0 %v4408_v10  ;;  %v1195_v8 = vld [vmem:[%s6992_s1 + $0x840] sm:$0xff]  ;;  %v1189_v9 = vld [vmem:[%s6992_s1 + $0x810] sm:$0xff]  ;;  %v4620_v10 = vpack.c.bf16 %v1198_v3, %v1190_v2  ;;  %v1212_v13 = vld [vmem:[%s6992_s1 + $0x8c8] sm:$0xff] }
 0x2af   : > { %4601 = vmatprep.subr.bf16.mxu1 %v4600_v14  ;;  %v1206_v14 = vld [vmem:[%s6992_s1 + $0x898] sm:$0xff]  ;;  %v4430_v17 = vpack.c.bf16 %v1195_v8, %v1187_v7  ;;  %v4622_v18 = vpack.c.bf16 %v1197_v11, %v1189_v9  ;;  %v4432_v19 = vpack.c.bf16 %v1212_v13, %v1204_v12  ;;  %v1213_v24 = vld [vmem:[%s6992_s1 + $0x8d0] sm:$0xff]  ;;  %v1220_v25 = vld [vmem:[%s6992_s1 + $0x908] sm:$0xff] }
 0x2b0   : > { %v1214_v15 = vld [vmem:[%s6992_s1 + $0x8d8] sm:$0xff]  ;;  %v1229_v36 = vld [vmem:[%s6992_s1 + $0x950] sm:$0xff]  ;;  %v1236_v37 = vld [vmem:[%s6992_s1 + $0x988] sm:$0xff] }
 0x2b1   : > { %4411 = vmatpush1.bf16.msra.mxu0 %v4410_v20  ;;  %v1203_v20 = vld [vmem:[%s6992_s1 + $0x880] sm:$0xff]  ;;  %v4624_v23 = vpack.c.bf16 %v1214_v15, %v1206_v14  ;;  %v1222_v27 = vld [vmem:[%s6992_s1 + $0x918] sm:$0xff]  ;;  %v1245_v48 = vld [vmem:[%s6992_s1 + $0x9d0] sm:$0xff] }
 0x2b2   : > { %4603 = vmatpush1.bf16.msra.mxu1 %v4602_v21  ;;  %4413 = vmatprep.subr.bf16.mxu0 %v4412_v22  ;;  %v1211_v21 = vld [vmem:[%s6992_s1 + $0x8c0] sm:$0xff]  ;;  %v1205_v22 = vld [vmem:[%s6992_s1 + $0x890] sm:$0xff]  ;;  %v1230_v28 = vld [vmem:[%s6992_s1 + $0x958] sm:$0xff] }
 0x2b3   : > { %4605 = vmatprep.subr.bf16.mxu1 %v4604_v26  ;;  %v1228_v26 = vld [vmem:[%s6992_s1 + $0x948] sm:$0xff]  ;;  %v4434_v29 = vpack.c.bf16 %v1211_v21, %v1203_v20  ;;  %v4626_v30 = vpack.c.bf16 %v1213_v24, %v1205_v22  ;;  %v4628_v35 = vpack.c.bf16 %v1230_v28, %v1222_v27  ;;  %v1238_v39 = vld [vmem:[%s6992_s1 + $0x998] sm:$0xff]  ;;  %v1261_v60 = vld [vmem:[%s6992_s1 + $0xa50] sm:$0xff] }
 0x2b4   : > { %v4436_v31 = vpack.c.bf16 %v1228_v26, %v1220_v25  ;;  %v1246_v40 = vld [vmem:[%s6992_s1 + $0x9d8] sm:$0xff]  ;;  %v1252_v49 = vld [vmem:[%s6992_s1 + $0xa08] sm:$0xff]  ;;  %v1277_v8 = vld [vmem:[%s6992_s1 + $0xad0] sm:$0xff] }
 0x2b5   : > { %4415 = vmatpush1.bf16.msra.mxu0 %v4414_v32  ;;  %v1219_v32 = vld [vmem:[%s6992_s1 + $0x900] sm:$0xff]  ;;  %v4632_v47 = vpack.c.bf16 %v1246_v40, %v1238_v39  ;;  %v1254_v51 = vld [vmem:[%s6992_s1 + $0xa18] sm:$0xff]  ;;  %v1268_v61 = vld [vmem:[%s6992_s1 + $0xa88] sm:$0xff] }
 0x2b6   : > { %4607 = vmatpush1.bf16.msra.mxu1 %v4606_v33  ;;  %4417 = vmatprep.subr.bf16.mxu0 %v4416_v34  ;;  %v1227_v33 = vld [vmem:[%s6992_s1 + $0x940] sm:$0xff]  ;;  %v1221_v34 = vld [vmem:[%s6992_s1 + $0x910] sm:$0xff]  ;;  %v1262_v52 = vld [vmem:[%s6992_s1 + $0xa58] sm:$0xff] }
 0x2b7   : > { %4609 = vmatprep.subr.bf16.mxu1 %v4608_v38  ;;  %v1244_v38 = vld [vmem:[%s6992_s1 + $0x9c8] sm:$0xff]  ;;  %v4438_v41 = vpack.c.bf16 %v1227_v33, %v1219_v32  ;;  %v4630_v42 = vpack.c.bf16 %v1229_v36, %v1221_v34  ;;  %v4636_v59 = vpack.c.bf16 %v1262_v52, %v1254_v51  ;;  %v1270_v63 = vld [vmem:[%s6992_s1 + $0xa98] sm:$0xff]  ;;  %v1283_v14 = vld [vmem:[%s6992_s1 + $0xb00] sm:$0xff] }
 0x2b8   : > { %v4440_v43 = vpack.c.bf16 %v1244_v38, %v1236_v37  ;;  %v1278_v0 = vld [vmem:[%s6992_s1 + $0xad8] sm:$0xff]  ;;  %v1284_v9 = vld [vmem:[%s6992_s1 + $0xb08] sm:$0xff]  ;;  %v1309_v33 = vld [vmem:[%s6992_s1 + $0xbd0] sm:$0xff] }
 0x2b9   : > { %4419 = vmatpush1.bf16.msra.mxu0 %v4418_v44  ;;  %v1235_v44 = vld [vmem:[%s6992_s1 + $0x980] sm:$0xff]  ;;  %v4640_v7 = vpack.c.bf16 %v1278_v0, %v1270_v63  ;;  %v1286_v11 = vld [vmem:[%s6992_s1 + $0xb18] sm:$0xff]  ;;  %v1300_v21 = vld [vmem:[%s6992_s1 + $0xb88] sm:$0xff] }
 0x2ba   : > { %4611 = vmatpush1.bf16.msra.mxu1 %v4610_v45  ;;  %4421 = vmatprep.subr.bf16.mxu0 %v4420_v46  ;;  %v1243_v45 = vld [vmem:[%s6992_s1 + $0x9c0] sm:$0xff]  ;;  %v1237_v46 = vld [vmem:[%s6992_s1 + $0x990] sm:$0xff]  ;;  %v1294_v12 = vld [vmem:[%s6992_s1 + $0xb58] sm:$0xff] }
 0x2bb   : > { %4613 = vmatprep.subr.bf16.mxu1 %v4612_v50  ;;  %v1260_v50 = vld [vmem:[%s6992_s1 + $0xa48] sm:$0xff]  ;;  %v4442_v53 = vpack.c.bf16 %v1243_v45, %v1235_v44  ;;  %v4634_v54 = vpack.c.bf16 %v1245_v48, %v1237_v46  ;;  %v4644_v20 = vpack.c.bf16 %v1294_v12, %v1286_v11  ;;  %v1302_v24 = vld [vmem:[%s6992_s1 + $0xb98] sm:$0xff]  ;;  %v1325_v45 = vld [vmem:[%s6992_s1 + $0xc50] sm:$0xff] }
 0x2bc   : > { %v4444_v55 = vpack.c.bf16 %v1260_v50, %v1252_v49  ;;  %v1308_v22 = vld [vmem:[%s6992_s1 + $0xbc8] sm:$0xff]  ;;  %v1310_v25 = vld [vmem:[%s6992_s1 + $0xbd8] sm:$0xff] }
 0x2bd   : > { %4423 = vmatpush1.bf16.msra.mxu0 %v4422_v56  ;;  %v1251_v56 = vld [vmem:[%s6992_s1 + $0xa00] sm:$0xff]  ;;  %v4456_v28 = vpack.c.bf16 %v1308_v22, %v1300_v21  ;;  %v4648_v32 = vpack.c.bf16 %v1310_v25, %v1302_v24  ;;  %v1316_v34 = vld [vmem:[%s6992_s1 + $0xc08] sm:$0xff]  ;;  %v1318_v36 = vld [vmem:[%s6992_s1 + $0xc18] sm:$0xff] }
 0x2be   : > { %4615 = vmatpush1.bf16.msra.mxu1 %v4614_v57  ;;  %4425 = vmatprep.subr.bf16.mxu0 %v4424_v58  ;;  %v1259_v57 = vld [vmem:[%s6992_s1 + $0xa40] sm:$0xff]  ;;  %v1253_v58 = vld [vmem:[%s6992_s1 + $0xa10] sm:$0xff]  ;;  %v1326_v37 = vld [vmem:[%s6992_s1 + $0xc58] sm:$0xff] }
 0x2bf   : > { %4617 = vmatprep.subr.bf16.mxu1 %v4616_v62  ;;  %v1276_v62 = vld [vmem:[%s6992_s1 + $0xac8] sm:$0xff]  ;;  %v4446_v1 = vpack.c.bf16 %v1259_v57, %v1251_v56  ;;  %v4638_v2 = vpack.c.bf16 %v1261_v60, %v1253_v58  ;;  %v4652_v44 = vpack.c.bf16 %v1326_v37, %v1318_v36  ;;  %v1334_v48 = vld [vmem:[%s6992_s1 + $0xc98] sm:$0xff]  ;;  %v1341_v57 = vld [vmem:[%s6992_s1 + $0xcd0] sm:$0xff] }
 0x2c0   : > { %v4448_v3 = vpack.c.bf16 %v1276_v62, %v1268_v61  ;;  %v1332_v46 = vld [vmem:[%s6992_s1 + $0xc88] sm:$0xff]  ;;  %v1342_v49 = vld [vmem:[%s6992_s1 + $0xcd8] sm:$0xff]  ;;  %v1379_v25 = vld [vmem:[%s6992_s1 + $0xe00] sm:$0xff] }
 0x2c1   : > { %4427 = vmatpush1.bf16.msra.mxu0 %v4426_v4  ;;  %v1267_v4 = vld [vmem:[%s6992_s1 + $0xa80] sm:$0xff]  ;;  %v4656_v56 = vpack.c.bf16 %v1342_v49, %v1334_v48  ;;  %v1348_v58 = vld [vmem:[%s6992_s1 + $0xd08] sm:$0xff]  ;;  %v1350_v60 = vld [vmem:[%s6992_s1 + $0xd18] sm:$0xff] }
 0x2c2   : > { %4619 = vmatpush1.bf16.msra.mxu1 %v4618_v5  ;;  %4429 = vmatprep.subr.bf16.mxu0 %v4428_v6  ;;  %v1275_v5 = vld [vmem:[%s6992_s1 + $0xac0] sm:$0xff]  ;;  %v1269_v6 = vld [vmem:[%s6992_s1 + $0xa90] sm:$0xff]  ;;  %v1358_v61 = vld [vmem:[%s6992_s1 + $0xd58] sm:$0xff] }
 0x2c3   : > { %4621 = vmatprep.subr.bf16.mxu1 %v4620_v10  ;;  %v1292_v10 = vld [vmem:[%s6992_s1 + $0xb48] sm:$0xff]  ;;  %v4450_v13 = vpack.c.bf16 %v1275_v5, %v1267_v4  ;;  %v4642_v15 = vpack.c.bf16 %v1277_v8, %v1269_v6  ;;  %v4660_v4 = vpack.c.bf16 %v1358_v61, %v1350_v60  ;;  %v1357_v5 = vld [vmem:[%s6992_s1 + $0xd50] sm:$0xff]  ;;  %v1366_v8 = vld [vmem:[%s6992_s1 + $0xd98] sm:$0xff] }
 0x2c4   : > { %1764 = vmatmul.mubr.f32.vlgmr.msra.gmra.mrb[0].mxu0 %v925_v16  ;;  %v1364_v6 = vld [vmem:[%s6992_s1 + $0xd88] sm:$0xff]  ;;  %v1390_v21 = vld [vmem:[%s6992_s1 + $0xe58] sm:$0xff]  ;;  %v1395_v37 = vld [vmem:[%s6992_s1 + $0xe80] sm:$0xff] }
 0x2c5   : > { %4431 = vmatpush1.bf16.msra.mxu0 %v4430_v17  ;;  %1977 = vmatmul.mubr.f32.vlgmr.msra.gmra.mrb[0].mxu1 %v925_v16  ;;  %v4452_v16 = vpack.c.bf16 %v1292_v10, %v1284_v9  ;;  %v1291_v17 = vld [vmem:[%s6992_s1 + $0xb40] sm:$0xff]  ;;  %v1374_v9 = vld [vmem:[%s6992_s1 + $0xdd8] sm:$0xff] }
 0x2c6   : > { %4623 = vmatpush1.bf16.msra.mxu1 %v4622_v18  ;;  %4433 = vmatprep.subr.bf16.mxu0 %v4432_v19  ;;  %v1285_v18 = vld [vmem:[%s6992_s1 + $0xb10] sm:$0xff]  ;;  %v4454_v26 = vpack.c.bf16 %v1291_v17, %v1283_v14  ;;  %v1371_v14 = vld [vmem:[%s6992_s1 + $0xdc0] sm:$0xff] }
 0x2c7   : > { %4625 = vmatprep.subr.bf16.mxu1 %v4624_v23  ;;  %v1293_v19 = vld [vmem:[%s6992_s1 + $0xb50] sm:$0xff]  ;;  %v1411_v49 = vld [vmem:[%s6992_s1 + $0xf00] sm:$0xff] }
 0x2c8   : > { %v928_v23 = vld [vmem:[%s6966_s23 + $0x18] sm:$0xff]  ;;  %v4646_v27 = vpack.c.bf16 %v1293_v19, %v1285_v18 }
 0x2c9   : > { %4435 = vmatpush1.bf16.msra.mxu0 %v4434_v29  ;;  %1834 = vmatprep.mubr.f32.mxu0 %v928_v23  ;;  %v1299_v29 = vld [vmem:[%s6992_s1 + $0xb80] sm:$0xff]  ;;  %v1373_v17 = vld [vmem:[%s6992_s1 + $0xdd0] sm:$0xff]  ;;  %v1380_v18 = vld [vmem:[%s6992_s1 + $0xe08] sm:$0xff] }
 0x2ca   : > { %4627 = vmatpush1.bf16.msra.mxu1 %v4626_v30  ;;  %4437 = vmatprep.subr.bf16.mxu0 %v4436_v31  ;;  %v1307_v30 = vld [vmem:[%s6992_s1 + $0xbc0] sm:$0xff]  ;;  %v1301_v31 = vld [vmem:[%s6992_s1 + $0xb90] sm:$0xff]  ;;  %v1388_v19 = vld [vmem:[%s6992_s1 + $0xe48] sm:$0xff] }
 0x2cb   : > { %4629 = vmatprep.subr.bf16.mxu1 %v4628_v35  ;;  %2047 = vmatprep.mubr.f32.mxu1 %v928_v23  ;;  %v1324_v35 = vld [vmem:[%s6992_s1 + $0xc48] sm:$0xff]  ;;  %v4458_v38 = vpack.c.bf16 %v1307_v30, %v1299_v29  ;;  %v4650_v39 = vpack.c.bf16 %v1309_v33, %v1301_v31  ;;  %v4476_v24 = vpack.c.bf16 %v1388_v19, %v1380_v18  ;;  %v1389_v29 = vld [vmem:[%s6992_s1 + $0xe50] sm:$0xff]  ;;  %v1406_v33 = vld [vmem:[%s6992_s1 + $0xed8] sm:$0xff] }
 0x2cc   : > { %v4460_v40 = vpack.c.bf16 %v1324_v35, %v1316_v34  ;;  %v1396_v30 = vld [vmem:[%s6992_s1 + $0xe88] sm:$0xff]  ;;  %v1427_v61 = vld [vmem:[%s6992_s1 + $0xf80] sm:$0xff] }
 0x2cd   : > { %4439 = vmatpush1.bf16.msra.mxu0 %v4438_v41  ;;  %v1315_v41 = vld [vmem:[%s6992_s1 + $0xc00] sm:$0xff]  ;;  %v1404_v31 = vld [vmem:[%s6992_s1 + $0xec8] sm:$0xff] }
 0x2ce   : > { %4631 = vmatpush1.bf16.msra.mxu1 %v4630_v42  ;;  %4441 = vmatprep.subr.bf16.mxu0 %v4440_v43  ;;  %v1323_v42 = vld [vmem:[%s6992_s1 + $0xc40] sm:$0xff]  ;;  %v1317_v43 = vld [vmem:[%s6992_s1 + $0xc10] sm:$0xff]  ;;  %v4480_v36 = vpack.c.bf16 %v1404_v31, %v1396_v30  ;;  %v1486_v30 = vld [vmem:[%s6992_s1 + $0x1158] sm:$0xff] }
 0x2cf   : > { %4633 = vmatprep.subr.bf16.mxu1 %v4632_v47  ;;  %v1340_v47 = vld [vmem:[%s6992_s1 + $0xcc8] sm:$0xff]  ;;  %v4462_v50 = vpack.c.bf16 %v1323_v42, %v1315_v41  ;;  %v4654_v51 = vpack.c.bf16 %v1325_v45, %v1317_v43  ;;  %v1405_v41 = vld [vmem:[%s6992_s1 + $0xed0] sm:$0xff]  ;;  %v1422_v45 = vld [vmem:[%s6992_s1 + $0xf58] sm:$0xff] }
 0x2d0   : > { %v4464_v52 = vpack.c.bf16 %v1340_v47, %v1332_v46  ;;  %v1412_v42 = vld [vmem:[%s6992_s1 + $0xf08] sm:$0xff] }
 0x2d1   : > { %4443 = vmatpush1.bf16.msra.mxu0 %v4442_v53  ;;  %v1331_v53 = vld [vmem:[%s6992_s1 + $0xc80] sm:$0xff]  ;;  %v1420_v43 = vld [vmem:[%s6992_s1 + $0xf48] sm:$0xff] }
 0x2d2   : > { %4635 = vmatpush1.bf16.msra.mxu1 %v4634_v54  ;;  %4445 = vmatprep.subr.bf16.mxu0 %v4444_v55  ;;  %v1339_v54 = vld [vmem:[%s6992_s1 + $0xcc0] sm:$0xff]  ;;  %v1333_v55 = vld [vmem:[%s6992_s1 + $0xc90] sm:$0xff]  ;;  %v4484_v48 = vpack.c.bf16 %v1420_v43, %v1412_v42  ;;  %v1494_v42 = vld [vmem:[%s6992_s1 + $0x1198] sm:$0xff] }
 0x2d3   : > { %4637 = vmatprep.subr.bf16.mxu1 %v4636_v59  ;;  %v1356_v59 = vld [vmem:[%s6992_s1 + $0xd48] sm:$0xff]  ;;  %v4466_v62 = vpack.c.bf16 %v1339_v54, %v1331_v53  ;;  %v4658_v63 = vpack.c.bf16 %v1341_v57, %v1333_v55  ;;  %v1421_v53 = vld [vmem:[%s6992_s1 + $0xf50] sm:$0xff]  ;;  %v1438_v57 = vld [vmem:[%s6992_s1 + $0xfd8] sm:$0xff] }
 0x2d4   : > { %v4468_v0 = vpack.c.bf16 %v1356_v59, %v1348_v58  ;;  %v1428_v54 = vld [vmem:[%s6992_s1 + $0xf88] sm:$0xff]  ;;  %v1502_v43 = vld [vmem:[%s6992_s1 + $0x11d8] sm:$0xff] }
 0x2d5   : > { %4447 = vmatpush1.bf16.msra.mxu0 %v4446_v1  ;;  %v1347_v1 = vld [vmem:[%s6992_s1 + $0xd00] sm:$0xff]  ;;  %v1436_v55 = vld [vmem:[%s6992_s1 + $0xfc8] sm:$0xff] }
 0x2d6   : > { %4639 = vmatpush1.bf16.msra.mxu1 %v4638_v2  ;;  %4449 = vmatprep.subr.bf16.mxu0 %v4448_v3  ;;  %v1355_v2 = vld [vmem:[%s6992_s1 + $0xd40] sm:$0xff]  ;;  %v1349_v3 = vld [vmem:[%s6992_s1 + $0xd10] sm:$0xff]  ;;  %v4488_v60 = vpack.c.bf16 %v1436_v55, %v1428_v54  ;;  %v1510_v54 = vld [vmem:[%s6992_s1 + $0x1218] sm:$0xff] }
 0x2d7   : > { %4641 = vmatprep.subr.bf16.mxu1 %v4640_v7  ;;  %v1372_v7 = vld [vmem:[%s6992_s1 + $0xdc8] sm:$0xff]  ;;  %v4470_v10 = vpack.c.bf16 %v1355_v2, %v1347_v1  ;;  %v4662_v11 = vpack.c.bf16 %v1357_v5, %v1349_v3  ;;  %v1437_v1 = vld [vmem:[%s6992_s1 + $0xfd0] sm:$0xff]  ;;  %v1454_v5 = vld [vmem:[%s6992_s1 + $0x1058] sm:$0xff] }
 0x2d8   : > { %v4472_v12 = vpack.c.bf16 %v1372_v7, %v1364_v6  ;;  %v1444_v2 = vld [vmem:[%s6992_s1 + $0x1008] sm:$0xff]  ;;  %v1518_v55 = vld [vmem:[%s6992_s1 + $0x1258] sm:$0xff] }
 0x2d9   : > { %4451 = vmatpush1.bf16.msra.mxu0 %v4450_v13  ;;  %v1363_v13 = vld [vmem:[%s6992_s1 + $0xd80] sm:$0xff]  ;;  %v1452_v3 = vld [vmem:[%s6992_s1 + $0x1048] sm:$0xff] }
 0x2da   : > { %4643 = vmatpush1.bf16.msra.mxu1 %v4642_v15  ;;  %4453 = vmatprep.subr.bf16.mxu0 %v4452_v16  ;;  %v1365_v15 = vld [vmem:[%s6992_s1 + $0xd90] sm:$0xff]  ;;  %v4664_v16 = vpack.c.bf16 %v1374_v9, %v1366_v8  ;;  %v4474_v22 = vpack.c.bf16 %v1371_v14, %v1363_v13  ;;  %v4492_v8 = vpack.c.bf16 %v1452_v3, %v1444_v2  ;;  %v1443_v9 = vld [vmem:[%s6992_s1 + $0x1000] sm:$0xff]  ;;  %v1460_v14 = vld [vmem:[%s6992_s1 + $0x1088] sm:$0xff] }
 0x2db   : > { %4645 = vmatprep.subr.bf16.mxu1 %v4644_v20  ;;  %v1382_v20 = vld [vmem:[%s6992_s1 + $0xe18] sm:$0xff]  ;;  %v4666_v23 = vpack.c.bf16 %v1373_v17, %v1365_v15  ;;  %v1453_v13 = vld [vmem:[%s6992_s1 + $0x1050] sm:$0xff]  ;;  %v1468_v15 = vld [vmem:[%s6992_s1 + $0x10c8] sm:$0xff] }
 0x2dc   : > { %v1470_v17 = vld [vmem:[%s6992_s1 + $0x10d8] sm:$0xff] }
 0x2dd   : > { %4455 = vmatpush1.bf16.msra.mxu0 %v4454_v26  ;;  %v1387_v26 = vld [vmem:[%s6992_s1 + $0xe40] sm:$0xff]  ;;  %v1526_v2 = vld [vmem:[%s6992_s1 + $0x1298] sm:$0xff] }
 0x2de   : > { %4647 = vmatpush1.bf16.msra.mxu1 %v4646_v27  ;;  %4457 = vmatprep.subr.bf16.mxu0 %v4456_v28  ;;  %v1381_v27 = vld [vmem:[%s6992_s1 + $0xe10] sm:$0xff]  ;;  %v4668_v28 = vpack.c.bf16 %v1390_v21, %v1382_v20  ;;  %v4478_v34 = vpack.c.bf16 %v1387_v26, %v1379_v25  ;;  %v4496_v21 = vpack.c.bf16 %v1468_v15, %v1460_v14  ;;  %v1534_v3 = vld [vmem:[%s6992_s1 + $0x12d8] sm:$0xff] }
 0x2df   : > { %4649 = vmatprep.subr.bf16.mxu1 %v4648_v32  ;;  %v1398_v32 = vld [vmem:[%s6992_s1 + $0xe98] sm:$0xff]  ;;  %v4670_v35 = vpack.c.bf16 %v1389_v29, %v1381_v27  ;;  %v1469_v26 = vld [vmem:[%s6992_s1 + $0x10d0] sm:$0xff]  ;;  %v1476_v27 = vld [vmem:[%s6992_s1 + $0x1108] sm:$0xff] }
 0x2e0   : > { %v927_v18 = vld [vmem:[%s6966_s23 + $0x10] sm:$0xff]  ;;  %v930_v31 = vld [vmem:[%s6966_s23 + $0x28] sm:$0xff] }
 0x2e1   : > { %4459 = vmatpush1.bf16.msra.mxu0 %v4458_v38  ;;  %v1403_v38 = vld [vmem:[%s6992_s1 + $0xec0] sm:$0xff]  ;;  %v1478_v29 = vld [vmem:[%s6992_s1 + $0x1118] sm:$0xff] }
 0x2e2   : > { %4651 = vmatpush1.bf16.msra.mxu1 %v4650_v39  ;;  %4461 = vmatprep.subr.bf16.mxu0 %v4460_v40  ;;  %v1397_v39 = vld [vmem:[%s6992_s1 + $0xe90] sm:$0xff]  ;;  %v4672_v40 = vpack.c.bf16 %v1406_v33, %v1398_v32  ;;  %v4482_v46 = vpack.c.bf16 %v1403_v38, %v1395_v37  ;;  %v4692_v38 = vpack.c.bf16 %v1486_v30, %v1478_v29  ;;  %v1542_v14 = vld [vmem:[%s6992_s1 + $0x1318] sm:$0xff] }
 0x2e3   : > { %4653 = vmatprep.subr.bf16.mxu1 %v4652_v44  ;;  %v1414_v44 = vld [vmem:[%s6992_s1 + $0xf18] sm:$0xff]  ;;  %v4674_v47 = vpack.c.bf16 %v1405_v41, %v1397_v39  ;;  %v1477_v37 = vld [vmem:[%s6992_s1 + $0x1110] sm:$0xff]  ;;  %v1500_v41 = vld [vmem:[%s6992_s1 + $0x11c8] sm:$0xff] }
 0x2e4   : > { %v1485_v39 = vld [vmem:[%s6992_s1 + $0x1150] sm:$0xff]  ;;  %v1550_v15 = vld [vmem:[%s6992_s1 + $0x1358] sm:$0xff] }
 0x2e5   : > { %4463 = vmatpush1.bf16.msra.mxu0 %v4462_v50  ;;  %v1419_v50 = vld [vmem:[%s6992_s1 + $0xf40] sm:$0xff] }
 0x2e6   : > { %4655 = vmatpush1.bf16.msra.mxu1 %v4654_v51  ;;  %4465 = vmatprep.subr.bf16.mxu0 %v4464_v52  ;;  %v1413_v51 = vld [vmem:[%s6992_s1 + $0xf10] sm:$0xff]  ;;  %v4676_v52 = vpack.c.bf16 %v1422_v45, %v1414_v44  ;;  %v4486_v58 = vpack.c.bf16 %v1419_v50, %v1411_v49  ;;  %v4694_v45 = vpack.c.bf16 %v1485_v39, %v1477_v37  ;;  %v1580_v37 = vld [vmem:[%s6992_s1 + $0x1448] sm:$0xff]  ;;  %v1582_v39 = vld [vmem:[%s6992_s1 + $0x1458] sm:$0xff] }
 0x2e7   : > { %4657 = vmatprep.subr.bf16.mxu1 %v4656_v56  ;;  %v1430_v56 = vld [vmem:[%s6992_s1 + $0xf98] sm:$0xff]  ;;  %v4678_v59 = vpack.c.bf16 %v1421_v53, %v1413_v51  ;;  %v1493_v49 = vld [vmem:[%s6992_s1 + $0x1190] sm:$0xff]  ;;  %v4696_v50 = vpack.c.bf16 %v1502_v43, %v1494_v42  ;;  %v1516_v53 = vld [vmem:[%s6992_s1 + $0x1248] sm:$0xff] }
 0x2e8   : > { %v1501_v51 = vld [vmem:[%s6992_s1 + $0x11d0] sm:$0xff]  ;;  %v1571_v43 = vld [vmem:[%s6992_s1 + $0x1400] sm:$0xff] }
 0x2e9   : > { %4467 = vmatpush1.bf16.msra.mxu0 %v4466_v62  ;;  %v1435_v62 = vld [vmem:[%s6992_s1 + $0xfc0] sm:$0xff] }
 0x2ea   : > { %4659 = vmatpush1.bf16.msra.mxu1 %v4658_v63  ;;  %4469 = vmatprep.subr.bf16.mxu0 %v4468_v0  ;;  %v1429_v63 = vld [vmem:[%s6992_s1 + $0xf90] sm:$0xff]  ;;  %v4680_v0 = vpack.c.bf16 %v1438_v57, %v1430_v56  ;;  %v4490_v6 = vpack.c.bf16 %v1435_v62, %v1427_v61  ;;  %v4698_v57 = vpack.c.bf16 %v1501_v51, %v1493_v49  ;;  %v1596_v49 = vld [vmem:[%s6992_s1 + $0x14c8] sm:$0xff]  ;;  %v1598_v51 = vld [vmem:[%s6992_s1 + $0x14d8] sm:$0xff] }
 0x2eb   : > { %4661 = vmatprep.subr.bf16.mxu1 %v4660_v4  ;;  %v1446_v4 = vld [vmem:[%s6992_s1 + $0x1018] sm:$0xff]  ;;  %v4682_v7 = vpack.c.bf16 %v1437_v1, %v1429_v63  ;;  %v1509_v61 = vld [vmem:[%s6992_s1 + $0x1210] sm:$0xff]  ;;  %v4700_v62 = vpack.c.bf16 %v1518_v55, %v1510_v54  ;;  %v1532_v1 = vld [vmem:[%s6992_s1 + $0x12c8] sm:$0xff] }
 0x2ec   : > { %v1517_v63 = vld [vmem:[%s6992_s1 + $0x1250] sm:$0xff]  ;;  %v1587_v55 = vld [vmem:[%s6992_s1 + $0x1480] sm:$0xff] }
 0x2ed   : > { %4471 = vmatpush1.bf16.msra.mxu0 %v4470_v10  ;;  %v1451_v10 = vld [vmem:[%s6992_s1 + $0x1040] sm:$0xff] }
 0x2ee   : > { %4663 = vmatpush1.bf16.msra.mxu1 %v4662_v11  ;;  %4473 = vmatprep.subr.bf16.mxu0 %v4472_v12  ;;  %v1445_v11 = vld [vmem:[%s6992_s1 + $0x1010] sm:$0xff]  ;;  %v4684_v12 = vpack.c.bf16 %v1454_v5, %v1446_v4  ;;  %v4494_v19 = vpack.c.bf16 %v1451_v10, %v1443_v9  ;;  %v4702_v5 = vpack.c.bf16 %v1517_v63, %v1509_v61  ;;  %v1612_v61 = vld [vmem:[%s6992_s1 + $0x1548] sm:$0xff]  ;;  %v1614_v63 = vld [vmem:[%s6992_s1 + $0x1558] sm:$0xff] }
 0x2ef   : > { %4665 = vmatprep.subr.bf16.mxu1 %v4664_v16  ;;  %v1462_v16 = vld [vmem:[%s6992_s1 + $0x1098] sm:$0xff]  ;;  %v4686_v20 = vpack.c.bf16 %v1453_v13, %v1445_v11  ;;  %v1525_v9 = vld [vmem:[%s6992_s1 + $0x1290] sm:$0xff]  ;;  %v4704_v10 = vpack.c.bf16 %v1534_v3, %v1526_v2  ;;  %v1548_v13 = vld [vmem:[%s6992_s1 + $0x1348] sm:$0xff] }
 0x2f0   : > { %v4688_v25 = vpack.c.bf16 %v1470_v17, %v1462_v16  ;;  %v1533_v11 = vld [vmem:[%s6992_s1 + $0x12d0] sm:$0xff]  ;;  %v1603_v3 = vld [vmem:[%s6992_s1 + $0x1500] sm:$0xff] }
 0x2f1   : > { %4475 = vmatpush1.bf16.msra.mxu0 %v4474_v22  ;;  %v1459_v22 = vld [vmem:[%s6992_s1 + $0x1080] sm:$0xff]  ;;  %v4706_v17 = vpack.c.bf16 %v1533_v11, %v1525_v9  ;;  %v1628_v9 = vld [vmem:[%s6992_s1 + $0x15c8] sm:$0xff]  ;;  %v1630_v11 = vld [vmem:[%s6992_s1 + $0x15d8] sm:$0xff] }
 0x2f2   : > { %4667 = vmatpush1.bf16.msra.mxu1 %v4666_v23  ;;  %4477 = vmatprep.subr.bf16.mxu0 %v4476_v24  ;;  %v1467_v23 = vld [vmem:[%s6992_s1 + $0x10c0] sm:$0xff]  ;;  %v1461_v24 = vld [vmem:[%s6992_s1 + $0x1090] sm:$0xff] }
 0x2f3   : > { %4669 = vmatprep.subr.bf16.mxu1 %v4668_v28  ;;  %v1484_v28 = vld [vmem:[%s6992_s1 + $0x1148] sm:$0xff]  ;;  %v4498_v32 = vpack.c.bf16 %v1467_v23, %v1459_v22  ;;  %v4690_v33 = vpack.c.bf16 %v1469_v26, %v1461_v24  ;;  %v4708_v22 = vpack.c.bf16 %v1550_v15, %v1542_v14  ;;  %v1549_v23 = vld [vmem:[%s6992_s1 + $0x1350] sm:$0xff]  ;;  %v1558_v26 = vld [vmem:[%s6992_s1 + $0x1398] sm:$0xff] }
 0x2f4   : > { %v1556_v24 = vld [vmem:[%s6992_s1 + $0x1388] sm:$0xff]  ;;  %v1619_v15 = vld [vmem:[%s6992_s1 + $0x1580] sm:$0xff] }
 0x2f5   : > { %4479 = vmatpush1.bf16.msra.mxu0 %v4478_v34  ;;  %v4500_v34 = vpack.c.bf16 %v1484_v28, %v1476_v27  ;;  %v1566_v27 = vld [vmem:[%s6992_s1 + $0x13d8] sm:$0xff] }
 0x2f6   : > { %4671 = vmatpush1.bf16.msra.mxu1 %v4670_v35  ;;  %4481 = vmatprep.subr.bf16.mxu0 %v4480_v36  ;;  %v1475_v35 = vld [vmem:[%s6992_s1 + $0x1100] sm:$0xff] }
 0x2f7   : > { %4673 = vmatprep.subr.bf16.mxu1 %v4672_v40  ;;  %v1483_v36 = vld [vmem:[%s6992_s1 + $0x1140] sm:$0xff]  ;;  %v1492_v40 = vld [vmem:[%s6992_s1 + $0x1188] sm:$0xff] }
 0x2f8   : > { %v4502_v44 = vpack.c.bf16 %v1483_v36, %v1475_v35  ;;  %v1565_v35 = vld [vmem:[%s6992_s1 + $0x13d0] sm:$0xff]  ;;  %v1572_v36 = vld [vmem:[%s6992_s1 + $0x1408] sm:$0xff] }
 0x2f9   : > { %4483 = vmatpush1.bf16.msra.mxu0 %v4482_v46  ;;  %v4504_v46 = vpack.c.bf16 %v1500_v41, %v1492_v40  ;;  %v4524_v42 = vpack.c.bf16 %v1580_v37, %v1572_v36 }
 0x2fa   : > { %4675 = vmatpush1.bf16.msra.mxu1 %v4674_v47  ;;  %4485 = vmatprep.subr.bf16.mxu0 %v4484_v48  ;;  %v1491_v47 = vld [vmem:[%s6992_s1 + $0x1180] sm:$0xff] }
 0x2fb   : > { %4677 = vmatprep.subr.bf16.mxu1 %v4676_v52  ;;  %v1499_v48 = vld [vmem:[%s6992_s1 + $0x11c0] sm:$0xff]  ;;  %v1508_v52 = vld [vmem:[%s6992_s1 + $0x1208] sm:$0xff] }
 0x2fc   : > { %v4506_v56 = vpack.c.bf16 %v1499_v48, %v1491_v47  ;;  %v1581_v47 = vld [vmem:[%s6992_s1 + $0x1450] sm:$0xff]  ;;  %v1588_v48 = vld [vmem:[%s6992_s1 + $0x1488] sm:$0xff] }
 0x2fd   : > { %4487 = vmatpush1.bf16.msra.mxu0 %v4486_v58  ;;  %v4508_v58 = vpack.c.bf16 %v1516_v53, %v1508_v52  ;;  %v4528_v54 = vpack.c.bf16 %v1596_v49, %v1588_v48 }
 0x2fe   : > { %4679 = vmatpush1.bf16.msra.mxu1 %v4678_v59  ;;  %4489 = vmatprep.subr.bf16.mxu0 %v4488_v60  ;;  %v1507_v59 = vld [vmem:[%s6992_s1 + $0x1200] sm:$0xff] }
 0x2ff   : > { %4681 = vmatprep.subr.bf16.mxu1 %v4680_v0  ;;  %v1515_v60 = vld [vmem:[%s6992_s1 + $0x1240] sm:$0xff]  ;;  %v1524_v0 = vld [vmem:[%s6992_s1 + $0x1288] sm:$0xff] }
 0x300   : > { %v4510_v4 = vpack.c.bf16 %v1515_v60, %v1507_v59  ;;  %v1597_v59 = vld [vmem:[%s6992_s1 + $0x14d0] sm:$0xff]  ;;  %v1604_v60 = vld [vmem:[%s6992_s1 + $0x1508] sm:$0xff] }
 0x301   : > { %4491 = vmatpush1.bf16.msra.mxu0 %v4490_v6  ;;  %v4512_v6 = vpack.c.bf16 %v1532_v1, %v1524_v0  ;;  %v4532_v2 = vpack.c.bf16 %v1612_v61, %v1604_v60 }
 0x302   : > { %4683 = vmatpush1.bf16.msra.mxu1 %v4682_v7  ;;  %4493 = vmatprep.subr.bf16.mxu0 %v4492_v8  ;;  %v1523_v7 = vld [vmem:[%s6992_s1 + $0x1280] sm:$0xff] }
 0x303   : > { %4685 = vmatprep.subr.bf16.mxu1 %v4684_v12  ;;  %v1531_v8 = vld [vmem:[%s6992_s1 + $0x12c0] sm:$0xff]  ;;  %v1540_v12 = vld [vmem:[%s6992_s1 + $0x1308] sm:$0xff] }
 0x304   : > { %1835 = vmatmul.mubr.f32.vlgmr.msra.gmra.mrb[0].mxu0 %v927_v18  ;;  %v4514_v16 = vpack.c.bf16 %v1531_v8, %v1523_v7  ;;  %v1613_v7 = vld [vmem:[%s6992_s1 + $0x1550] sm:$0xff]  ;;  %v1620_v8 = vld [vmem:[%s6992_s1 + $0x1588] sm:$0xff] }
 0x305   : > { %4495 = vmatpush1.bf16.msra.mxu0 %v4494_v19  ;;  %2048 = vmatmul.mubr.f32.vlgmr.msra.gmra.mrb[0].mxu1 %v927_v18  ;;  %v4516_v18 = vpack.c.bf16 %v1548_v13, %v1540_v12  ;;  %v1539_v19 = vld [vmem:[%s6992_s1 + $0x1300] sm:$0xff]  ;;  %v4536_v14 = vpack.c.bf16 %v1628_v9, %v1620_v8 }
 0x306   : > { %4687 = vmatpush1.bf16.msra.mxu1 %v4686_v20  ;;  %4497 = vmatprep.subr.bf16.mxu0 %v4496_v21  ;;  %v1547_v20 = vld [vmem:[%s6992_s1 + $0x1340] sm:$0xff]  ;;  %v1541_v21 = vld [vmem:[%s6992_s1 + $0x1310] sm:$0xff] }
 0x307   : > { %4689 = vmatprep.subr.bf16.mxu1 %v4688_v25  ;;  %1905 = vmatprep.mubr.f32.mxu0 %v930_v31  ;;  %v1564_v25 = vld [vmem:[%s6992_s1 + $0x13c8] sm:$0xff]  ;;  %v4518_v28 = vpack.c.bf16 %v1547_v20, %v1539_v19  ;;  %v4710_v29 = vpack.c.bf16 %v1549_v23, %v1541_v21  ;;  %v1629_v19 = vld [vmem:[%s6992_s1 + $0x15d0] sm:$0xff]  ;;  %v1646_v23 = vld [vmem:[%s6992_s1 + $0x1658] sm:$0xff] }
 0x308   : > { %2118 = vmatprep.mubr.f32.mxu1 %v930_v31  ;;  %v4520_v30 = vpack.c.bf16 %v1564_v25, %v1556_v24  ;;  %v1555_v31 = vld [vmem:[%s6992_s1 + $0x1380] sm:$0xff]  ;;  %v1636_v20 = vld [vmem:[%s6992_s1 + $0x1608] sm:$0xff] }
 0x309   : > { %4499 = vmatpush1.bf16.msra.mxu0 %v4498_v32  ;;  %v1563_v32 = vld [vmem:[%s6992_s1 + $0x13c0] sm:$0xff]  ;;  %v1644_v21 = vld [vmem:[%s6992_s1 + $0x1648] sm:$0xff] }
 0x30a   : > { %4691 = vmatpush1.bf16.msra.mxu1 %v4690_v33  ;;  %4501 = vmatprep.subr.bf16.mxu0 %v4500_v34  ;;  %v1557_v33 = vld [vmem:[%s6992_s1 + $0x1390] sm:$0xff]  ;;  %v4712_v34 = vpack.c.bf16 %v1566_v27, %v1558_v26  ;;  %v4522_v40 = vpack.c.bf16 %v1563_v32, %v1555_v31  ;;  %v4540_v26 = vpack.c.bf16 %v1644_v21, %v1636_v20  ;;  %v1635_v27 = vld [vmem:[%s6992_s1 + $0x1600] sm:$0xff]  ;;  %v1652_v32 = vld [vmem:[%s6992_s1 + $0x1688] sm:$0xff] }
 0x30b   : > { %4693 = vmatprep.subr.bf16.mxu1 %v4692_v38  ;;  %v1574_v38 = vld [vmem:[%s6992_s1 + $0x1418] sm:$0xff]  ;;  %v4714_v41 = vpack.c.bf16 %v1565_v35, %v1557_v33  ;;  %v1645_v31 = vld [vmem:[%s6992_s1 + $0x1650] sm:$0xff]  ;;  %v1660_v33 = vld [vmem:[%s6992_s1 + $0x16c8] sm:$0xff] }
 0x30c   : > { %v1662_v35 = vld [vmem:[%s6992_s1 + $0x16d8] sm:$0xff] }
 0x30d   : > { %4503 = vmatpush1.bf16.msra.mxu0 %v4502_v44  ;;  %v1579_v44 = vld [vmem:[%s6992_s1 + $0x1440] sm:$0xff] }
 0x30e   : > { %4695 = vmatpush1.bf16.msra.mxu1 %v4694_v45  ;;  %4505 = vmatprep.subr.bf16.mxu0 %v4504_v46  ;;  %v1573_v45 = vld [vmem:[%s6992_s1 + $0x1410] sm:$0xff]  ;;  %v4716_v46 = vpack.c.bf16 %v1582_v39, %v1574_v38  ;;  %v4526_v52 = vpack.c.bf16 %v1579_v44, %v1571_v43  ;;  %v4544_v38 = vpack.c.bf16 %v1660_v33, %v1652_v32  ;;  %v1651_v39 = vld [vmem:[%s6992_s1 + $0x1680] sm:$0xff]  ;;  %v1668_v44 = vld [vmem:[%s6992_s1 + $0x1708] sm:$0xff] }
 0x30f   : > { %4697 = vmatprep.subr.bf16.mxu1 %v4696_v50  ;;  %v1590_v50 = vld [vmem:[%s6992_s1 + $0x1498] sm:$0xff]  ;;  %v4718_v53 = vpack.c.bf16 %v1581_v47, %v1573_v45  ;;  %v1661_v43 = vld [vmem:[%s6992_s1 + $0x16d0] sm:$0xff]  ;;  %v1676_v45 = vld [vmem:[%s6992_s1 + $0x1748] sm:$0xff] }
 0x310   : > { %v1678_v47 = vld [vmem:[%s6992_s1 + $0x1758] sm:$0xff] }
 0x311   : > { %4507 = vmatpush1.bf16.msra.mxu0 %v4506_v56  ;;  %v1595_v56 = vld [vmem:[%s6992_s1 + $0x14c0] sm:$0xff]  ;;  %v978_v32 = vld [vmem:[%s6992_s1 + $0x178] sm:$0xff] }
 0x312   : > { %4699 = vmatpush1.bf16.msra.mxu1 %v4698_v57  ;;  %4509 = vmatprep.subr.bf16.mxu0 %v4508_v58  ;;  %v1589_v57 = vld [vmem:[%s6992_s1 + $0x1490] sm:$0xff]  ;;  %v4720_v58 = vpack.c.bf16 %v1598_v51, %v1590_v50  ;;  %v4530_v0 = vpack.c.bf16 %v1595_v56, %v1587_v55  ;;  %v4548_v50 = vpack.c.bf16 %v1676_v45, %v1668_v44  ;;  %v1667_v51 = vld [vmem:[%s6992_s1 + $0x1700] sm:$0xff]  ;;  %v1684_v56 = vld [vmem:[%s6992_s1 + $0x1788] sm:$0xff] }
 0x313   : > { %4701 = vmatprep.subr.bf16.mxu1 %v4700_v62  ;;  %v1606_v62 = vld [vmem:[%s6992_s1 + $0x1518] sm:$0xff]  ;;  %v4722_v1 = vpack.c.bf16 %v1597_v59, %v1589_v57  ;;  %v1677_v55 = vld [vmem:[%s6992_s1 + $0x1750] sm:$0xff]  ;;  %v1692_v57 = vld [vmem:[%s6992_s1 + $0x17c8] sm:$0xff] }
 0x314   : > { %v1694_v59 = vld [vmem:[%s6992_s1 + $0x17d8] sm:$0xff] }
 0x315   : > { %4511 = vmatpush1.bf16.msra.mxu0 %v4510_v4  ;;  %v1611_v4 = vld [vmem:[%s6992_s1 + $0x1540] sm:$0xff]  ;;  %v986_v44 = vld [vmem:[%s6992_s1 + $0x1b8] sm:$0xff] }
 0x316   : > { %4703 = vmatpush1.bf16.msra.mxu1 %v4702_v5  ;;  %4513 = vmatprep.subr.bf16.mxu0 %v4512_v6  ;;  %v1605_v5 = vld [vmem:[%s6992_s1 + $0x1510] sm:$0xff]  ;;  %v4724_v6 = vpack.c.bf16 %v1614_v63, %v1606_v62  ;;  %v4534_v12 = vpack.c.bf16 %v1611_v4, %v1603_v3  ;;  %v4552_v62 = vpack.c.bf16 %v1692_v57, %v1684_v56  ;;  %v1683_v63 = vld [vmem:[%s6992_s1 + $0x1780] sm:$0xff]  ;;  %v936_v4 = vld [vmem:[%s6992_s1 + $0x28] sm:$0xff] }
 0x317   : > { %4705 = vmatprep.subr.bf16.mxu1 %v4704_v10  ;;  %v1622_v10 = vld [vmem:[%s6992_s1 + $0x1598] sm:$0xff]  ;;  %v4726_v13 = vpack.c.bf16 %v1613_v7, %v1605_v5  ;;  %v1693_v3 = vld [vmem:[%s6992_s1 + $0x17d0] sm:$0xff]  ;;  %v944_v5 = vld [vmem:[%s6992_s1 + $0x68] sm:$0xff] }
 0x318   : > { %v946_v7 = vld [vmem:[%s6992_s1 + $0x78] sm:$0xff] }
 0x319   : > { %4515 = vmatpush1.bf16.msra.mxu0 %v4514_v16  ;;  %v1627_v16 = vld [vmem:[%s6992_s1 + $0x15c0] sm:$0xff]  ;;  %v994_v45 = vld [vmem:[%s6992_s1 + $0x1f8] sm:$0xff] }
 0x31a   : > { %4707 = vmatpush1.bf16.msra.mxu1 %v4706_v17  ;;  %4517 = vmatprep.subr.bf16.mxu0 %v4516_v18  ;;  %v1621_v17 = vld [vmem:[%s6992_s1 + $0x1590] sm:$0xff]  ;;  %v4728_v18 = vpack.c.bf16 %v1630_v11, %v1622_v10  ;;  %v4538_v24 = vpack.c.bf16 %v1627_v16, %v1619_v15  ;;  %v4748_v10 = vpack.c.bf16 %v944_v5, %v936_v4  ;;  %v935_v11 = vld [vmem:[%s6992_s1 + $0x20] sm:$0xff]  ;;  %v952_v16 = vld [vmem:[%s6992_s1 + $0xa8] sm:$0xff] }
 0x31b   : > { %4709 = vmatprep.subr.bf16.mxu1 %v4708_v22  ;;  %v1638_v22 = vld [vmem:[%s6992_s1 + $0x1618] sm:$0xff]  ;;  %v4730_v25 = vpack.c.bf16 %v1629_v19, %v1621_v17  ;;  %v945_v15 = vld [vmem:[%s6992_s1 + $0x70] sm:$0xff]  ;;  %v960_v17 = vld [vmem:[%s6992_s1 + $0xe8] sm:$0xff] }
 0x31c   : > { %v962_v19 = vld [vmem:[%s6992_s1 + $0xf8] sm:$0xff] }
 0x31d   : > { %4519 = vmatpush1.bf16.msra.mxu0 %v4518_v28  ;;  %v1643_v28 = vld [vmem:[%s6992_s1 + $0x1640] sm:$0xff]  ;;  %v1002_v56 = vld [vmem:[%s6992_s1 + $0x238] sm:$0xff] }
 0x31e   : > { %4711 = vmatpush1.bf16.msra.mxu1 %v4710_v29  ;;  %4521 = vmatprep.subr.bf16.mxu0 %v4520_v30  ;;  %v1637_v29 = vld [vmem:[%s6992_s1 + $0x1610] sm:$0xff]  ;;  %v4732_v30 = vpack.c.bf16 %v1646_v23, %v1638_v22  ;;  %v4542_v36 = vpack.c.bf16 %v1643_v28, %v1635_v27  ;;  %v4752_v23 = vpack.c.bf16 %v960_v17, %v952_v16  ;;  %v1010_v57 = vld [vmem:[%s6992_s1 + $0x278] sm:$0xff] }
 0x31f   : > { %4713 = vmatprep.subr.bf16.mxu1 %v4712_v34  ;;  %v1654_v34 = vld [vmem:[%s6992_s1 + $0x1698] sm:$0xff]  ;;  %v4734_v37 = vpack.c.bf16 %v1645_v31, %v1637_v29  ;;  %v961_v28 = vld [vmem:[%s6992_s1 + $0xf0] sm:$0xff]  ;;  %v968_v29 = vld [vmem:[%s6992_s1 + $0x128] sm:$0xff] }
 0x320   : > { %v929_v20 = vld [vmem:[%s6966_s23 + $0x20] sm:$0xff] }
 0x321   : > { %4523 = vmatpush1.bf16.msra.mxu0 %v4522_v40  ;;  %v1659_v40 = vld [vmem:[%s6992_s1 + $0x16c0] sm:$0xff]  ;;  %v970_v31 = vld [vmem:[%s6992_s1 + $0x138] sm:$0xff] }
 0x322   : > { %4715 = vmatpush1.bf16.msra.mxu1 %v4714_v41  ;;  %4525 = vmatprep.subr.bf16.mxu0 %v4524_v42  ;;  %v1653_v41 = vld [vmem:[%s6992_s1 + $0x1690] sm:$0xff]  ;;  %v4736_v42 = vpack.c.bf16 %v1662_v35, %v1654_v34  ;;  %v4546_v48 = vpack.c.bf16 %v1659_v40, %v1651_v39  ;;  %v4948_v39 = vpack.c.bf16 %v978_v32, %v970_v31  ;;  %v1018_v4 = vld [vmem:[%s6992_s1 + $0x2b8] sm:$0xff] }
 0x323   : > { %4717 = vmatprep.subr.bf16.mxu1 %v4716_v46  ;;  %v1670_v46 = vld [vmem:[%s6992_s1 + $0x1718] sm:$0xff]  ;;  %v4738_v49 = vpack.c.bf16 %v1661_v43, %v1653_v41  ;;  %v977_v40 = vld [vmem:[%s6992_s1 + $0x170] sm:$0xff]  ;;  %v984_v41 = vld [vmem:[%s6992_s1 + $0x1a8] sm:$0xff] }
 0x324   : > { %v5600_v43 = vld [vmem:[%s6966_s23 + $0x8] sm:$0xff] }
 0x325   : > { %4527 = vmatpush1.bf16.msra.mxu0 %v4526_v52  ;;  %v1675_v52 = vld [vmem:[%s6992_s1 + $0x1740] sm:$0xff]  ;;  %v1026_v5 = vld [vmem:[%s6992_s1 + $0x2f8] sm:$0xff] }
 0x326   : > { %4719 = vmatpush1.bf16.msra.mxu1 %v4718_v53  ;;  %4529 = vmatprep.subr.bf16.mxu0 %v4528_v54  ;;  %v1669_v53 = vld [vmem:[%s6992_s1 + $0x1710] sm:$0xff]  ;;  %v4740_v54 = vpack.c.bf16 %v1678_v47, %v1670_v46  ;;  %v4550_v60 = vpack.c.bf16 %v1675_v52, %v1667_v51  ;;  %v4952_v52 = vpack.c.bf16 %v994_v45, %v986_v44  ;;  %v1034_v16 = vld [vmem:[%s6992_s1 + $0x338] sm:$0xff]  ;;  %v1063_v45 = vld [vmem:[%s6992_s1 + $0x420] sm:$0xff] }
 0x327   : > { %4721 = vmatprep.subr.bf16.mxu1 %v4720_v58  ;;  %v1686_v58 = vld [vmem:[%s6992_s1 + $0x1798] sm:$0xff]  ;;  %v4742_v61 = vpack.c.bf16 %v1677_v55, %v1669_v53  ;;  %v985_v51 = vld [vmem:[%s6992_s1 + $0x1b0] sm:$0xff]  ;;  %v1008_v55 = vld [vmem:[%s6992_s1 + $0x268] sm:$0xff] }
 0x328   : > { %v993_v53 = vld [vmem:[%s6992_s1 + $0x1f0] sm:$0xff]  ;;  %v1042_v17 = vld [vmem:[%s6992_s1 + $0x378] sm:$0xff] }
 0x329   : > { %4531 = vmatpush1.bf16.msra.mxu0 %v4530_v0  ;;  %v1691_v0 = vld [vmem:[%s6992_s1 + $0x17c0] sm:$0xff] }
 0x32a   : > { %4723 = vmatpush1.bf16.msra.mxu1 %v4722_v1  ;;  %4533 = vmatprep.subr.bf16.mxu0 %v4532_v2  ;;  %v1685_v1 = vld [vmem:[%s6992_s1 + $0x1790] sm:$0xff]  ;;  %v4744_v2 = vpack.c.bf16 %v1694_v59, %v1686_v58  ;;  %v4554_v8 = vpack.c.bf16 %v1691_v0, %v1683_v63  ;;  %v4954_v59 = vpack.c.bf16 %v993_v53, %v985_v51  ;;  %v1088_v51 = vld [vmem:[%s6992_s1 + $0x4e8] sm:$0xff]  ;;  %v1090_v53 = vld [vmem:[%s6992_s1 + $0x4f8] sm:$0xff] }
 0x32b   : > { %4725 = vmatprep.subr.bf16.mxu1 %v4724_v6  ;;  %v938_v6 = vld [vmem:[%s6992_s1 + $0x38] sm:$0xff]  ;;  %v4746_v9 = vpack.c.bf16 %v1693_v3, %v1685_v1  ;;  %v1001_v63 = vld [vmem:[%s6992_s1 + $0x230] sm:$0xff]  ;;  %v4956_v0 = vpack.c.bf16 %v1010_v57, %v1002_v56  ;;  %v1024_v3 = vld [vmem:[%s6992_s1 + $0x2e8] sm:$0xff] }
 0x32c   : > { %v1009_v1 = vld [vmem:[%s6992_s1 + $0x270] sm:$0xff]  ;;  %v1079_v57 = vld [vmem:[%s6992_s1 + $0x4a0] sm:$0xff] }
 0x32d   : > { %4535 = vmatpush1.bf16.msra.mxu0 %v4534_v12  ;;  %v943_v12 = vld [vmem:[%s6992_s1 + $0x60] sm:$0xff] }
 0x32e   : > { %4727 = vmatpush1.bf16.msra.mxu1 %v4726_v13  ;;  %4537 = vmatprep.subr.bf16.mxu0 %v4536_v14  ;;  %v937_v13 = vld [vmem:[%s6992_s1 + $0x30] sm:$0xff]  ;;  %v4940_v14 = vpack.c.bf16 %v946_v7, %v938_v6  ;;  %v4750_v21 = vpack.c.bf16 %v943_v12, %v935_v11  ;;  %v4958_v7 = vpack.c.bf16 %v1009_v1, %v1001_v63  ;;  %v1104_v63 = vld [vmem:[%s6992_s1 + $0x568] sm:$0xff]  ;;  %v1106_v1 = vld [vmem:[%s6992_s1 + $0x578] sm:$0xff] }
 0x32f   : > { %4729 = vmatprep.subr.bf16.mxu1 %v4728_v18  ;;  %v954_v18 = vld [vmem:[%s6992_s1 + $0xb8] sm:$0xff]  ;;  %v4942_v22 = vpack.c.bf16 %v945_v15, %v937_v13  ;;  %v1017_v11 = vld [vmem:[%s6992_s1 + $0x2b0] sm:$0xff]  ;;  %v4960_v12 = vpack.c.bf16 %v1026_v5, %v1018_v4  ;;  %v1040_v15 = vld [vmem:[%s6992_s1 + $0x368] sm:$0xff] }
 0x330   : > { %v4944_v27 = vpack.c.bf16 %v962_v19, %v954_v18  ;;  %v1025_v13 = vld [vmem:[%s6992_s1 + $0x2f0] sm:$0xff]  ;;  %v1095_v5 = vld [vmem:[%s6992_s1 + $0x520] sm:$0xff] }
 0x331   : > { %4539 = vmatpush1.bf16.msra.mxu0 %v4538_v24  ;;  %v951_v24 = vld [vmem:[%s6992_s1 + $0xa0] sm:$0xff]  ;;  %v4962_v19 = vpack.c.bf16 %v1025_v13, %v1017_v11  ;;  %v1120_v11 = vld [vmem:[%s6992_s1 + $0x5e8] sm:$0xff]  ;;  %v1122_v13 = vld [vmem:[%s6992_s1 + $0x5f8] sm:$0xff] }
 0x332   : > { %4731 = vmatpush1.bf16.msra.mxu1 %v4730_v25  ;;  %4541 = vmatprep.subr.bf16.mxu0 %v4540_v26  ;;  %v959_v25 = vld [vmem:[%s6992_s1 + $0xe0] sm:$0xff]  ;;  %v953_v26 = vld [vmem:[%s6992_s1 + $0xb0] sm:$0xff] }
 0x333   : > { %4733 = vmatprep.subr.bf16.mxu1 %v4732_v30  ;;  %v976_v30 = vld [vmem:[%s6992_s1 + $0x168] sm:$0xff]  ;;  %v4754_v33 = vpack.c.bf16 %v959_v25, %v951_v24  ;;  %v4946_v34 = vpack.c.bf16 %v961_v28, %v953_v26  ;;  %v4964_v24 = vpack.c.bf16 %v1042_v17, %v1034_v16  ;;  %v1041_v25 = vld [vmem:[%s6992_s1 + $0x370] sm:$0xff]  ;;  %v1050_v28 = vld [vmem:[%s6992_s1 + $0x3b8] sm:$0xff] }
 0x334   : > { %v4756_v35 = vpack.c.bf16 %v976_v30, %v968_v29  ;;  %v1048_v26 = vld [vmem:[%s6992_s1 + $0x3a8] sm:$0xff]  ;;  %v1058_v29 = vld [vmem:[%s6992_s1 + $0x3f8] sm:$0xff]  ;;  %v1111_v17 = vld [vmem:[%s6992_s1 + $0x5a0] sm:$0xff] }
 0x335   : > { %4543 = vmatpush1.bf16.msra.mxu0 %v4542_v36  ;;  %v967_v36 = vld [vmem:[%s6992_s1 + $0x120] sm:$0xff] }
 0x336   : > { %4735 = vmatpush1.bf16.msra.mxu1 %v4734_v37  ;;  %4545 = vmatprep.subr.bf16.mxu0 %v4544_v38  ;;  %v975_v37 = vld [vmem:[%s6992_s1 + $0x160] sm:$0xff]  ;;  %v969_v38 = vld [vmem:[%s6992_s1 + $0x130] sm:$0xff] }
 0x337   : > { %4737 = vmatprep.subr.bf16.mxu1 %v4736_v42  ;;  %v992_v42 = vld [vmem:[%s6992_s1 + $0x1e8] sm:$0xff]  ;;  %v4758_v46 = vpack.c.bf16 %v975_v37, %v967_v36  ;;  %v4950_v47 = vpack.c.bf16 %v977_v40, %v969_v38  ;;  %v4968_v36 = vpack.c.bf16 %v1058_v29, %v1050_v28  ;;  %v1057_v37 = vld [vmem:[%s6992_s1 + $0x3f0] sm:$0xff]  ;;  %v1066_v40 = vld [vmem:[%s6992_s1 + $0x438] sm:$0xff] }
 0x338   : > { %v1064_v38 = vld [vmem:[%s6992_s1 + $0x428] sm:$0xff]  ;;  %v1127_v29 = vld [vmem:[%s6992_s1 + $0x620] sm:$0xff] }
 0x339   : > { %4547 = vmatpush1.bf16.msra.mxu0 %v4546_v48  ;;  %v4760_v48 = vpack.c.bf16 %v992_v42, %v984_v41  ;;  %v1074_v41 = vld [vmem:[%s6992_s1 + $0x478] sm:$0xff] }
 0x33a   : > { %4739 = vmatpush1.bf16.msra.mxu1 %v4738_v49  ;;  %4549 = vmatprep.subr.bf16.mxu0 %v4548_v50  ;;  %v983_v49 = vld [vmem:[%s6992_s1 + $0x1a0] sm:$0xff] }
 0x33b   : > { %4741 = vmatprep.subr.bf16.mxu1 %v4740_v54  ;;  %v991_v50 = vld [vmem:[%s6992_s1 + $0x1e0] sm:$0xff]  ;;  %v1000_v54 = vld [vmem:[%s6992_s1 + $0x228] sm:$0xff] }
 0x33c   : > { %v4762_v58 = vpack.c.bf16 %v991_v50, %v983_v49  ;;  %v1073_v49 = vld [vmem:[%s6992_s1 + $0x470] sm:$0xff]  ;;  %v1080_v50 = vld [vmem:[%s6992_s1 + $0x4a8] sm:$0xff] }
 0x33d   : > { %4551 = vmatpush1.bf16.msra.mxu0 %v4550_v60  ;;  %v4764_v60 = vpack.c.bf16 %v1008_v55, %v1000_v54  ;;  %v4784_v56 = vpack.c.bf16 %v1088_v51, %v1080_v50 }
 0x33e   : > { %4743 = vmatpush1.bf16.msra.mxu1 %v4742_v61  ;;  %4553 = vmatprep.subr.bf16.mxu0 %v4552_v62  ;;  %v999_v61 = vld [vmem:[%s6992_s1 + $0x220] sm:$0xff] }
 0x33f   : > { %4745 = vmatprep.subr.bf16.mxu1 %v4744_v2  ;;  %v1007_v62 = vld [vmem:[%s6992_s1 + $0x260] sm:$0xff]  ;;  %v1016_v2 = vld [vmem:[%s6992_s1 + $0x2a8] sm:$0xff] }
 0x340   : > { %v4766_v6 = vpack.c.bf16 %v1007_v62, %v999_v61  ;;  %v1089_v61 = vld [vmem:[%s6992_s1 + $0x4f0] sm:$0xff]  ;;  %v1096_v62 = vld [vmem:[%s6992_s1 + $0x528] sm:$0xff] }
 0x341   : > { %4555 = vmatpush1.bf16.msra.mxu0 %v4554_v8  ;;  %v4768_v8 = vpack.c.bf16 %v1024_v3, %v1016_v2  ;;  %v4788_v4 = vpack.c.bf16 %v1104_v63, %v1096_v62 }
 0x342   : > { %4747 = vmatpush1.bf16.msra.mxu1 %v4746_v9  ;;  %4749 = vmatprep.subr.bf16.mxu0 %v4748_v10  ;;  %v1015_v9 = vld [vmem:[%s6992_s1 + $0x2a0] sm:$0xff] }
 0x343   : > { %4941 = vmatprep.subr.bf16.mxu1 %v4940_v14  ;;  %v1023_v10 = vld [vmem:[%s6992_s1 + $0x2e0] sm:$0xff]  ;;  %v1032_v14 = vld [vmem:[%s6992_s1 + $0x328] sm:$0xff] }
 0x344   : > { %1906 = vmatmul.mubr.f32.vlgmr.msra.gmra.mrb[0].mxu0 %v929_v20  ;;  %v4770_v18 = vpack.c.bf16 %v1023_v10, %v1015_v9  ;;  %v1105_v9 = vld [vmem:[%s6992_s1 + $0x570] sm:$0xff]  ;;  %v1112_v10 = vld [vmem:[%s6992_s1 + $0x5a8] sm:$0xff] }
 0x345   : > { %2119 = vmatmul.mubr.f32.vlgmr.msra.gmra.mrb[0].mxu1 %v929_v20  ;;  %4751 = vmatpush1.bf16.msra.mxu0 %v4750_v21  ;;  %v4772_v20 = vpack.c.bf16 %v1040_v15, %v1032_v14  ;;  %v1031_v21 = vld [vmem:[%s6992_s1 + $0x320] sm:$0xff]  ;;  %v4792_v16 = vpack.c.bf16 %v1120_v11, %v1112_v10 }
 0x346   : > { %4943 = vmatpush1.bf16.msra.mxu1 %v4942_v22  ;;  %4753 = vmatprep.subr.bf16.mxu0 %v4752_v23  ;;  %v1039_v22 = vld [vmem:[%s6992_s1 + $0x360] sm:$0xff]  ;;  %v1033_v23 = vld [vmem:[%s6992_s1 + $0x330] sm:$0xff] }
 0x347   : > { %4945 = vmatprep.subr.bf16.mxu1 %v4944_v27  ;;  %2189 = vmatprep.mubr.f32.mxu0 %v5600_v43  ;;  %v1056_v27 = vld [vmem:[%s6992_s1 + $0x3e8] sm:$0xff]  ;;  %v4774_v30 = vpack.c.bf16 %v1039_v22, %v1031_v21  ;;  %v4966_v31 = vpack.c.bf16 %v1041_v25, %v1033_v23  ;;  %v1121_v21 = vld [vmem:[%s6992_s1 + $0x5f0] sm:$0xff]  ;;  %v1138_v25 = vld [vmem:[%s6992_s1 + $0x678] sm:$0xff] }
 0x348   : > { %2402 = vmatprep.mubr.f32.mxu1 %v5600_v43  ;;  %v4776_v32 = vpack.c.bf16 %v1056_v27, %v1048_v26  ;;  %v1128_v22 = vld [vmem:[%s6992_s1 + $0x628] sm:$0xff] }
 0x349   : > { %4755 = vmatpush1.bf16.msra.mxu0 %v4754_v33  ;;  %v1047_v33 = vld [vmem:[%s6992_s1 + $0x3a0] sm:$0xff]  ;;  %v1136_v23 = vld [vmem:[%s6992_s1 + $0x668] sm:$0xff] }
 0x34a   : > { %4947 = vmatpush1.bf16.msra.mxu1 %v4946_v34  ;;  %4757 = vmatprep.subr.bf16.mxu0 %v4756_v35  ;;  %v1055_v34 = vld [vmem:[%s6992_s1 + $0x3e0] sm:$0xff]  ;;  %v1049_v35 = vld [vmem:[%s6992_s1 + $0x3b0] sm:$0xff]  ;;  %v4796_v28 = vpack.c.bf16 %v1136_v23, %v1128_v22 }
 0x34b   : > { %4949 = vmatprep.subr.bf16.mxu1 %v4948_v39  ;;  %v1072_v39 = vld [vmem:[%s6992_s1 + $0x468] sm:$0xff]  ;;  %v4778_v42 = vpack.c.bf16 %v1055_v34, %v1047_v33  ;;  %v4970_v43 = vpack.c.bf16 %v1057_v37, %v1049_v35  ;;  %v1137_v33 = vld [vmem:[%s6992_s1 + $0x670] sm:$0xff]  ;;  %v1154_v37 = vld [vmem:[%s6992_s1 + $0x6f8] sm:$0xff] }
 0x34c   : > { %v4780_v44 = vpack.c.bf16 %v1072_v39, %v1064_v38  ;;  %v1144_v34 = vld [vmem:[%s6992_s1 + $0x6a8] sm:$0xff] }
 0x34d   : > { %4759 = vmatpush1.bf16.msra.mxu0 %v4758_v46  ;;  %v1071_v46 = vld [vmem:[%s6992_s1 + $0x460] sm:$0xff]  ;;  %v1152_v35 = vld [vmem:[%s6992_s1 + $0x6e8] sm:$0xff] }
 0x34e   : > { %4951 = vmatpush1.bf16.msra.mxu1 %v4950_v47  ;;  %4761 = vmatprep.subr.bf16.mxu0 %v4760_v48  ;;  %v1065_v47 = vld [vmem:[%s6992_s1 + $0x430] sm:$0xff]  ;;  %v4972_v48 = vpack.c.bf16 %v1074_v41, %v1066_v40  ;;  %v4782_v54 = vpack.c.bf16 %v1071_v46, %v1063_v45  ;;  %v4800_v40 = vpack.c.bf16 %v1152_v35, %v1144_v34  ;;  %v1143_v41 = vld [vmem:[%s6992_s1 + $0x6a0] sm:$0xff]  ;;  %v1160_v46 = vld [vmem:[%s6992_s1 + $0x728] sm:$0xff] }
 0x34f   : > { %4953 = vmatprep.subr.bf16.mxu1 %v4952_v52  ;;  %v1082_v52 = vld [vmem:[%s6992_s1 + $0x4b8] sm:$0xff]  ;;  %v4974_v55 = vpack.c.bf16 %v1073_v49, %v1065_v47  ;;  %v1153_v45 = vld [vmem:[%s6992_s1 + $0x6f0] sm:$0xff]  ;;  %v1168_v47 = vld [vmem:[%s6992_s1 + $0x768] sm:$0xff] }
 0x350   : > { %v1170_v49 = vld [vmem:[%s6992_s1 + $0x778] sm:$0xff] }
 0x351   : > { %4763 = vmatpush1.bf16.msra.mxu0 %v4762_v58  ;;  %v1087_v58 = vld [vmem:[%s6992_s1 + $0x4e0] sm:$0xff]  ;;  %v1234_v34 = vld [vmem:[%s6992_s1 + $0x978] sm:$0xff] }
 0x352   : > { %4955 = vmatpush1.bf16.msra.mxu1 %v4954_v59  ;;  %4765 = vmatprep.subr.bf16.mxu0 %v4764_v60  ;;  %v1081_v59 = vld [vmem:[%s6992_s1 + $0x4b0] sm:$0xff]  ;;  %v4976_v60 = vpack.c.bf16 %v1090_v53, %v1082_v52  ;;  %v4786_v2 = vpack.c.bf16 %v1087_v58, %v1079_v57  ;;  %v4804_v52 = vpack.c.bf16 %v1168_v47, %v1160_v46  ;;  %v1159_v53 = vld [vmem:[%s6992_s1 + $0x720] sm:$0xff]  ;;  %v1176_v58 = vld [vmem:[%s6992_s1 + $0x7a8] sm:$0xff] }
 0x353   : > { %4957 = vmatprep.subr.bf16.mxu1 %v4956_v0  ;;  %v1098_v0 = vld [vmem:[%s6992_s1 + $0x538] sm:$0xff]  ;;  %v4978_v3 = vpack.c.bf16 %v1089_v61, %v1081_v59  ;;  %v1169_v57 = vld [vmem:[%s6992_s1 + $0x770] sm:$0xff]  ;;  %v1184_v59 = vld [vmem:[%s6992_s1 + $0x7e8] sm:$0xff] }
 0x354   : > { %v1186_v61 = vld [vmem:[%s6992_s1 + $0x7f8] sm:$0xff] }
 0x355   : > { %4767 = vmatpush1.bf16.msra.mxu0 %v4766_v6  ;;  %v1103_v6 = vld [vmem:[%s6992_s1 + $0x560] sm:$0xff]  ;;  %v1242_v46 = vld [vmem:[%s6992_s1 + $0x9b8] sm:$0xff] }
 0x356   : > { %4959 = vmatpush1.bf16.msra.mxu1 %v4958_v7  ;;  %4769 = vmatprep.subr.bf16.mxu0 %v4768_v8  ;;  %v1097_v7 = vld [vmem:[%s6992_s1 + $0x530] sm:$0xff]  ;;  %v4980_v8 = vpack.c.bf16 %v1106_v1, %v1098_v0  ;;  %v4790_v14 = vpack.c.bf16 %v1103_v6, %v1095_v5  ;;  %v4808_v0 = vpack.c.bf16 %v1184_v59, %v1176_v58  ;;  %v1175_v1 = vld [vmem:[%s6992_s1 + $0x7a0] sm:$0xff]  ;;  %v1192_v6 = vld [vmem:[%s6992_s1 + $0x828] sm:$0xff] }
 0x357   : > { %4961 = vmatprep.subr.bf16.mxu1 %v4960_v12  ;;  %v1114_v12 = vld [vmem:[%s6992_s1 + $0x5b8] sm:$0xff]  ;;  %v4982_v15 = vpack.c.bf16 %v1105_v9, %v1097_v7  ;;  %v1185_v5 = vld [vmem:[%s6992_s1 + $0x7f0] sm:$0xff]  ;;  %v1200_v7 = vld [vmem:[%s6992_s1 + $0x868] sm:$0xff] }
 0x358   : > { %v1202_v9 = vld [vmem:[%s6992_s1 + $0x878] sm:$0xff] }
 0x359   : > { %4771 = vmatpush1.bf16.msra.mxu0 %v4770_v18  ;;  %v1119_v18 = vld [vmem:[%s6992_s1 + $0x5e0] sm:$0xff]  ;;  %v1250_v47 = vld [vmem:[%s6992_s1 + $0x9f8] sm:$0xff] }
 0x35a   : > { %4963 = vmatpush1.bf16.msra.mxu1 %v4962_v19  ;;  %4773 = vmatprep.subr.bf16.mxu0 %v4772_v20  ;;  %v1113_v19 = vld [vmem:[%s6992_s1 + $0x5b0] sm:$0xff]  ;;  %v4984_v20 = vpack.c.bf16 %v1122_v13, %v1114_v12  ;;  %v4794_v26 = vpack.c.bf16 %v1119_v18, %v1111_v17  ;;  %v4812_v12 = vpack.c.bf16 %v1200_v7, %v1192_v6  ;;  %v1191_v13 = vld [vmem:[%s6992_s1 + $0x820] sm:$0xff]  ;;  %v1208_v18 = vld [vmem:[%s6992_s1 + $0x8a8] sm:$0xff] }
 0x35b   : > { %4965 = vmatprep.subr.bf16.mxu1 %v4964_v24  ;;  %v1130_v24 = vld [vmem:[%s6992_s1 + $0x638] sm:$0xff]  ;;  %v4986_v27 = vpack.c.bf16 %v1121_v21, %v1113_v19  ;;  %v1201_v17 = vld [vmem:[%s6992_s1 + $0x870] sm:$0xff]  ;;  %v1216_v19 = vld [vmem:[%s6992_s1 + $0x8e8] sm:$0xff] }
 0x35c   : > { %v1218_v21 = vld [vmem:[%s6992_s1 + $0x8f8] sm:$0xff] }
 0x35d   : > { %4775 = vmatpush1.bf16.msra.mxu0 %v4774_v30  ;;  %v1135_v30 = vld [vmem:[%s6992_s1 + $0x660] sm:$0xff]  ;;  %v1258_v58 = vld [vmem:[%s6992_s1 + $0xa38] sm:$0xff] }
 0x35e   : > { %4967 = vmatpush1.bf16.msra.mxu1 %v4966_v31  ;;  %4777 = vmatprep.subr.bf16.mxu0 %v4776_v32  ;;  %v1129_v31 = vld [vmem:[%s6992_s1 + $0x630] sm:$0xff]  ;;  %v4988_v32 = vpack.c.bf16 %v1138_v25, %v1130_v24  ;;  %v4798_v38 = vpack.c.bf16 %v1135_v30, %v1127_v29  ;;  %v4816_v24 = vpack.c.bf16 %v1216_v19, %v1208_v18  ;;  %v1207_v25 = vld [vmem:[%s6992_s1 + $0x8a0] sm:$0xff]  ;;  %v1224_v30 = vld [vmem:[%s6992_s1 + $0x928] sm:$0xff] }
 0x35f   : > { %4969 = vmatprep.subr.bf16.mxu1 %v4968_v36  ;;  %v1146_v36 = vld [vmem:[%s6992_s1 + $0x6b8] sm:$0xff]  ;;  %v4990_v39 = vpack.c.bf16 %v1137_v33, %v1129_v31  ;;  %v1217_v29 = vld [vmem:[%s6992_s1 + $0x8f0] sm:$0xff]  ;;  %v1232_v31 = vld [vmem:[%s6992_s1 + $0x968] sm:$0xff] }
 0x360   : > { %v1226_v33 = vld [vmem:[%s6992_s1 + $0x938] sm:$0xff] }
 0x361   : > { %4779 = vmatpush1.bf16.msra.mxu0 %v4778_v42  ;;  %v1151_v42 = vld [vmem:[%s6992_s1 + $0x6e0] sm:$0xff]  ;;  %v1266_v59 = vld [vmem:[%s6992_s1 + $0xa78] sm:$0xff] }
 0x362   : > { %4971 = vmatpush1.bf16.msra.mxu1 %v4970_v43  ;;  %4781 = vmatprep.subr.bf16.mxu0 %v4780_v44  ;;  %v1145_v43 = vld [vmem:[%s6992_s1 + $0x6b0] sm:$0xff]  ;;  %v4992_v44 = vpack.c.bf16 %v1154_v37, %v1146_v36  ;;  %v4802_v50 = vpack.c.bf16 %v1151_v42, %v1143_v41  ;;  %v4820_v37 = vpack.c.bf16 %v1232_v31, %v1224_v30  ;;  %v1274_v6 = vld [vmem:[%s6992_s1 + $0xab8] sm:$0xff] }
 0x363   : > { %4973 = vmatprep.subr.bf16.mxu1 %v4972_v48  ;;  %v1162_v48 = vld [vmem:[%s6992_s1 + $0x738] sm:$0xff]  ;;  %v4994_v51 = vpack.c.bf16 %v1153_v45, %v1145_v43  ;;  %v5012_v41 = vpack.c.bf16 %v1234_v34, %v1226_v33  ;;  %v1233_v42 = vld [vmem:[%s6992_s1 + $0x970] sm:$0xff]  ;;  %v1240_v43 = vld [vmem:[%s6992_s1 + $0x9a8] sm:$0xff] }
 0x364   : > { %v5602_v45 = vld [vmem:[%s6966_s23 + $0x18] sm:$0xff] }
 0x365   : > { %4783 = vmatpush1.bf16.msra.mxu0 %v4782_v54  ;;  %v1167_v54 = vld [vmem:[%s6992_s1 + $0x760] sm:$0xff]  ;;  %v1282_v7 = vld [vmem:[%s6992_s1 + $0xaf8] sm:$0xff] }
 0x366   : > { %4975 = vmatpush1.bf16.msra.mxu1 %v4974_v55  ;;  %4785 = vmatprep.subr.bf16.mxu0 %v4784_v56  ;;  %v1161_v55 = vld [vmem:[%s6992_s1 + $0x730] sm:$0xff]  ;;  %v4996_v56 = vpack.c.bf16 %v1170_v49, %v1162_v48  ;;  %v4806_v62 = vpack.c.bf16 %v1167_v54, %v1159_v53  ;;  %v5016_v54 = vpack.c.bf16 %v1250_v47, %v1242_v46  ;;  %v1290_v18 = vld [vmem:[%s6992_s1 + $0xb38] sm:$0xff]  ;;  %v1319_v47 = vld [vmem:[%s6992_s1 + $0xc20] sm:$0xff] }
 0x367   : > { %4977 = vmatprep.subr.bf16.mxu1 %v4976_v60  ;;  %v1178_v60 = vld [vmem:[%s6992_s1 + $0x7b8] sm:$0xff]  ;;  %v4998_v63 = vpack.c.bf16 %v1169_v57, %v1161_v55  ;;  %v1241_v53 = vld [vmem:[%s6992_s1 + $0x9b0] sm:$0xff]  ;;  %v1264_v57 = vld [vmem:[%s6992_s1 + $0xa68] sm:$0xff] }
 0x368   : > { %v1249_v55 = vld [vmem:[%s6992_s1 + $0x9f0] sm:$0xff]  ;;  %v1298_v19 = vld [vmem:[%s6992_s1 + $0xb78] sm:$0xff] }
 0x369   : > { %4787 = vmatpush1.bf16.msra.mxu0 %v4786_v2  ;;  %v1183_v2 = vld [vmem:[%s6992_s1 + $0x7e0] sm:$0xff]  ;;  %v1306_v30 = vld [vmem:[%s6992_s1 + $0xbb8] sm:$0xff] }
 0x36a   : > { %4979 = vmatpush1.bf16.msra.mxu1 %v4978_v3  ;;  %4789 = vmatprep.subr.bf16.mxu0 %v4788_v4  ;;  %v1177_v3 = vld [vmem:[%s6992_s1 + $0x7b0] sm:$0xff]  ;;  %v5000_v4 = vpack.c.bf16 %v1186_v61, %v1178_v60  ;;  %v4810_v10 = vpack.c.bf16 %v1183_v2, %v1175_v1  ;;  %v5018_v61 = vpack.c.bf16 %v1249_v55, %v1241_v53  ;;  %v1314_v31 = vld [vmem:[%s6992_s1 + $0xbf8] sm:$0xff]  ;;  %v1344_v53 = vld [vmem:[%s6992_s1 + $0xce8] sm:$0xff] }
 0x36b   : > { %4981 = vmatprep.subr.bf16.mxu1 %v4980_v8  ;;  %v1194_v8 = vld [vmem:[%s6992_s1 + $0x838] sm:$0xff]  ;;  %v5002_v11 = vpack.c.bf16 %v1185_v5, %v1177_v3  ;;  %v1257_v1 = vld [vmem:[%s6992_s1 + $0xa30] sm:$0xff]  ;;  %v5020_v2 = vpack.c.bf16 %v1266_v59, %v1258_v58  ;;  %v1280_v5 = vld [vmem:[%s6992_s1 + $0xae8] sm:$0xff] }
 0x36c   : > { %v1265_v3 = vld [vmem:[%s6992_s1 + $0xa70] sm:$0xff]  ;;  %v1346_v55 = vld [vmem:[%s6992_s1 + $0xcf8] sm:$0xff]  ;;  %v1335_v59 = vld [vmem:[%s6992_s1 + $0xca0] sm:$0xff] }
 0x36d   : > { %4791 = vmatpush1.bf16.msra.mxu0 %v4790_v14  ;;  %v1199_v14 = vld [vmem:[%s6992_s1 + $0x860] sm:$0xff] }
 0x36e   : > { %4983 = vmatpush1.bf16.msra.mxu1 %v4982_v15  ;;  %4793 = vmatprep.subr.bf16.mxu0 %v4792_v16  ;;  %v1193_v15 = vld [vmem:[%s6992_s1 + $0x830] sm:$0xff]  ;;  %v5004_v16 = vpack.c.bf16 %v1202_v9, %v1194_v8  ;;  %v4814_v22 = vpack.c.bf16 %v1199_v14, %v1191_v13  ;;  %v5022_v9 = vpack.c.bf16 %v1265_v3, %v1257_v1  ;;  %v1360_v1 = vld [vmem:[%s6992_s1 + $0xd68] sm:$0xff]  ;;  %v1362_v3 = vld [vmem:[%s6992_s1 + $0xd78] sm:$0xff] }
 0x36f   : > { %4985 = vmatprep.subr.bf16.mxu1 %v4984_v20  ;;  %v1210_v20 = vld [vmem:[%s6992_s1 + $0x8b8] sm:$0xff]  ;;  %v5006_v23 = vpack.c.bf16 %v1201_v17, %v1193_v15  ;;  %v1273_v13 = vld [vmem:[%s6992_s1 + $0xab0] sm:$0xff]  ;;  %v5024_v14 = vpack.c.bf16 %v1282_v7, %v1274_v6  ;;  %v1296_v17 = vld [vmem:[%s6992_s1 + $0xb68] sm:$0xff] }
 0x370   : > { %v1281_v15 = vld [vmem:[%s6992_s1 + $0xaf0] sm:$0xff]  ;;  %v1351_v7 = vld [vmem:[%s6992_s1 + $0xd20] sm:$0xff] }
 0x371   : > { %4795 = vmatpush1.bf16.msra.mxu0 %v4794_v26  ;;  %v1215_v26 = vld [vmem:[%s6992_s1 + $0x8e0] sm:$0xff] }
 0x372   : > { %4987 = vmatpush1.bf16.msra.mxu1 %v4986_v27  ;;  %4797 = vmatprep.subr.bf16.mxu0 %v4796_v28  ;;  %v1209_v27 = vld [vmem:[%s6992_s1 + $0x8b0] sm:$0xff]  ;;  %v5008_v28 = vpack.c.bf16 %v1218_v21, %v1210_v20  ;;  %v4818_v35 = vpack.c.bf16 %v1215_v26, %v1207_v25  ;;  %v5026_v21 = vpack.c.bf16 %v1281_v15, %v1273_v13  ;;  %v1376_v13 = vld [vmem:[%s6992_s1 + $0xde8] sm:$0xff]  ;;  %v1378_v15 = vld [vmem:[%s6992_s1 + $0xdf8] sm:$0xff] }
 0x373   : > { %4989 = vmatprep.subr.bf16.mxu1 %v4988_v32  ;;  %v5601_v32 = vld [vmem:[%s6966_s23] sm:$0xff]  ;;  %v5010_v36 = vpack.c.bf16 %v1217_v29, %v1209_v27  ;;  %v5028_v26 = vpack.c.bf16 %v1298_v19, %v1290_v18 }
 0x374   : > { %v1289_v25 = vld [vmem:[%s6992_s1 + $0xb30] sm:$0xff]  ;;  %v1312_v29 = vld [vmem:[%s6992_s1 + $0xbe8] sm:$0xff]  ;;  %v1367_v19 = vld [vmem:[%s6992_s1 + $0xda0] sm:$0xff] }
 0x375   : > { %4799 = vmatpush1.bf16.msra.mxu0 %v4798_v38  ;;  %v1223_v38 = vld [vmem:[%s6992_s1 + $0x920] sm:$0xff]  ;;  %v1297_v27 = vld [vmem:[%s6992_s1 + $0xb70] sm:$0xff] }
 0x376   : > { %4991 = vmatpush1.bf16.msra.mxu1 %v4990_v39  ;;  %4801 = vmatprep.subr.bf16.mxu0 %v4800_v40  ;;  %v1231_v39 = vld [vmem:[%s6992_s1 + $0x960] sm:$0xff]  ;;  %v1225_v40 = vld [vmem:[%s6992_s1 + $0x930] sm:$0xff]  ;;  %v5030_v33 = vpack.c.bf16 %v1297_v27, %v1289_v25  ;;  %v1392_v25 = vld [vmem:[%s6992_s1 + $0xe68] sm:$0xff] }
 0x377   : > { %4993 = vmatprep.subr.bf16.mxu1 %v4992_v44  ;;  %v1248_v44 = vld [vmem:[%s6992_s1 + $0x9e8] sm:$0xff]  ;;  %v4822_v48 = vpack.c.bf16 %v1231_v39, %v1223_v38  ;;  %v5014_v49 = vpack.c.bf16 %v1233_v42, %v1225_v40  ;;  %v5032_v38 = vpack.c.bf16 %v1314_v31, %v1306_v30  ;;  %v1313_v39 = vld [vmem:[%s6992_s1 + $0xbf0] sm:$0xff]  ;;  %v1322_v42 = vld [vmem:[%s6992_s1 + $0xc38] sm:$0xff] }
 0x378   : > { %v1320_v40 = vld [vmem:[%s6992_s1 + $0xc28] sm:$0xff]  ;;  %v1394_v27 = vld [vmem:[%s6992_s1 + $0xe78] sm:$0xff]  ;;  %v1383_v31 = vld [vmem:[%s6992_s1 + $0xe20] sm:$0xff] }
 0x379   : > { %4803 = vmatpush1.bf16.msra.mxu0 %v4802_v50  ;;  %v4824_v50 = vpack.c.bf16 %v1248_v44, %v1240_v43  ;;  %v1330_v43 = vld [vmem:[%s6992_s1 + $0xc78] sm:$0xff] }
 0x37a   : > { %4995 = vmatpush1.bf16.msra.mxu1 %v4994_v51  ;;  %4805 = vmatprep.subr.bf16.mxu0 %v4804_v52  ;;  %v1239_v51 = vld [vmem:[%s6992_s1 + $0x9a0] sm:$0xff] }
 0x37b   : > { %4997 = vmatprep.subr.bf16.mxu1 %v4996_v56  ;;  %v1247_v52 = vld [vmem:[%s6992_s1 + $0x9e0] sm:$0xff]  ;;  %v1256_v56 = vld [vmem:[%s6992_s1 + $0xa28] sm:$0xff] }
 0x37c   : > { %v4826_v60 = vpack.c.bf16 %v1247_v52, %v1239_v51  ;;  %v1329_v51 = vld [vmem:[%s6992_s1 + $0xc70] sm:$0xff]  ;;  %v1336_v52 = vld [vmem:[%s6992_s1 + $0xca8] sm:$0xff] }
 0x37d   : > { %4807 = vmatpush1.bf16.msra.mxu0 %v4806_v62  ;;  %v4828_v62 = vpack.c.bf16 %v1264_v57, %v1256_v56  ;;  %v4848_v58 = vpack.c.bf16 %v1344_v53, %v1336_v52 }
 0x37e   : > { %4999 = vmatpush1.bf16.msra.mxu1 %v4998_v63  ;;  %4809 = vmatprep.subr.bf16.mxu0 %v4808_v0  ;;  %v1255_v63 = vld [vmem:[%s6992_s1 + $0xa20] sm:$0xff] }
 0x37f   : > { %5001 = vmatprep.subr.bf16.mxu1 %v5000_v4  ;;  %v1263_v0 = vld [vmem:[%s6992_s1 + $0xa60] sm:$0xff]  ;;  %v1272_v4 = vld [vmem:[%s6992_s1 + $0xaa8] sm:$0xff] }
 0x380   : > { %v4830_v8 = vpack.c.bf16 %v1263_v0, %v1255_v63  ;;  %v1345_v63 = vld [vmem:[%s6992_s1 + $0xcf0] sm:$0xff]  ;;  %v1352_v0 = vld [vmem:[%s6992_s1 + $0xd28] sm:$0xff] }
 0x381   : > { %4811 = vmatpush1.bf16.msra.mxu0 %v4810_v10  ;;  %v4832_v10 = vpack.c.bf16 %v1280_v5, %v1272_v4  ;;  %v4852_v6 = vpack.c.bf16 %v1360_v1, %v1352_v0 }
 0x382   : > { %5003 = vmatpush1.bf16.msra.mxu1 %v5002_v11  ;;  %4813 = vmatprep.subr.bf16.mxu0 %v4812_v12  ;;  %v1271_v11 = vld [vmem:[%s6992_s1 + $0xaa0] sm:$0xff] }
 0x383   : > { %5005 = vmatprep.subr.bf16.mxu1 %v5004_v16  ;;  %v1279_v12 = vld [vmem:[%s6992_s1 + $0xae0] sm:$0xff]  ;;  %v1288_v16 = vld [vmem:[%s6992_s1 + $0xb28] sm:$0xff] }
 0x384   : > { %2190 = vmatmul.mubr.f32.vlgmr.msra.gmra.mrb[2].mxu0 %v5601_v32  ;;  %v4834_v20 = vpack.c.bf16 %v1279_v12, %v1271_v11  ;;  %v1361_v11 = vld [vmem:[%s6992_s1 + $0xd70] sm:$0xff]  ;;  %v1368_v12 = vld [vmem:[%s6992_s1 + $0xda8] sm:$0xff] }
 0x385   : > { %4815 = vmatpush1.bf16.msra.mxu0 %v4814_v22  ;;  %2403 = vmatmul.mubr.f32.vlgmr.msra.gmra.mrb[2].mxu1 %v5601_v32  ;;  %v4836_v22 = vpack.c.bf16 %v1296_v17, %v1288_v16  ;;  %v4856_v18 = vpack.c.bf16 %v1376_v13, %v1368_v12 }
 0x386   : > { %5007 = vmatpush1.bf16.msra.mxu1 %v5006_v23  ;;  %4817 = vmatprep.subr.bf16.mxu0 %v4816_v24  ;;  %v1287_v23 = vld [vmem:[%s6992_s1 + $0xb20] sm:$0xff] }
 0x387   : > { %5009 = vmatprep.subr.bf16.mxu1 %v5008_v28  ;;  %2260 = vmatprep.mubr.f32.mxu0 %v5602_v45  ;;  %v1295_v24 = vld [vmem:[%s6992_s1 + $0xb60] sm:$0xff]  ;;  %v1304_v28 = vld [vmem:[%s6992_s1 + $0xba8] sm:$0xff] }
 0x388   : > { %2473 = vmatprep.mubr.f32.mxu1 %v5602_v45  ;;  %v4838_v32 = vpack.c.bf16 %v1295_v24, %v1287_v23  ;;  %v4840_v34 = vpack.c.bf16 %v1312_v29, %v1304_v28  ;;  %v1377_v23 = vld [vmem:[%s6992_s1 + $0xdf0] sm:$0xff]  ;;  %v1384_v24 = vld [vmem:[%s6992_s1 + $0xe28] sm:$0xff] }
 0x389   : > { %4819 = vmatpush1.bf16.msra.mxu0 %v4818_v35  ;;  %v1303_v35 = vld [vmem:[%s6992_s1 + $0xba0] sm:$0xff]  ;;  %v4860_v30 = vpack.c.bf16 %v1392_v25, %v1384_v24 }
 0x38a   : > { %5011 = vmatpush1.bf16.msra.mxu1 %v5010_v36  ;;  %4821 = vmatprep.subr.bf16.mxu0 %v4820_v37  ;;  %v1311_v36 = vld [vmem:[%s6992_s1 + $0xbe0] sm:$0xff]  ;;  %v1305_v37 = vld [vmem:[%s6992_s1 + $0xbb0] sm:$0xff] }
 0x38b   : > { %5013 = vmatprep.subr.bf16.mxu1 %v5012_v41  ;;  %v1328_v41 = vld [vmem:[%s6992_s1 + $0xc68] sm:$0xff]  ;;  %v4842_v44 = vpack.c.bf16 %v1311_v36, %v1303_v35  ;;  %v5034_v45 = vpack.c.bf16 %v1313_v39, %v1305_v37  ;;  %v1393_v35 = vld [vmem:[%s6992_s1 + $0xe70] sm:$0xff]  ;;  %v1410_v39 = vld [vmem:[%s6992_s1 + $0xef8] sm:$0xff] }
 0x38c   : > { %v4844_v46 = vpack.c.bf16 %v1328_v41, %v1320_v40  ;;  %v1400_v36 = vld [vmem:[%s6992_s1 + $0xea8] sm:$0xff] }
 0x38d   : > { %4823 = vmatpush1.bf16.msra.mxu0 %v4822_v48  ;;  %v1327_v48 = vld [vmem:[%s6992_s1 + $0xc60] sm:$0xff]  ;;  %v1408_v37 = vld [vmem:[%s6992_s1 + $0xee8] sm:$0xff] }
 0x38e   : > { %5015 = vmatpush1.bf16.msra.mxu1 %v5014_v49  ;;  %4825 = vmatprep.subr.bf16.mxu0 %v4824_v50  ;;  %v1321_v49 = vld [vmem:[%s6992_s1 + $0xc30] sm:$0xff]  ;;  %v5036_v50 = vpack.c.bf16 %v1330_v43, %v1322_v42  ;;  %v4846_v56 = vpack.c.bf16 %v1327_v48, %v1319_v47  ;;  %v4864_v42 = vpack.c.bf16 %v1408_v37, %v1400_v36  ;;  %v1399_v43 = vld [vmem:[%s6992_s1 + $0xea0] sm:$0xff]  ;;  %v1416_v48 = vld [vmem:[%s6992_s1 + $0xf28] sm:$0xff] }
 0x38f   : > { %5017 = vmatprep.subr.bf16.mxu1 %v5016_v54  ;;  %v1338_v54 = vld [vmem:[%s6992_s1 + $0xcb8] sm:$0xff]  ;;  %v5038_v57 = vpack.c.bf16 %v1329_v51, %v1321_v49  ;;  %v1409_v47 = vld [vmem:[%s6992_s1 + $0xef0] sm:$0xff]  ;;  %v1424_v49 = vld [vmem:[%s6992_s1 + $0xf68] sm:$0xff] }
 0x390   : > { %v1426_v51 = vld [vmem:[%s6992_s1 + $0xf78] sm:$0xff] }
 0x391   : > { %4827 = vmatpush1.bf16.msra.mxu0 %v4826_v60  ;;  %v1343_v60 = vld [vmem:[%s6992_s1 + $0xce0] sm:$0xff]  ;;  %v1490_v36 = vld [vmem:[%s6992_s1 + $0x1178] sm:$0xff] }
 0x392   : > { %5019 = vmatpush1.bf16.msra.mxu1 %v5018_v61  ;;  %4829 = vmatprep.subr.bf16.mxu0 %v4828_v62  ;;  %v1337_v61 = vld [vmem:[%s6992_s1 + $0xcb0] sm:$0xff]  ;;  %v5040_v62 = vpack.c.bf16 %v1346_v55, %v1338_v54  ;;  %v4850_v4 = vpack.c.bf16 %v1343_v60, %v1335_v59  ;;  %v4868_v54 = vpack.c.bf16 %v1424_v49, %v1416_v48  ;;  %v1415_v55 = vld [vmem:[%s6992_s1 + $0xf20] sm:$0xff]  ;;  %v1432_v60 = vld [vmem:[%s6992_s1 + $0xfa8] sm:$0xff] }
 0x393   : > { %5021 = vmatprep.subr.bf16.mxu1 %v5020_v2  ;;  %v1354_v2 = vld [vmem:[%s6992_s1 + $0xd38] sm:$0xff]  ;;  %v5042_v5 = vpack.c.bf16 %v1345_v63, %v1337_v61  ;;  %v1425_v59 = vld [vmem:[%s6992_s1 + $0xf70] sm:$0xff]  ;;  %v1440_v61 = vld [vmem:[%s6992_s1 + $0xfe8] sm:$0xff] }
 0x394   : > { %v1442_v63 = vld [vmem:[%s6992_s1 + $0xff8] sm:$0xff] }
 0x395   : > { %4831 = vmatpush1.bf16.msra.mxu0 %v4830_v8  ;;  %v1359_v8 = vld [vmem:[%s6992_s1 + $0xd60] sm:$0xff]  ;;  %v1498_v48 = vld [vmem:[%s6992_s1 + $0x11b8] sm:$0xff] }
 0x396   : > { %5023 = vmatpush1.bf16.msra.mxu1 %v5022_v9  ;;  %4833 = vmatprep.subr.bf16.mxu0 %v4832_v10  ;;  %v1353_v9 = vld [vmem:[%s6992_s1 + $0xd30] sm:$0xff]  ;;  %v5044_v10 = vpack.c.bf16 %v1362_v3, %v1354_v2  ;;  %v4854_v16 = vpack.c.bf16 %v1359_v8, %v1351_v7  ;;  %v4872_v2 = vpack.c.bf16 %v1440_v61, %v1432_v60  ;;  %v1431_v3 = vld [vmem:[%s6992_s1 + $0xfa0] sm:$0xff]  ;;  %v1448_v8 = vld [vmem:[%s6992_s1 + $0x1028] sm:$0xff] }
 0x397   : > { %5025 = vmatprep.subr.bf16.mxu1 %v5024_v14  ;;  %v1370_v14 = vld [vmem:[%s6992_s1 + $0xdb8] sm:$0xff]  ;;  %v5046_v17 = vpack.c.bf16 %v1361_v11, %v1353_v9  ;;  %v1441_v7 = vld [vmem:[%s6992_s1 + $0xff0] sm:$0xff]  ;;  %v1456_v9 = vld [vmem:[%s6992_s1 + $0x1068] sm:$0xff] }
 0x398   : > { %v1458_v11 = vld [vmem:[%s6992_s1 + $0x1078] sm:$0xff] }
 0x399   : > { %4835 = vmatpush1.bf16.msra.mxu0 %v4834_v20  ;;  %v1375_v20 = vld [vmem:[%s6992_s1 + $0xde0] sm:$0xff]  ;;  %v1506_v49 = vld [vmem:[%s6992_s1 + $0x11f8] sm:$0xff] }
 0x39a   : > { %5027 = vmatpush1.bf16.msra.mxu1 %v5026_v21  ;;  %4837 = vmatprep.subr.bf16.mxu0 %v4836_v22  ;;  %v1369_v21 = vld [vmem:[%s6992_s1 + $0xdb0] sm:$0xff]  ;;  %v5048_v22 = vpack.c.bf16 %v1378_v15, %v1370_v14  ;;  %v4858_v28 = vpack.c.bf16 %v1375_v20, %v1367_v19  ;;  %v4876_v14 = vpack.c.bf16 %v1456_v9, %v1448_v8  ;;  %v1447_v15 = vld [vmem:[%s6992_s1 + $0x1020] sm:$0xff]  ;;  %v1464_v20 = vld [vmem:[%s6992_s1 + $0x10a8] sm:$0xff] }
 0x39b   : > { %5029 = vmatprep.subr.bf16.mxu1 %v5028_v26  ;;  %v1386_v26 = vld [vmem:[%s6992_s1 + $0xe38] sm:$0xff]  ;;  %v5050_v29 = vpack.c.bf16 %v1377_v23, %v1369_v21  ;;  %v1457_v19 = vld [vmem:[%s6992_s1 + $0x1070] sm:$0xff]  ;;  %v1472_v21 = vld [vmem:[%s6992_s1 + $0x10e8] sm:$0xff] }
 0x39c   : > { %v1474_v23 = vld [vmem:[%s6992_s1 + $0x10f8] sm:$0xff] }
 0x39d   : > { %4839 = vmatpush1.bf16.msra.mxu0 %v4838_v32  ;;  %v1391_v32 = vld [vmem:[%s6992_s1 + $0xe60] sm:$0xff]  ;;  %v1514_v60 = vld [vmem:[%s6992_s1 + $0x1238] sm:$0xff] }
 0x39e   : > { %5031 = vmatpush1.bf16.msra.mxu1 %v5030_v33  ;;  %4841 = vmatprep.subr.bf16.mxu0 %v4840_v34  ;;  %v1385_v33 = vld [vmem:[%s6992_s1 + $0xe30] sm:$0xff]  ;;  %v5052_v34 = vpack.c.bf16 %v1394_v27, %v1386_v26  ;;  %v4862_v40 = vpack.c.bf16 %v1391_v32, %v1383_v31  ;;  %v4880_v26 = vpack.c.bf16 %v1472_v21, %v1464_v20  ;;  %v1463_v27 = vld [vmem:[%s6992_s1 + $0x10a0] sm:$0xff]  ;;  %v1480_v32 = vld [vmem:[%s6992_s1 + $0x1128] sm:$0xff] }
 0x39f   : > { %5033 = vmatprep.subr.bf16.mxu1 %v5032_v38  ;;  %v1402_v38 = vld [vmem:[%s6992_s1 + $0xeb8] sm:$0xff]  ;;  %v5054_v41 = vpack.c.bf16 %v1393_v35, %v1385_v33  ;;  %v1473_v31 = vld [vmem:[%s6992_s1 + $0x10f0] sm:$0xff]  ;;  %v1488_v33 = vld [vmem:[%s6992_s1 + $0x1168] sm:$0xff] }
 0x3a0   : > { %v1482_v35 = vld [vmem:[%s6992_s1 + $0x1138] sm:$0xff] }
 0x3a1   : > { %4843 = vmatpush1.bf16.msra.mxu0 %v4842_v44  ;;  %v1407_v44 = vld [vmem:[%s6992_s1 + $0xee0] sm:$0xff]  ;;  %v1522_v61 = vld [vmem:[%s6992_s1 + $0x1278] sm:$0xff] }
 0x3a2   : > { %5035 = vmatpush1.bf16.msra.mxu1 %v5034_v45  ;;  %4845 = vmatprep.subr.bf16.mxu0 %v4844_v46  ;;  %v1401_v45 = vld [vmem:[%s6992_s1 + $0xeb0] sm:$0xff]  ;;  %v5056_v46 = vpack.c.bf16 %v1410_v39, %v1402_v38  ;;  %v4866_v52 = vpack.c.bf16 %v1407_v44, %v1399_v43  ;;  %v4884_v39 = vpack.c.bf16 %v1488_v33, %v1480_v32  ;;  %v1530_v8 = vld [vmem:[%s6992_s1 + $0x12b8] sm:$0xff] }
 0x3a3   : > { %5037 = vmatprep.subr.bf16.mxu1 %v5036_v50  ;;  %v1418_v50 = vld [vmem:[%s6992_s1 + $0xf38] sm:$0xff]  ;;  %v5058_v53 = vpack.c.bf16 %v1409_v47, %v1401_v45  ;;  %v5076_v43 = vpack.c.bf16 %v1490_v36, %v1482_v35  ;;  %v1489_v44 = vld [vmem:[%s6992_s1 + $0x1170] sm:$0xff]  ;;  %v1496_v45 = vld [vmem:[%s6992_s1 + $0x11a8] sm:$0xff] }
 0x3a4   : > { %v5604_v47 = vld [vmem:[%s6966_s23 + $0x28] sm:$0xff] }
 0x3a5   : > { %4847 = vmatpush1.bf16.msra.mxu0 %v4846_v56  ;;  %v1423_v56 = vld [vmem:[%s6992_s1 + $0xf60] sm:$0xff]  ;;  %v1538_v9 = vld [vmem:[%s6992_s1 + $0x12f8] sm:$0xff] }
 0x3a6   : > { %5039 = vmatpush1.bf16.msra.mxu1 %v5038_v57  ;;  %4849 = vmatprep.subr.bf16.mxu0 %v4848_v58  ;;  %v1417_v57 = vld [vmem:[%s6992_s1 + $0xf30] sm:$0xff]  ;;  %v5060_v58 = vpack.c.bf16 %v1426_v51, %v1418_v50  ;;  %v4870_v0 = vpack.c.bf16 %v1423_v56, %v1415_v55  ;;  %v5080_v56 = vpack.c.bf16 %v1506_v49, %v1498_v48  ;;  %v1546_v20 = vld [vmem:[%s6992_s1 + $0x1338] sm:$0xff]  ;;  %v1575_v49 = vld [vmem:[%s6992_s1 + $0x1420] sm:$0xff] }
 0x3a7   : > { %5041 = vmatprep.subr.bf16.mxu1 %v5040_v62  ;;  %v1434_v62 = vld [vmem:[%s6992_s1 + $0xfb8] sm:$0xff]  ;;  %v5062_v1 = vpack.c.bf16 %v1425_v59, %v1417_v57  ;;  %v1497_v55 = vld [vmem:[%s6992_s1 + $0x11b0] sm:$0xff]  ;;  %v1520_v59 = vld [vmem:[%s6992_s1 + $0x1268] sm:$0xff] }
 0x3a8   : > { %v1505_v57 = vld [vmem:[%s6992_s1 + $0x11f0] sm:$0xff]  ;;  %v1554_v21 = vld [vmem:[%s6992_s1 + $0x1378] sm:$0xff] }
 0x3a9   : > { %4851 = vmatpush1.bf16.msra.mxu0 %v4850_v4  ;;  %v1439_v4 = vld [vmem:[%s6992_s1 + $0xfe0] sm:$0xff]  ;;  %v1562_v32 = vld [vmem:[%s6992_s1 + $0x13b8] sm:$0xff] }
 0x3aa   : > { %5043 = vmatpush1.bf16.msra.mxu1 %v5042_v5  ;;  %4853 = vmatprep.subr.bf16.mxu0 %v4852_v6  ;;  %v1433_v5 = vld [vmem:[%s6992_s1 + $0xfb0] sm:$0xff]  ;;  %v5064_v6 = vpack.c.bf16 %v1442_v63, %v1434_v62  ;;  %v4874_v12 = vpack.c.bf16 %v1439_v4, %v1431_v3  ;;  %v5082_v63 = vpack.c.bf16 %v1505_v57, %v1497_v55  ;;  %v1570_v33 = vld [vmem:[%s6992_s1 + $0x13f8] sm:$0xff]  ;;  %v1600_v55 = vld [vmem:[%s6992_s1 + $0x14e8] sm:$0xff] }
 0x3ab   : > { %5045 = vmatprep.subr.bf16.mxu1 %v5044_v10  ;;  %v1450_v10 = vld [vmem:[%s6992_s1 + $0x1038] sm:$0xff]  ;;  %v5066_v13 = vpack.c.bf16 %v1441_v7, %v1433_v5  ;;  %v1513_v3 = vld [vmem:[%s6992_s1 + $0x1230] sm:$0xff]  ;;  %v5084_v4 = vpack.c.bf16 %v1522_v61, %v1514_v60  ;;  %v1536_v7 = vld [vmem:[%s6992_s1 + $0x12e8] sm:$0xff] }
 0x3ac   : > { %v1521_v5 = vld [vmem:[%s6992_s1 + $0x1270] sm:$0xff]  ;;  %v1602_v57 = vld [vmem:[%s6992_s1 + $0x14f8] sm:$0xff]  ;;  %v1591_v61 = vld [vmem:[%s6992_s1 + $0x14a0] sm:$0xff] }
 0x3ad   : > { %4855 = vmatpush1.bf16.msra.mxu0 %v4854_v16  ;;  %v1455_v16 = vld [vmem:[%s6992_s1 + $0x1060] sm:$0xff] }
 0x3ae   : > { %5047 = vmatpush1.bf16.msra.mxu1 %v5046_v17  ;;  %4857 = vmatprep.subr.bf16.mxu0 %v4856_v18  ;;  %v1449_v17 = vld [vmem:[%s6992_s1 + $0x1030] sm:$0xff]  ;;  %v5068_v18 = vpack.c.bf16 %v1458_v11, %v1450_v10  ;;  %v4878_v24 = vpack.c.bf16 %v1455_v16, %v1447_v15  ;;  %v5086_v11 = vpack.c.bf16 %v1521_v5, %v1513_v3  ;;  %v1616_v3 = vld [vmem:[%s6992_s1 + $0x1568] sm:$0xff]  ;;  %v1618_v5 = vld [vmem:[%s6992_s1 + $0x1578] sm:$0xff] }
 0x3af   : > { %5049 = vmatprep.subr.bf16.mxu1 %v5048_v22  ;;  %v1466_v22 = vld [vmem:[%s6992_s1 + $0x10b8] sm:$0xff]  ;;  %v5070_v25 = vpack.c.bf16 %v1457_v19, %v1449_v17  ;;  %v1529_v15 = vld [vmem:[%s6992_s1 + $0x12b0] sm:$0xff]  ;;  %v5088_v16 = vpack.c.bf16 %v1538_v9, %v1530_v8  ;;  %v1552_v19 = vld [vmem:[%s6992_s1 + $0x1368] sm:$0xff] }
 0x3b0   : > { %v1537_v17 = vld [vmem:[%s6992_s1 + $0x12f0] sm:$0xff]  ;;  %v1607_v9 = vld [vmem:[%s6992_s1 + $0x1520] sm:$0xff] }
 0x3b1   : > { %4859 = vmatpush1.bf16.msra.mxu0 %v4858_v28  ;;  %v1471_v28 = vld [vmem:[%s6992_s1 + $0x10e0] sm:$0xff] }
 0x3b2   : > { %5051 = vmatpush1.bf16.msra.mxu1 %v5050_v29  ;;  %4861 = vmatprep.subr.bf16.mxu0 %v4860_v30  ;;  %v1465_v29 = vld [vmem:[%s6992_s1 + $0x10b0] sm:$0xff]  ;;  %v5072_v30 = vpack.c.bf16 %v1474_v23, %v1466_v22  ;;  %v4882_v37 = vpack.c.bf16 %v1471_v28, %v1463_v27  ;;  %v5090_v23 = vpack.c.bf16 %v1537_v17, %v1529_v15  ;;  %v1632_v15 = vld [vmem:[%s6992_s1 + $0x15e8] sm:$0xff]  ;;  %v1634_v17 = vld [vmem:[%s6992_s1 + $0x15f8] sm:$0xff] }
 0x3b3   : > { %5053 = vmatprep.subr.bf16.mxu1 %v5052_v34  ;;  %v5603_v34 = vld [vmem:[%s6966_s23 + $0x10] sm:$0xff]  ;;  %v5074_v38 = vpack.c.bf16 %v1473_v31, %v1465_v29  ;;  %v5092_v28 = vpack.c.bf16 %v1554_v21, %v1546_v20 }
 0x3b4   : > { %v1545_v27 = vld [vmem:[%s6992_s1 + $0x1330] sm:$0xff]  ;;  %v1568_v31 = vld [vmem:[%s6992_s1 + $0x13e8] sm:$0xff]  ;;  %v1623_v21 = vld [vmem:[%s6992_s1 + $0x15a0] sm:$0xff] }
 0x3b5   : > { %4863 = vmatpush1.bf16.msra.mxu0 %v4862_v40  ;;  %v1479_v40 = vld [vmem:[%s6992_s1 + $0x1120] sm:$0xff]  ;;  %v1553_v29 = vld [vmem:[%s6992_s1 + $0x1370] sm:$0xff] }
 0x3b6   : > { %5055 = vmatpush1.bf16.msra.mxu1 %v5054_v41  ;;  %4865 = vmatprep.subr.bf16.mxu0 %v4864_v42  ;;  %v1487_v41 = vld [vmem:[%s6992_s1 + $0x1160] sm:$0xff]  ;;  %v1481_v42 = vld [vmem:[%s6992_s1 + $0x1130] sm:$0xff]  ;;  %v5094_v35 = vpack.c.bf16 %v1553_v29, %v1545_v27  ;;  %v1648_v27 = vld [vmem:[%s6992_s1 + $0x1668] sm:$0xff] }
 0x3b7   : > { %5057 = vmatprep.subr.bf16.mxu1 %v5056_v46  ;;  %v1504_v46 = vld [vmem:[%s6992_s1 + $0x11e8] sm:$0xff]  ;;  %v4886_v50 = vpack.c.bf16 %v1487_v41, %v1479_v40  ;;  %v5078_v51 = vpack.c.bf16 %v1489_v44, %v1481_v42  ;;  %v5096_v40 = vpack.c.bf16 %v1570_v33, %v1562_v32  ;;  %v1569_v41 = vld [vmem:[%s6992_s1 + $0x13f0] sm:$0xff]  ;;  %v1578_v44 = vld [vmem:[%s6992_s1 + $0x1438] sm:$0xff] }
 0x3b8   : > { %v1576_v42 = vld [vmem:[%s6992_s1 + $0x1428] sm:$0xff]  ;;  %v1650_v29 = vld [vmem:[%s6992_s1 + $0x1678] sm:$0xff]  ;;  %v1639_v33 = vld [vmem:[%s6992_s1 + $0x1620] sm:$0xff] }
 0x3b9   : > { %4867 = vmatpush1.bf16.msra.mxu0 %v4866_v52  ;;  %v4888_v52 = vpack.c.bf16 %v1504_v46, %v1496_v45  ;;  %v1586_v45 = vld [vmem:[%s6992_s1 + $0x1478] sm:$0xff] }
 0x3ba   : > { %5059 = vmatpush1.bf16.msra.mxu1 %v5058_v53  ;;  %4869 = vmatprep.subr.bf16.mxu0 %v4868_v54  ;;  %v1495_v53 = vld [vmem:[%s6992_s1 + $0x11a0] sm:$0xff] }
 0x3bb   : > { %5061 = vmatprep.subr.bf16.mxu1 %v5060_v58  ;;  %v1503_v54 = vld [vmem:[%s6992_s1 + $0x11e0] sm:$0xff]  ;;  %v1512_v58 = vld [vmem:[%s6992_s1 + $0x1228] sm:$0xff] }
 0x3bc   : > { %v4890_v62 = vpack.c.bf16 %v1503_v54, %v1495_v53  ;;  %v1585_v53 = vld [vmem:[%s6992_s1 + $0x1470] sm:$0xff]  ;;  %v1592_v54 = vld [vmem:[%s6992_s1 + $0x14a8] sm:$0xff] }
 0x3bd   : > { %4871 = vmatpush1.bf16.msra.mxu0 %v4870_v0  ;;  %v4892_v0 = vpack.c.bf16 %v1520_v59, %v1512_v58  ;;  %v4912_v60 = vpack.c.bf16 %v1600_v55, %v1592_v54 }
 0x3be   : > { %5063 = vmatpush1.bf16.msra.mxu1 %v5062_v1  ;;  %4873 = vmatprep.subr.bf16.mxu0 %v4872_v2  ;;  %v1511_v1 = vld [vmem:[%s6992_s1 + $0x1220] sm:$0xff] }
 0x3bf   : > { %5065 = vmatprep.subr.bf16.mxu1 %v5064_v6  ;;  %v1519_v2 = vld [vmem:[%s6992_s1 + $0x1260] sm:$0xff]  ;;  %v1528_v6 = vld [vmem:[%s6992_s1 + $0x12a8] sm:$0xff] }
 0x3c0   : > { %v4894_v10 = vpack.c.bf16 %v1519_v2, %v1511_v1  ;;  %v1601_v1 = vld [vmem:[%s6992_s1 + $0x14f0] sm:$0xff]  ;;  %v1608_v2 = vld [vmem:[%s6992_s1 + $0x1528] sm:$0xff] }
 0x3c1   : > { %4875 = vmatpush1.bf16.msra.mxu0 %v4874_v12  ;;  %v4896_v12 = vpack.c.bf16 %v1536_v7, %v1528_v6  ;;  %v4916_v8 = vpack.c.bf16 %v1616_v3, %v1608_v2 }
 0x3c2   : > { %5067 = vmatpush1.bf16.msra.mxu1 %v5066_v13  ;;  %4877 = vmatprep.subr.bf16.mxu0 %v4876_v14  ;;  %v1527_v13 = vld [vmem:[%s6992_s1 + $0x12a0] sm:$0xff] }
 0x3c3   : > { %5069 = vmatprep.subr.bf16.mxu1 %v5068_v18  ;;  %v1535_v14 = vld [vmem:[%s6992_s1 + $0x12e0] sm:$0xff]  ;;  %v1544_v18 = vld [vmem:[%s6992_s1 + $0x1328] sm:$0xff] }
 0x3c4   : > { %2261 = vmatmul.mubr.f32.vlgmr.msra.gmra.mrb[2].mxu0 %v5603_v34  ;;  %v4898_v22 = vpack.c.bf16 %v1535_v14, %v1527_v13  ;;  %v1617_v13 = vld [vmem:[%s6992_s1 + $0x1570] sm:$0xff]  ;;  %v1624_v14 = vld [vmem:[%s6992_s1 + $0x15a8] sm:$0xff] }
 0x3c5   : > { %4879 = vmatpush1.bf16.msra.mxu0 %v4878_v24  ;;  %2474 = vmatmul.mubr.f32.vlgmr.msra.gmra.mrb[2].mxu1 %v5603_v34  ;;  %v4900_v24 = vpack.c.bf16 %v1552_v19, %v1544_v18  ;;  %v4920_v20 = vpack.c.bf16 %v1632_v15, %v1624_v14  ;;  %v919_v14 = vld [vmem:[#allocation2 + $0x10] sm:$0xff]  ;;  %v918_v15 = vld [vmem:[#allocation2 + $0x8] sm:$0xff] }
 0x3c6   : > { %5071 = vmatpush1.bf16.msra.mxu1 %v5070_v25  ;;  %4881 = vmatprep.subr.bf16.mxu0 %v4880_v26  ;;  %v1543_v25 = vld [vmem:[%s6992_s1 + $0x1320] sm:$0xff] }
 0x3c7   : > { %5073 = vmatprep.subr.bf16.mxu1 %v5072_v30  ;;  %2331 = vmatprep.mubr.f32.mxu0 %v5604_v47  ;;  %v1551_v26 = vld [vmem:[%s6992_s1 + $0x1360] sm:$0xff]  ;;  %v1560_v30 = vld [vmem:[%s6992_s1 + $0x13a8] sm:$0xff] }
 0x3c8   : > { %2544 = vmatprep.mubr.f32.mxu1 %v5604_v47  ;;  %v4902_v34 = vpack.c.bf16 %v1551_v26, %v1543_v25  ;;  %v4904_v36 = vpack.c.bf16 %v1568_v31, %v1560_v30  ;;  %v1633_v25 = vld [vmem:[%s6992_s1 + $0x15f0] sm:$0xff]  ;;  %v1640_v26 = vld [vmem:[%s6992_s1 + $0x1628] sm:$0xff] }
 0x3c9   : > { %4883 = vmatpush1.bf16.msra.mxu0 %v4882_v37  ;;  %v1559_v37 = vld [vmem:[%s6992_s1 + $0x13a0] sm:$0xff]  ;;  %v4924_v32 = vpack.c.bf16 %v1648_v27, %v1640_v26  ;;  %v923_v26 = vld [vmem:[#allocation2 + $0x30] sm:$0xff]  ;;  %v922_v27 = vld [vmem:[#allocation2 + $0x28] sm:$0xff] }
 0x3ca   : > { %5075 = vmatpush1.bf16.msra.mxu1 %v5074_v38  ;;  %4885 = vmatprep.subr.bf16.mxu0 %v4884_v39  ;;  %v1567_v38 = vld [vmem:[%s6992_s1 + $0x13e0] sm:$0xff]  ;;  %v1561_v39 = vld [vmem:[%s6992_s1 + $0x13b0] sm:$0xff] }
 0x3cb   : > { %5077 = vmatprep.subr.bf16.mxu1 %v5076_v43  ;;  %v1584_v43 = vld [vmem:[%s6992_s1 + $0x1468] sm:$0xff]  ;;  %v4906_v46 = vpack.c.bf16 %v1567_v38, %v1559_v37  ;;  %v5098_v47 = vpack.c.bf16 %v1569_v41, %v1561_v39  ;;  %v1649_v37 = vld [vmem:[%s6992_s1 + $0x1670] sm:$0xff]  ;;  %v1666_v41 = vld [vmem:[%s6992_s1 + $0x16f8] sm:$0xff] }
 0x3cc   : > { %v4908_v48 = vpack.c.bf16 %v1584_v43, %v1576_v42  ;;  %v1656_v38 = vld [vmem:[%s6992_s1 + $0x16a8] sm:$0xff] }
 0x3cd   : > { %4887 = vmatpush1.bf16.msra.mxu0 %v4886_v50  ;;  %v1583_v50 = vld [vmem:[%s6992_s1 + $0x1460] sm:$0xff]  ;;  %v1664_v39 = vld [vmem:[%s6992_s1 + $0x16e8] sm:$0xff] }
 0x3ce   : > { %5079 = vmatpush1.bf16.msra.mxu1 %v5078_v51  ;;  %4889 = vmatprep.subr.bf16.mxu0 %v4888_v52  ;;  %v1577_v51 = vld [vmem:[%s6992_s1 + $0x1430] sm:$0xff]  ;;  %v5100_v52 = vpack.c.bf16 %v1586_v45, %v1578_v44  ;;  %v4910_v58 = vpack.c.bf16 %v1583_v50, %v1575_v49  ;;  %v4928_v44 = vpack.c.bf16 %v1664_v39, %v1656_v38  ;;  %v1655_v45 = vld [vmem:[%s6992_s1 + $0x16a0] sm:$0xff]  ;;  %v1672_v50 = vld [vmem:[%s6992_s1 + $0x1728] sm:$0xff] }
 0x3cf   : > { %5081 = vmatprep.subr.bf16.mxu1 %v5080_v56  ;;  %v1594_v56 = vld [vmem:[%s6992_s1 + $0x14b8] sm:$0xff]  ;;  %v5102_v59 = vpack.c.bf16 %v1585_v53, %v1577_v51  ;;  %v1665_v49 = vld [vmem:[%s6992_s1 + $0x16f0] sm:$0xff]  ;;  %v1680_v51 = vld [vmem:[%s6992_s1 + $0x1768] sm:$0xff] }
 0x3d0   : > { %v1682_v53 = vld [vmem:[%s6992_s1 + $0x1778] sm:$0xff]  ;;  %v2962_v38 = vld [vmem:[#allocation24 + $0x88] sm:$0xff] (!%p4068_p1) }
 0x3d1   : > { %4891 = vmatpush1.bf16.msra.mxu0 %v4890_v62  ;;  %v1599_v62 = vld [vmem:[%s6992_s1 + $0x14e0] sm:$0xff]  ;;  %v2945_v39 = vld [vmem:[#allocation24] sm:$0xff] (!%p4068_p1) }
 0x3d2   : > { %5083 = vmatpush1.bf16.msra.mxu1 %v5082_v63  ;;  %4893 = vmatprep.subr.bf16.mxu0 %v4892_v0  ;;  %v1593_v63 = vld [vmem:[%s6992_s1 + $0x14b0] sm:$0xff]  ;;  %v5104_v0 = vpack.c.bf16 %v1602_v57, %v1594_v56  ;;  %v4914_v6 = vpack.c.bf16 %v1599_v62, %v1591_v61  ;;  %v4932_v56 = vpack.c.bf16 %v1680_v51, %v1672_v50  ;;  %v1671_v57 = vld [vmem:[%s6992_s1 + $0x1720] sm:$0xff]  ;;  %v1688_v62 = vld [vmem:[%s6992_s1 + $0x17a8] sm:$0xff] }
 0x3d3   : > { %5085 = vmatprep.subr.bf16.mxu1 %v5084_v4  ;;  %v1610_v4 = vld [vmem:[%s6992_s1 + $0x1538] sm:$0xff]  ;;  %v5106_v7 = vpack.c.bf16 %v1601_v1, %v1593_v63  ;;  %v1681_v61 = vld [vmem:[%s6992_s1 + $0x1770] sm:$0xff]  ;;  %v1696_v63 = vld [vmem:[%s6992_s1 + $0x17e8] sm:$0xff] }
 0x3d4   : > { %v1698_v1 = vld [vmem:[%s6992_s1 + $0x17f8] sm:$0xff]  ;;  %v2964_v50 = vld [vmem:[#allocation24 + $0x98] sm:$0xff] (!%p4068_p1)  ;;  %v2947_v51 = vld [vmem:[#allocation24 + $0x10] sm:$0xff] (!%p4068_p1) }
 0x3d5   : > { %4895 = vmatpush1.bf16.msra.mxu0 %v4894_v10  ;;  %v1615_v10 = vld [vmem:[%s6992_s1 + $0x1560] sm:$0xff] }
 0x3d6   : > { %5087 = vmatpush1.bf16.msra.mxu1 %v5086_v11  ;;  %4897 = vmatprep.subr.bf16.mxu0 %v4896_v12  ;;  %v1609_v11 = vld [vmem:[%s6992_s1 + $0x1530] sm:$0xff]  ;;  %v5108_v12 = vpack.c.bf16 %v1618_v5, %v1610_v4  ;;  %v4918_v18 = vpack.c.bf16 %v1615_v10, %v1607_v9  ;;  %v4936_v4 = vpack.c.bf16 %v1696_v63, %v1688_v62  ;;  %v1687_v5 = vld [vmem:[%s6992_s1 + $0x17a0] sm:$0xff] }
 0x3d7   : > { %5089 = vmatprep.subr.bf16.mxu1 %v5088_v16  ;;  %v1626_v16 = vld [vmem:[%s6992_s1 + $0x15b8] sm:$0xff]  ;;  %v5110_v19 = vpack.c.bf16 %v1617_v13, %v1609_v11  ;;  %v1697_v9 = vld [vmem:[%s6992_s1 + $0x17f0] sm:$0xff]  ;;  %v917_v13 = vld [vmem:[#allocation2] sm:$0xff] }
 0x3d9   : > { %4899 = vmatpush1.bf16.msra.mxu0 %v4898_v22  ;;  %v1631_v22 = vld [vmem:[%s6992_s1 + $0x15e0] sm:$0xff] }
 0x3da   : > { %5091 = vmatpush1.bf16.msra.mxu1 %v5090_v23  ;;  %4901 = vmatprep.subr.bf16.mxu0 %v4900_v24  ;;  %v1625_v23 = vld [vmem:[%s6992_s1 + $0x15b0] sm:$0xff]  ;;  %v5112_v24 = vpack.c.bf16 %v1634_v17, %v1626_v16  ;;  %v4922_v30 = vpack.c.bf16 %v1631_v22, %v1623_v21  ;;  %v920_v17 = vld [vmem:[#allocation2 + $0x18] sm:$0xff] }
 0x3db   : > { %5093 = vmatprep.subr.bf16.mxu1 %v5092_v28  ;;  %v1642_v28 = vld [vmem:[%s6992_s1 + $0x1638] sm:$0xff]  ;;  %v5114_v31 = vpack.c.bf16 %v1633_v25, %v1625_v23  ;;  %v921_v25 = vld [vmem:[#allocation2 + $0x20] sm:$0xff] }
 0x3dd   : > { %4903 = vmatpush1.bf16.msra.mxu0 %v4902_v34  ;;  %v1647_v34 = vld [vmem:[%s6992_s1 + $0x1660] sm:$0xff] }
 0x3de   : > { %5095 = vmatpush1.bf16.msra.mxu1 %v5094_v35  ;;  %4905 = vmatprep.subr.bf16.mxu0 %v4904_v36  ;;  %v1641_v35 = vld [vmem:[%s6992_s1 + $0x1630] sm:$0xff]  ;;  %v5116_v36 = vpack.c.bf16 %v1650_v29, %v1642_v28  ;;  %v4926_v42 = vpack.c.bf16 %v1647_v34, %v1639_v33  ;;  %v924_v29 = vld [vmem:[#allocation2 + $0x38] sm:$0xff] }
 0x3df   : > { %5097 = vmatprep.subr.bf16.mxu1 %v5096_v40  ;;  %v1658_v40 = vld [vmem:[%s6992_s1 + $0x16b8] sm:$0xff]  ;;  %v5118_v43 = vpack.c.bf16 %v1649_v37, %v1641_v35 }
 0x3e0   : > { %v2961_v37 = vld [vmem:[#allocation24 + $0x80] sm:$0xff] (!%p4068_p1) }
 0x3e1   : > { %4907 = vmatpush1.bf16.msra.mxu0 %v4906_v46  ;;  %v1663_v46 = vld [vmem:[%s6992_s1 + $0x16e0] sm:$0xff] }
 0x3e2   : > { %5099 = vmatpush1.bf16.msra.mxu1 %v5098_v47  ;;  %4909 = vmatprep.subr.bf16.mxu0 %v4908_v48  ;;  %v1657_v47 = vld [vmem:[%s6992_s1 + $0x16b0] sm:$0xff]  ;;  %v5120_v48 = vpack.c.bf16 %v1666_v41, %v1658_v40  ;;  %v4930_v54 = vpack.c.bf16 %v1663_v46, %v1655_v45  ;;  %v5132_v40 = vpack.c.bf16 (!%p4068_p1), %v2962_v38, %v2961_v37  ;;  %v2946_v41 = vld [vmem:[#allocation24 + $0x8] sm:$0xff] (!%p4068_p1)  ;;  %v2977_v46 = vld [vmem:[#allocation24 + $0x100] sm:$0xff] (!%p4068_p1) }
 0x3e3   : > { %5101 = vmatprep.subr.bf16.mxu1 %v5100_v52  ;;  %v1674_v52 = vld [vmem:[%s6992_s1 + $0x1738] sm:$0xff]  ;;  %v5122_v55 = vpack.c.bf16 %v1665_v49, %v1657_v47  ;;  %v2978_v47 = vld [vmem:[#allocation24 + $0x108] sm:$0xff] (!%p4068_p1) }
 0x3e4   : > { %v5166_v49 = vpack.c.bf16 (!%p4068_p1), %v2978_v47, %v2977_v46  ;;  %v2974_v46 = vld [vmem:[#allocation24 + $0xe8] sm:$0xff] (!%p4068_p1) }
 0x3e5   : > { %4911 = vmatpush1.bf16.msra.mxu0 %v4910_v58  ;;  %v1679_v58 = vld [vmem:[%s6992_s1 + $0x1760] sm:$0xff] }
 0x3e6   : > { %5103 = vmatpush1.bf16.msra.mxu1 %v5102_v59  ;;  %4913 = vmatprep.subr.bf16.mxu0 %v4912_v60  ;;  %v1673_v59 = vld [vmem:[%s6992_s1 + $0x1730] sm:$0xff]  ;;  %v5124_v60 = vpack.c.bf16 %v1682_v53, %v1674_v52  ;;  %v4934_v2 = vpack.c.bf16 %v1679_v58, %v1671_v57  ;;  %v2979_v57 = vld [vmem:[#allocation24 + $0x110] sm:$0xff] (!%p4068_p1) }
 0x3e7   : > { %5105 = vmatprep.subr.bf16.mxu1 %v5104_v0  ;;  %v1690_v0 = vld [vmem:[%s6992_s1 + $0x17b8] sm:$0xff]  ;;  %v5126_v3 = vpack.c.bf16 %v1681_v61, %v1673_v59  ;;  %v2948_v52 = vld [vmem:[#allocation24 + $0x18] sm:$0xff] (!%p4068_p1)  ;;  %v2966_v61 = vld [vmem:[#allocation24 + $0xa8] sm:$0xff] (!%p4068_p1) }
 0x3e8   : > { %v2980_v59 = vld [vmem:[#allocation24 + $0x118] sm:$0xff] (!%p4068_p1) }
 0x3e9   : > { %4915 = vmatpush1.bf16.msra.mxu0 %v4914_v6  ;;  %v1695_v6 = vld [vmem:[%s6992_s1 + $0x17e0] sm:$0xff]  ;;  %v5170_v62 = vpack.c.bf16 (!%p4068_p1), %v2980_v59, %v2979_v57  ;;  %v2975_v57 = vld [vmem:[#allocation24 + $0xf0] sm:$0xff] (!%p4068_p1) }
 0x3ea   : > { %5107 = vmatpush1.bf16.msra.mxu1 %v5106_v7  ;;  %4917 = vmatprep.subr.bf16.mxu0 %v4916_v8  ;;  %v5128_v7 = vpack.c.bf16 %v1698_v1, %v1690_v0  ;;  %v1689_v8 = vld [vmem:[%s6992_s1 + $0x17b0] sm:$0xff]  ;;  %v4938_v10 = vpack.c.bf16 %v1695_v6, %v1687_v5  ;;  %v2949_v0 = vld [vmem:[#allocation24 + $0x20] sm:$0xff] (!%p4068_p1)  ;;  %v2950_v1 = vld [vmem:[#allocation24 + $0x28] sm:$0xff] (!%p4068_p1) }
 0x3eb   : > { %5109 = vmatprep.subr.bf16.mxu1 %v5108_v12  ;;  %v5130_v11 = vpack.c.bf16 %v1697_v9, %v1689_v8  ;;  %v5605_v12 = vld [vmem:[%s6966_s23 + $0x20] sm:$0xff]  ;;  %v5142_v6 = vpack.c.bf16 (!%p4068_p1), %v2950_v1, %v2949_v0 }
 0x3ec   : > { %v2982_v5 = vld [vmem:[#allocation24 + $0x128] sm:$0xff] (!%p4068_p1)  ;;  %v2967_v8 = vld [vmem:[#allocation24 + $0xb0] sm:$0xff] (!%p4068_p1)  ;;  %v2968_v9 = vld [vmem:[#allocation24 + $0xb8] sm:$0xff] (!%p4068_p1) }
 0x3ed   : > { %4919 = vmatpush1.bf16.msra.mxu0 %v4918_v18  ;;  %v2959_v1 = vld [vmem:[#allocation24 + $0x70] sm:$0xff] (!%p4068_p1) }
 0x3ee   : > { %5111 = vmatpush1.bf16.msra.mxu1 %v5110_v19  ;;  %4921 = vmatprep.subr.bf16.mxu0 %v4920_v20 }
 0x3ef   : > { %5113 = vmatprep.subr.bf16.mxu1 %v5112_v24 }
 0x3f1   : > { %4923 = vmatpush1.bf16.msra.mxu0 %v4922_v30 }
 0x3f2   : > { %5115 = vmatpush1.bf16.msra.mxu1 %v5114_v31  ;;  %4925 = vmatprep.subr.bf16.mxu0 %v4924_v32 }
 0x3f3   : > { %5117 = vmatprep.subr.bf16.mxu1 %v5116_v36 }
 0x3f5   : > { %4927 = vmatpush1.bf16.msra.mxu0 %v4926_v42  ;;  %v2993_v42 = vld [vmem:[#allocation24 + $0x180] sm:$0xff] (!%p4068_p1) }
 0x3f6   : > { %5119 = vmatpush1.bf16.msra.mxu1 %v5118_v43  ;;  %4929 = vmatprep.subr.bf16.mxu0 %v4928_v44  ;;  %v2994_v43 = vld [vmem:[#allocation24 + $0x188] sm:$0xff] (!%p4068_p1)  ;;  %v5134_v44 = vpack.c.bf16 (!%p4068_p1), %v2946_v41, %v2945_v39  ;;  %v2956_v41 = vld [vmem:[#allocation24 + $0x58] sm:$0xff] (!%p4068_p1) }
 0x3f7   : > { %5121 = vmatprep.subr.bf16.mxu1 %v5120_v48  ;;  %v5164_v45 = vpack.c.bf16 (!%p4068_p1), %v2994_v43, %v2993_v42  ;;  %v2963_v48 = vld [vmem:[#allocation24 + $0x90] sm:$0xff] (!%p4068_p1) }
 0x3f8   : > { %v5136_v53 = vpack.c.bf16 (!%p4068_p1), %v2964_v50, %v2963_v48  ;;  %v2987_v42 = vld [vmem:[#allocation24 + $0x150] sm:$0xff] (!%p4068_p1)  ;;  %v2957_v50 = vld [vmem:[#allocation24 + $0x60] sm:$0xff] (!%p4068_p1) }
 0x3f9   : > { %4931 = vmatpush1.bf16.msra.mxu0 %v4930_v54  ;;  %v5138_v54 = vpack.c.bf16 (!%p4068_p1), %v2948_v52, %v2947_v51  ;;  %v2958_v51 = vld [vmem:[#allocation24 + $0x68] sm:$0xff] (!%p4068_p1)  ;;  %v3005_v52 = vld [vmem:[#allocation24 + $0x1e0] sm:$0xff] (!%p4068_p1) }
 0x3fa   : > { %5123 = vmatpush1.bf16.msra.mxu1 %v5122_v55  ;;  %4933 = vmatprep.subr.bf16.mxu0 %v4932_v56  ;;  %v2995_v55 = vld [vmem:[#allocation24 + $0x190] sm:$0xff] (!%p4068_p1)  ;;  %v2996_v56 = vld [vmem:[#allocation24 + $0x198] sm:$0xff] (!%p4068_p1) }
 0x3fb   : > { %5125 = vmatprep.subr.bf16.mxu1 %v5124_v60  ;;  %v5168_v58 = vpack.c.bf16 (!%p4068_p1), %v2996_v56, %v2995_v55  ;;  %v2965_v60 = vld [vmem:[#allocation24 + $0xa0] sm:$0xff] (!%p4068_p1)  ;;  %v2990_v56 = vld [vmem:[#allocation24 + $0x168] sm:$0xff] (!%p4068_p1) }
 0x3fc   : > { %v5140_v63 = vpack.c.bf16 (!%p4068_p1), %v2966_v61, %v2965_v60  ;;  %v2989_v55 = vld [vmem:[#allocation24 + $0x160] sm:$0xff] (!%p4068_p1)  ;;  %v2976_v60 = vld [vmem:[#allocation24 + $0xf8] sm:$0xff] (!%p4068_p1) }
 0x3fd   : > { %4935 = vmatpush1.bf16.msra.mxu0 %v4934_v2  ;;  %v2997_v2 = vld [vmem:[#allocation24 + $0x1a0] sm:$0xff] (!%p4068_p1) }
 0x3fe   : > { %5127 = vmatpush1.bf16.msra.mxu1 %v5126_v3  ;;  %4937 = vmatprep.subr.bf16.mxu0 %v4936_v4  ;;  %v2998_v3 = vld [vmem:[#allocation24 + $0x1a8] sm:$0xff] (!%p4068_p1)  ;;  %v2981_v4 = vld [vmem:[#allocation24 + $0x120] sm:$0xff] (!%p4068_p1) }
 0x3ff   : > { %5129 = vmatprep.subr.bf16.mxu1 %v5128_v7  ;;  %v5172_v7 = vpack.c.bf16 (!%p4068_p1), %v2998_v3, %v2997_v2  ;;  %v2960_v2 = vld [vmem:[#allocation24 + $0x78] sm:$0xff] (!%p4068_p1)  ;;  %v3007_v3 = vld [vmem:[#allocation24 + $0x1f0] sm:$0xff] (!%p4068_p1) }
 0x401   : > { %4939 = vmatpush1.bf16.msra.mxu0 %v4938_v10  ;;  %v2951_v10 = vld [vmem:[#allocation24 + $0x30] sm:$0xff] (!%p4068_p1) }
 0x402   : > { %5131 = vmatpush1.bf16.msra.mxu1 %v5130_v11  ;;  %5133 = vmatprep.subr.bf16.mxu0 (!%p4068_p1), %v5132_v40  ;;  %v5174_v11 = vpack.c.bf16 (!%p4068_p1), %v2982_v5, %v2981_v4  ;;  %v2955_v40 = vld [vmem:[#allocation24 + $0x50] sm:$0xff] (!%p4068_p1)  ;;  %v3008_v4 = vld [vmem:[#allocation24 + $0x1f8] sm:$0xff] (!%p4068_p1) }
 0x403   : > { %5165 = vmatprep.subr.bf16.mxu1 (!%p4068_p1), %v5164_v45  ;;  %v2973_v45 = vld [vmem:[#allocation24 + $0xe0] sm:$0xff] (!%p4068_p1) }
 0x404   : > { %2332 = vmatmul.mubr.f32.vlgmr.msra.gmra.mrb[2].mxu0 %v5605_v12  ;;  %v5156_v59 = vpack.c.bf16 (!%p4068_p1), %v2974_v46, %v2973_v45 }
 0x405   : > { %2545 = vmatmul.mubr.f32.vlgmr.msra.gmra.mrb[2].mxu1 %v5605_v12  ;;  %5135 = vmatpush3.bf16.msra.mxu0 (!%p4068_p1), %v5134_v44  ;;  %v5144_v12 = vpack.c.bf16 (!%p4068_p1), %v2968_v9, %v2967_v8  ;;  %v2988_v44 = vld [vmem:[#allocation24 + $0x158] sm:$0xff] (!%p4068_p1)  ;;  %v2991_v8 = vld [vmem:[#allocation24 + $0x170] sm:$0xff] (!%p4068_p1) }
 0x406   : > { %5167 = vmatpush3.bf16.msra.mxu1 (!%p4068_p1), %v5166_v49  ;;  %5137 = vmatprep.subr.bf16.mxu0 (!%p4068_p1), %v5136_v53  ;;  %v3006_v53 = vld [vmem:[#allocation24 + $0x1e8] sm:$0xff] (!%p4068_p1)  ;;  %v2992_v9 = vld [vmem:[#allocation24 + $0x178] sm:$0xff] (!%p4068_p1) }
 0x407   : > { %5169 = vmatprep.subr.bf16.mxu1 (!%p4068_p1), %v5168_v58  ;;  %v5186_v58 = vpack.c.bf16 (!%p4068_p1), %v2988_v44, %v2987_v42  ;;  %v5188_v0 = vpack.c.bf16 (!%p4068_p1), %v3006_v53, %v3005_v52 }
 0x409   : > { %5139 = vmatpush3.bf16.msra.mxu0 (!%p4068_p1), %v5138_v54  ;;  %v5154_v54 = vpack.c.bf16 (!%p4068_p1), %v2956_v41, %v2955_v40 }
 0x40a   : > { %5171 = vmatpush3.bf16.msra.mxu1 (!%p4068_p1), %v5170_v62  ;;  %5141 = vmatprep.subr.bf16.mxu0 (!%p4068_p1), %v5140_v63  ;;  %v7820_v62 = vld [vmem:[#allocation21] sm:$0xff] (!%p4068_p1) }
 0x40b   : > { %5173 = vmatprep.subr.bf16.mxu1 (!%p4068_p1), %v5172_v7 }
 0x40d   : > { %5143 = vmatpush3.bf16.msra.mxu0 (!%p4068_p1), %v5142_v6 }
 0x40e   : > { %5175 = vmatpush3.bf16.msra.mxu1 (!%p4068_p1), %v5174_v11  ;;  %5145 = vmatprep.subr.bf16.mxu0 (!%p4068_p1), %v5144_v12  ;;  %v5158_v11 = vpack.c.bf16 (!%p4068_p1), %v2958_v51, %v2957_v50 }
 0x417   : > { %v1907_v16 = vpop.f32.mrb[0].mxu0 }
 0x418   : > { %v2551_v18 = vadd.f32 %v1907_v16, %v917_v13  ;;  %v2120_v19 = vpop.f32.mrb[0].mxu1  ;;  %v1909_v20 = vpop.f32.mrb[1].mxu0  ;;  %v2952_v13 = vld [vmem:[#allocation24 + $0x38] sm:$0xff] (!%p4068_p1) }
 0x419   : > { %v2553_v21 = vadd.f32 %v2120_v19, %v919_v14  ;;  %v2552_v22 = vadd.f32 %v1909_v20, %v918_v15  ;;  %v2122_v23 = vpop.f32.mrb[1].mxu1  ;;  %v2999_v14 = vld [vmem:[#allocation24 + $0x1b0] sm:$0xff] (!%p4068_p1)  ;;  %v3000_v15 = vld [vmem:[#allocation24 + $0x1b8] sm:$0xff] (!%p4068_p1)  ;;  %v2969_v19 = vld [vmem:[#allocation24 + $0xc0] sm:$0xff] (!%p4068_p1)  ;;  %v2581_v20 = vlaneseq (!%p4068_p1) }
 0x41a   : > { %2559 = vst [vmem:[#allocation2] sm:$0xff] %v2551_v18  ;;  %v2554_v24 = vadd.f32 %v2122_v23, %v920_v17  ;;  %v5176_v16 = vpack.c.bf16 (!%p4068_p1), %v3000_v15, %v2999_v14  ;;  %v2983_v17 = vld [vmem:[#allocation24 + $0x130] sm:$0xff] (!%p4068_p1)  ;;  %v2984_v18 = vld [vmem:[#allocation24 + $0x138] sm:$0xff] (!%p4068_p1)  ;;  %v3001_v23 = vld [vmem:[#allocation24 + $0x1c0] sm:$0xff] (!%p4068_p1) }
 0x41b   : > { %2561 = vst [vmem:[#allocation2 + $0x10] sm:$0xff] %v2553_v21  ;;  %2560 = vst [vmem:[#allocation2 + $0x8] sm:$0xff] %v2552_v22  ;;  %v2970_v21 = vld [vmem:[#allocation24 + $0xc8] sm:$0xff] (!%p4068_p1)  ;;  %v5146_v22 = vpack.c.bf16 (!%p4068_p1), %v2952_v13, %v2951_v10  ;;  %v3025_v13 = vld [vmem:[#allocation24 + $0x280] sm:$0xff] (!%p4068_p1) }
 0x41c   : > { %2562 = vst [vmem:[#allocation2 + $0x18] sm:$0xff] %v2554_v24  ;;  %v3002_v24 = vld [vmem:[#allocation24 + $0x1c8] sm:$0xff] (!%p4068_p1)  ;;  %5177 = vmatprep.subr.bf16.mxu1 (!%p4068_p1), %v5176_v16 }
 0x41d   : > { %5147 = vmatpush3.bf16.msra.mxu0 (!%p4068_p1), %v5146_v22  ;;  %v3026_v14 = vld [vmem:[#allocation24 + $0x288] sm:$0xff] (!%p4068_p1) }
 0x421   : > { %v2571_v10 = vld [vmem:[#allocation2] sm:$0xff] (!%p4068_p1) }
 0x422   : > { %v2572_v61 = vld [vmem:[#allocation2 + $0x8] sm:$0xff] (!%p4068_p1) }
 0x423   : > { %v2574_v16 = vld [vmem:[#allocation2 + $0x18] sm:$0xff] (!%p4068_p1) }
 0x4d6   : > { %2570 = sbr.rel (%p4068_p1) target bundleno = 2121 (0x849), region = 188 }
 0x4d7   : > { %v2333_v28 = vpop.f32.mrb[2].mxu0 }
 0x4d8   : > { %v2555_v30 = vadd.f32 %v2333_v28, %v921_v25  ;;  %v2546_v31 = vpop.f32.mrb[2].mxu1  ;;  %v2335_v32 = vpop.f32.mrb[3].mxu0  ;;  %v5178_v25 = vpack.c.bf16 (!%p4068_p1), %v2984_v18, %v2983_v17  ;;  %v2954_v28 = vld [vmem:[#allocation24 + $0x48] sm:$0xff] (!%p4068_p1)  ;;  %v5190_v17 = vpack.c.bf16 (!%p4068_p1), %v2990_v56, %v2989_v55  ;;  %v5160_v18 = vpack.c.bf16 (!%p4068_p1), %v2976_v60, %v2975_v57 }
 0x4d9   : > { %v2557_v33 = vadd.f32 %v2546_v31, %v923_v26  ;;  %v2556_v34 = vadd.f32 %v2335_v32, %v922_v27  ;;  %v2548_v35 = vpop.f32.mrb[3].mxu1  ;;  %v5148_v26 = vpack.c.bf16 (!%p4068_p1), %v2970_v21, %v2969_v19  ;;  %v2953_v27 = vld [vmem:[#allocation24 + $0x40] sm:$0xff] (!%p4068_p1)  ;;  %v2986_v31 = vld [vmem:[#allocation24 + $0x148] sm:$0xff] (!%p4068_p1)  ;;  %v2971_v32 = vld [vmem:[#allocation24 + $0xd0] sm:$0xff] (!%p4068_p1) }
 0x4da   : > { %2563 = vst [vmem:[#allocation2 + $0x20] sm:$0xff] %v2555_v30  ;;  %v2558_v36 = vadd.f32 %v2548_v35, %v924_v29  ;;  %v2985_v29 = vld [vmem:[#allocation24 + $0x140] sm:$0xff] (!%p4068_p1)  ;;  %v5180_v30 = vpack.c.bf16 (!%p4068_p1), %v3002_v24, %v3001_v23  ;;  %v3003_v35 = vld [vmem:[#allocation24 + $0x1d0] sm:$0xff] (!%p4068_p1)  ;;  %v5150_v37 = vpack.c.bf16 (!%p4068_p1), %v2954_v28, %v2953_v27  ;;  %5179 = vmatpush3.bf16.msra.mxu1 (!%p4068_p1), %v5178_v25  ;;  %v3058_v24 = vld [vmem:[#allocation24 + $0x388] sm:$0xff] (!%p4068_p1) }
 0x4db   : > { %2565 = vst [vmem:[#allocation2 + $0x30] sm:$0xff] %v2557_v33  ;;  %2564 = vst [vmem:[#allocation2 + $0x28] sm:$0xff] %v2556_v34  ;;  %v2972_v33 = vld [vmem:[#allocation24 + $0xd8] sm:$0xff] (!%p4068_p1)  ;;  %v7809_v34 = vshrl.u32 (!%p4068_p1), %v2581_v20, 7  ;;  %5149 = vmatprep.subr.bf16.mxu0 (!%p4068_p1), %v5148_v26  ;;  %v5182_v38 = vpack.c.bf16 (!%p4068_p1), %v2986_v31, %v2985_v29  ;;  %v5192_v20 = vpack.c.bf16 (!%p4068_p1), %v3008_v4, %v3007_v3  ;;  %v3057_v23 = vld [vmem:[#allocation24 + $0x380] sm:$0xff] (!%p4068_p1) }
 0x4dc   : > { %2566 = vst [vmem:[#allocation2 + $0x38] sm:$0xff] %v2558_v36  ;;  %v3004_v36 = vld [vmem:[#allocation24 + $0x1d8] sm:$0xff] (!%p4068_p1)  ;;  %v5152_v39 = vpack.c.bf16 (!%p4068_p1), %v2972_v33, %v2971_v32  ;;  %5181 = vmatprep.subr.bf16.mxu1 (!%p4068_p1), %v5180_v30  ;;  %5151 = vmatpush3.bf16.msra.mxu0 (!%p4068_p1), %v5150_v37  ;;  %v5162_v27 = vpack.c.bf16 (!%p4068_p1), %v2960_v2, %v2959_v1 }
 0x4dd   : > { %v5184_v43 = vpack.c.bf16 %v3004_v36, %v3003_v35  ;;  %v7812_v47 = vsub.s32 0, %v7809_v34  ;;  %v7815_v48 = vsub.s32 1, %v7809_v34  ;;  %v7818_v49 = vsub.s32 3, %v7809_v34  ;;  %v2573_v25 = vld [vmem:[#allocation2 + $0x10] sm:$0xff] }
 0x4de   : > { %5183 = vmatpush3.bf16.msra.mxu1 %v5182_v38  ;;  %5153 = vmatprep.subr.bf16.mxu0 %v5152_v39  ;;  %v7823_v63 = vsub.s32 2, %v7809_v34  ;;  %v5194_v28 = vpack.c.bf16 %v2992_v9, %v2991_v8  ;;  %v5196_v29 = vpack.c.bf16 %v3026_v14, %v3025_v13  ;;  %v5228_v38 = vpack.c.bf16 %v3058_v24, %v3057_v23 }
 0x4df   : > { %5185 = vmatprep.subr.bf16.mxu1 %v5184_v43  ;;  %v2588_v5 = vrot.slane %v7820_v62, %v7815_v48  ;;  %v2584_v6 = vrot.slane %v7820_v62, %v7812_v47  ;;  %v2596_v7 = vrot.slane %v7820_v62, %v7818_v49 }
 0x4e0   : > { %5155 = vmatpush3.bf16.msra.mxu0 %v5154_v54  ;;  %v2592_v26 = vrot.slane %v7820_v62, %v7823_v63 }
 0x4e1   : > { %v2622_v12 = vadd.f32 %v2588_v5, %v2572_v61  ;;  %v2621_v15 = vadd.f32 %v2584_v6, %v2571_v10  ;;  %5157 = vmatprep.subr.bf16.mxu0 %v5156_v59  ;;  %v2624_v19 = vadd.f32 %v2596_v7, %v2574_v16 }
 0x4e2   : > { %5187 = vmatpush3.bf16.msra.mxu1 %v5186_v58  ;;  %v2623_v39 = vadd.f32 %v2592_v26, %v2573_v25 }
 0x4e3   : > { %5189 = vmatprep.subr.bf16.mxu1 %v5188_v0  ;;  %v7831_v21 = vmax.f32 %v2622_v12, 0.0  ;;  %v7833_v22 = vmax.f32 %v2621_v15, 0.0  ;;  %v7837_v30 = vmax.f32 %v2624_v19, 0.0 }
 0x4e4   : > { %5159 = vmatpush3.bf16.msra.mxu0 %v5158_v11  ;;  %v7851_v46 = vmax.f32 %v2623_v39, 0.0 }
 0x4e5   : > { %v2645_v31 = vrot.slane %v7831_v21, 4  ;;  %v2696_v32 = vmul.f32 %v7831_v21, %v7831_v21  ;;  %v2639_v33 = vrot.slane %v7833_v22, 4  ;;  %v2695_v35 = vmul.f32 %v7833_v22, %v7833_v22  ;;  %5161 = vmatprep.subr.bf16.mxu0 %v5160_v18 }
 0x4e6   : > { %5191 = vmatpush3.bf16.msra.mxu1 %v5190_v17  ;;  %v2657_v36 = vrot.slane %v7837_v30, 4  ;;  %v2698_v37 = vmul.f32 %v7837_v30, %v7837_v30  ;;  %v2651_v56 = vrot.slane %v7851_v46, 4  ;;  %v2697_v57 = vmul.f32 %v7851_v46, %v7851_v46 }
 0x4e7   : > { %5193 = vmatprep.subr.bf16.mxu1 %v5192_v20  ;;  %v2646_v40 = vadd.f32 %v2645_v31, %v7831_v21  ;;  %v2709_v41 = vrot.slane %v2696_v32, 4  ;;  %v2640_v42 = vadd.f32 %v2639_v33, %v7833_v22  ;;  %v2703_v43 = vrot.slane %v2695_v35, 4 }
 0x4e8   : > { %v2658_v44 = vadd.f32 %v2657_v36, %v7837_v30  ;;  %v2721_v45 = vrot.slane %v2698_v37, 4  ;;  %5163 = vmatpush3.bf16.msra.mxu0 %v5162_v27  ;;  %v2652_v2 = vadd.f32 %v2651_v56, %v7851_v46  ;;  %v2715_v3 = vrot.slane %v2697_v57, 4 }
 0x4e9   : > { %v2647_v50 = vrot.slane %v2646_v40, 2  ;;  %v2710_v51 = vadd.f32 %v2709_v41, %v2696_v32  ;;  %v2641_v52 = vrot.slane %v2640_v42, 2  ;;  %v2704_v53 = vadd.f32 %v2703_v43, %v2695_v35  ;;  %5197 = vmatprep.subr.bf16.mxu0 %v5196_v29 }
 0x4ea   : > { %5195 = vmatpush3.bf16.msra.mxu1 %v5194_v28  ;;  %v2659_v54 = vrot.slane %v2658_v44, 2  ;;  %v2722_v55 = vadd.f32 %v2721_v45, %v2698_v37  ;;  %v2653_v10 = vrot.slane %v2652_v2, 2  ;;  %v2716_v11 = vadd.f32 %v2715_v3, %v2697_v57  ;;  %v7873_v57 = vld [vmem:[#allocation22] sm:$0xff] }
 0x4eb   : > { %v2648_v58 = vadd.f32 %v2647_v50, %v2646_v40  ;;  %v2711_v59 = vrot.slane %v2710_v51, 2  ;;  %v2642_v60 = vadd.f32 %v2641_v52, %v2640_v42  ;;  %v2705_v61 = vrot.slane %v2704_v53, 2  ;;  %5229 = vmatprep.subr.bf16.mxu1 %v5228_v38 }
 0x4ec   : > { %v2660_v0 = vadd.f32 %v2659_v54, %v2658_v44  ;;  %v2723_v1 = vrot.slane %v2722_v55, 2  ;;  %v2654_v18 = vadd.f32 %v2653_v10, %v2652_v2  ;;  %v2717_v19 = vrot.slane %v2716_v11, 2  ;;  %v7883_v2 = vld [vmem:[#allocation24 + $0x308] sm:$0xff] }
 0x4ed   : > { %v2649_v4 = vrot.slane %v2648_v58, 1  ;;  %v2712_v5 = vadd.f32 %v2711_v59, %v2710_v51  ;;  %v2643_v6 = vrot.slane %v2642_v60, 1  ;;  %v2706_v7 = vadd.f32 %v2705_v61, %v2704_v53  ;;  %v7875_v59 = vld [vmem:[#allocation23] sm:$0xff]  ;;  %v7879_v61 = vld [vmem:[#allocation24 + $0x208] sm:$0xff] }
 0x4ee   : > { %v2661_v8 = vrot.slane %v2660_v0, 1  ;;  %v2724_v9 = vadd.f32 %v2723_v1, %v2722_v55  ;;  %v2655_v28 = vrot.slane %v2654_v18, 1  ;;  %v2718_v29 = vadd.f32 %v2717_v19, %v2716_v11  ;;  %v7881_v1 = vld [vmem:[#allocation24 + $0x300] sm:$0xff] }
 0x4ef   : > { %v2650_v12 = vadd.f32 %v2649_v4, %v2648_v58  ;;  %v2713_v13 = vrot.slane %v2712_v5, 1  ;;  %v2644_v14 = vadd.f32 %v2643_v6, %v2642_v60  ;;  %v2707_v15 = vrot.slane %v2706_v7, 1  ;;  %v7877_v60 = vld [vmem:[#allocation24 + $0x200] sm:$0xff]  ;;  %v7892_v6 = vld [vmem:[#allocation24 + $0x298] sm:$0xff] }
 0x4f0   : > { %v2662_v16 = vadd.f32 %v2661_v8, %v2660_v0  ;;  %v2725_v17 = vrot.slane %v2724_v9, 1  ;;  %v2656_v39 = vadd.f32 %v2655_v28, %v2654_v18  ;;  %v2719_v40 = vrot.slane %v2718_v29, 1  ;;  %v2576_v28 = vld [vmem:[#allocation2 + $0x28] sm:$0xff] }
 0x4f1   : > { %v7857_v20 = vmul.f32 0.125, %v2650_v12  ;;  %v2714_v23 = vadd.f32 %v2713_v13, %v2712_v5  ;;  %v7859_v24 = vmul.f32 0.125, %v2644_v14  ;;  %v2708_v25 = vadd.f32 %v2707_v15, %v2706_v7  ;;  %v7890_v5 = vld [vmem:[#allocation24 + $0x290] sm:$0xff]  ;;  %v7911_v15 = vld [vmem:[#allocation24 + $0x218] sm:$0xff] }
 0x4f2   : > { %v7861_v26 = vmul.f32 0.125, %v2662_v16  ;;  %v2726_v27 = vadd.f32 %v2725_v17, %v2724_v9  ;;  %v7869_v44 = vmul.f32 0.125, %v2656_v39  ;;  %v2720_v45 = vadd.f32 %v2719_v40, %v2718_v29  ;;  %v7894_v7 = vld [vmem:[#allocation24 + $0x210] sm:$0xff]  ;;  %v7915_v17 = vld [vmem:[#allocation24 + $0x398] sm:$0xff]  ;;  %v7945_v40 = vld [vmem:[#allocation24 + $0x220] sm:$0xff] }
 0x4f3   : > { %v2752_v31 = vmul.f32 0.125, %v2714_v23  ;;  %v2760_v32 = vmul.f32 %v7857_v20, %v7857_v20  ;;  %v2751_v33 = vmul.f32 0.125, %v2708_v25  ;;  %v2759_v35 = vmul.f32 %v7859_v24, %v7859_v24  ;;  %v7913_v16 = vld [vmem:[#allocation24 + $0x390] sm:$0xff] }
 0x4f4   : > { %v2754_v36 = vmul.f32 0.125, %v2726_v27  ;;  %v2762_v37 = vmul.f32 %v7861_v26, %v7861_v26  ;;  %v2753_v53 = vmul.f32 0.125, %v2720_v45  ;;  %v2761_v54 = vmul.f32 %v7869_v44, %v7869_v44  ;;  %v7925_v25 = vld [vmem:[#allocation24 + $0x310] sm:$0xff]  ;;  %v7927_v27 = vld [vmem:[#allocation24 + $0x318] sm:$0xff] }
 0x4f5   : > { %v2768_v38 = vsub.f32 %v2752_v31, %v2760_v32  ;;  %v2767_v41 = vsub.f32 %v2751_v33, %v2759_v35  ;;  %v7886_v3 = vsub.s32 5, %v7809_v34  ;;  %v2815_v4 = vrot.slane %v7873_v57, %v7815_v48  ;;  %v7933_v32 = vld [vmem:[#allocation24 + $0x2a0] sm:$0xff]  ;;  %v7935_v33 = vld [vmem:[#allocation24 + $0x2a8] sm:$0xff] }
 0x4f6   : > { %v2770_v42 = vsub.f32 %v2754_v36, %v2762_v37  ;;  %v2769_v58 = vsub.f32 %v2753_v53, %v2761_v54  ;;  %v7897_v8 = vsub.s32 4, %v7809_v34  ;;  %v7900_v9 = vsub.s32 7, %v7809_v34  ;;  %v2575_v36 = vld [vmem:[#allocation2 + $0x20] sm:$0xff] }
 0x4f7   : > { %v2776_v43 = vmax.f32 %v2768_v38, 0.0  ;;  %v2775_v50 = vmax.f32 %v2767_v41, 0.0  ;;  %v7903_v10 = vsub.s32 6, %v7809_v34  ;;  %v2904_v11 = vrot.slane %v7875_v59, %v7815_v48  ;;  %v7947_v41 = vld [vmem:[#allocation24 + $0x228] sm:$0xff] }
 0x4f8   : > { %v2778_v51 = vmax.f32 %v2770_v42, 0.0  ;;  %v2777_v0 = vmax.f32 %v2769_v58, 0.0  ;;  %v2811_v12 = vrot.slane %v7873_v57, %v7812_v47  ;;  %v2900_v13 = vrot.slane %v7875_v59, %v7812_v47 }
 0x4f9   : > { %v2792_v52 = vadd.f32 1e-05, %v2776_v43  ;;  %v2791_v55 = vadd.f32 1e-05, %v2775_v50  ;;  %v5198_v34 = vpack.c.bf16 %v7879_v61, %v7877_v60  ;;  %v2823_v18 = vrot.slane %v7873_v57, %v7818_v49  ;;  %v2578_v43 = vld [vmem:[#allocation2 + $0x38] sm:$0xff]  ;;  %v3031_v61 = vld [vmem:[#allocation24 + $0x2b0] sm:$0xff] }
 0x4fa   : > { %v2794_v56 = vadd.f32 1e-05, %v2778_v51  ;;  %v2793_v14 = vadd.f32 1e-05, %v2777_v0  ;;  %v2912_v19 = vrot.slane %v7875_v59, %v7818_v49  ;;  %v2819_v23 = vrot.slane %v7873_v57, %v7823_v63  ;;  %v2577_v51 = vld [vmem:[#allocation2 + $0x30] sm:$0xff] }
 0x4fb   : > { %5606 = vrsqrt.f32 %v2792_v52  ;;  %v2908_v29 = vrot.slane %v7875_v59, %v7823_v63  ;;  %v2604_v35 = vrot.slane %v7820_v62, %v7886_v3  ;;  %v2784_v37 = vsub.f32 %v7831_v21, %v7857_v20  ;;  %v3061_v60 = vld [vmem:[#allocation24 + $0x3a0] sm:$0xff]  ;;  %v3015_v63 = vld [vmem:[#allocation24 + $0x230] sm:$0xff] }
 0x4fc   : > { %5608 = vrsqrt.f32 %v2791_v55  ;;  %v5200_v38 = vpack.c.bf16 %v7892_v6, %v7890_v5  ;;  %v5202_v39 = vpack.c.bf16 %v7911_v15, %v7894_v7  ;;  %v2600_v42 = vrot.slane %v7820_v62, %v7897_v8  ;;  %v8014_v5 = vld [vmem:[#allocation24 + $0x328] sm:$0xff]  ;;  %v3016_v7 = vld [vmem:[#allocation24 + $0x238] sm:$0xff]  ;;  %v3033_v15 = vld [vmem:[#allocation24 + $0x2c0] sm:$0xff] }
 0x4fd   : > { %5610 = vrsqrt.f32 %v2794_v56  ;;  %v2783_v45 = vsub.f32 %v7833_v22, %v7859_v24  ;;  %v2786_v21 = vsub.f32 %v7837_v30, %v7861_v26  ;;  %v2626_v20 = vadd.f32 %v2604_v35, %v2576_v28 }
 0x4fe   : > { %5612 = vrsqrt.f32 %v2793_v14  ;;  %v2612_v50 = vrot.slane %v7820_v62, %v7900_v9  ;;  %v2625_v54 = vadd.f32 %v2600_v42, %v2575_v36  ;;  %v2608_v55 = vrot.slane %v7820_v62, %v7903_v10 }
 0x4ff   : > { %v7967_v24 = vmax.f32 %v2626_v20, 0.0  ;;  %v2785_v14 = vsub.f32 %v7851_v46, %v7869_v44 }
 0x500   : > { %v2628_v26 = vadd.f32 %v2612_v50, %v2578_v43  ;;  %v7971_v28 = vmax.f32 %v2625_v54, 0.0  ;;  %v2627_v35 = vadd.f32 %v2608_v55, %v2577_v51 }
 0x501   : > { %v2669_v42 = vrot.slane %v7967_v24, 4  ;;  %v2700_v53 = vmul.f32 %v7967_v24, %v7967_v24 }
 0x502   : > { %v7976_v52 = vmax.f32 %v2628_v26, 0.0  ;;  %v2699_v46 = vmul.f32 %v7971_v28, %v7971_v28 }
 0x503   : > { %v2670_v50 = vadd.f32 %v2669_v42, %v7967_v24 }
 0x504   : > { %v2681_v51 = vrot.slane %v7976_v52, 4  ;;  %v2727_v26 = vrot.slane %v2699_v46, 4 }
 0x505   : > { %v5607_v56 = vpop.eup %5606 }
 0x506   : > { %v5609_v58 = vpop.eup %5608  ;;  %v2849_v0 = vmul.f32 %v5607_v56, %v2815_v4  ;;  %v2663_v4 = vrot.slane %v7971_v28, 4  ;;  %v2682_v30 = vadd.f32 %v2681_v51, %v7976_v52 }
 0x507   : > { %v5611_v36 = vpop.eup %5610  ;;  %v2848_v62 = vmul.f32 %v5609_v58, %v2811_v12  ;;  %v2733_v12 = vrot.slane %v2700_v53, 4 }
 0x508   : > { %v2863_v20 = vrot.slane %v2849_v0, %v7812_v47  ;;  %v2851_v43 = vmul.f32 %v5611_v36, %v2823_v18  ;;  %v2664_v56 = vadd.f32 %v2663_v4, %v7971_v28  ;;  %v5613_v58 = vpop.eup %5612  ;;  %v2671_v0 = vrot.slane %v2670_v50, 2 }
 0x509   : > { %v2859_v44 = vrot.slane %v2848_v62, %v7812_v47  ;;  %v2734_v36 = vadd.f32 %v2733_v12, %v2700_v53  ;;  %v2850_v22 = vmul.f32 %v5613_v58, %v2819_v23  ;;  %v2728_v4 = vadd.f32 %v2727_v26, %v2699_v46 }
 0x50a   : > { %v2889_v54 = vmul.f32 %v2863_v20, %v2784_v37  ;;  %v2871_v55 = vrot.slane %v2851_v43, %v7812_v47  ;;  %v2665_v31 = vrot.slane %v2664_v56, 2  ;;  %v2672_v20 = vadd.f32 %v2671_v0, %v2670_v50 }
 0x50b   : > { %v2888_v18 = vmul.f32 %v2859_v44, %v2783_v45  ;;  %v2735_v43 = vrot.slane %v2734_v36, 2  ;;  %v2867_v53 = vrot.slane %v2850_v22, %v7812_v47  ;;  %v2683_v48 = vrot.slane %v2682_v30, 2 }
 0x50c   : > { %v2938_v62 = vadd.f32 %v2904_v11, %v2889_v54  ;;  %v2891_v42 = vmul.f32 %v2871_v55, %v2786_v21  ;;  %v2666_v44 = vadd.f32 %v2665_v31, %v2664_v56  ;;  %v2673_v11 = vrot.slane %v2672_v20, 1  ;;  %v8012_v56 = vld [vmem:[#allocation24 + $0x320] sm:$0xff] }
 0x50d   : > { %v2937_v37 = vadd.f32 %v2900_v13, %v2888_v18  ;;  %v2736_v23 = vadd.f32 %v2735_v43, %v2734_v36  ;;  %v2729_v21 = vrot.slane %v2728_v4, 2  ;;  %v2702_v12 = vmul.f32 %v7976_v52, %v7976_v52 }
 0x50e   : > { %3144 = vmatprep.mubr.f32.mxu0 %v2938_v62  ;;  %v2940_v45 = vadd.f32 %v2912_v19, %v2891_v42  ;;  %v2890_v13 = vmul.f32 %v2867_v53, %v2785_v14  ;;  %v2667_v46 = vrot.slane %v2666_v44, 1  ;;  %v2684_v49 = vadd.f32 %v2683_v48, %v2682_v30  ;;  %v3047_v48 = vld [vmem:[#allocation24 + $0x330] sm:$0xff] }
 0x50f   : > { %3145 = vmatmul.mubr.f32.vlgmr.msra.gmra.mrb[0].mxu0 %v2937_v37  ;;  %v8003_v19 = vmax.f32 %v2627_v35, 0.0  ;;  %v2674_v31 = vadd.f32 %v2673_v11, %v2672_v20  ;;  %v2737_v22 = vrot.slane %v2736_v23, 1  ;;  %v2730_v50 = vadd.f32 %v2729_v21, %v2728_v4  ;;  %v3062_v35 = vld [vmem:[#allocation24 + $0x3a8] sm:$0xff]  ;;  %v3048_v11 = vld [vmem:[#allocation24 + $0x338] sm:$0xff] }
 0x510   : > { %5199 = vmatpush3.bf16.msra.mxu0 %v5198_v34  ;;  %3214 = vmatprep.mubr.f32.mxu1 %v2940_v45  ;;  %v2745_v51 = vrot.slane %v2702_v12, 4  ;;  %v2939_v54 = vadd.f32 %v2908_v29, %v2890_v13  ;;  %v3032_v34 = vld [vmem:[#allocation24 + $0x2b8] sm:$0xff]  ;;  %v2668_v14 = vadd.f32 %v2667_v46, %v2666_v44  ;;  %v2685_v55 = vrot.slane %v2684_v49, 1 }
 0x511   : > { %5201 = vmatprep.subr.bf16.mxu0 %v5200_v38  ;;  %v2675_v30 = vrot.slane %v8003_v19, 4  ;;  %v8016_v6 = vmul.f32 0.125, %v2674_v31  ;;  %v2738_v38 = vadd.f32 %v2737_v22, %v2736_v23  ;;  %v2731_v26 = vrot.slane %v2730_v50, 1  ;;  %v3064_v44 = vld [vmem:[#allocation24 + $0x3b8] sm:$0xff] }
 0x512   : > { %v2746_v58 = vadd.f32 %v2745_v51, %v2702_v12  ;;  %3215 = vmatmul.mubr.f32.vlgmr.msra.gmra.mrb[0].mxu1 %v2939_v54  ;;  %v8021_v29 = vmul.f32 0.125, %v2668_v14  ;;  %v2686_v18 = vadd.f32 %v2685_v55, %v2684_v49  ;;  %v2701_v36 = vmul.f32 %v8003_v19, %v8003_v19  ;;  %v3017_v49 = vld [vmem:[#allocation24 + $0x240] sm:$0xff]  ;;  %v3018_v51 = vld [vmem:[#allocation24 + $0x248] sm:$0xff]  ;;  %v3035_v54 = vld [vmem:[#allocation24 + $0x2d0] sm:$0xff] }
 0x513   : > { %v2676_v0 = vadd.f32 %v2675_v30, %v8003_v19  ;;  %v8271_v62 = vpack.c.bf16 %v7883_v2, %v7881_v1  ;;  %v8272_v42 = vpack.c.bf16 %v7935_v33, %v7933_v32  ;;  %v5208_v37 = vpack.c.bf16 %v3032_v34, %v3031_v61  ;;  %v3063_v2 = vld [vmem:[#allocation24 + $0x3b0] sm:$0xff]  ;;  %v3065_v30 = vld [vmem:[#allocation24 + $0x3c0] sm:$0xff] }
 0x514   : > { %5203 = vmatpush3.bf16.msra.mxu0 %v5202_v39  ;;  %v3034_v39 = vld [vmem:[#allocation24 + $0x2c8] sm:$0xff]  ;;  %v2756_v20 = vmul.f32 0.125, %v2738_v38  ;;  %v2764_v43 = vmul.f32 %v8016_v6, %v8016_v6  ;;  %v2732_v4 = vadd.f32 %v2731_v26, %v2730_v50  ;;  %v8273_v45 = vpack.c.bf16 %v7915_v17, %v7913_v16 }
 0x515   : > { %5231 = vmatpush3.bf16.msra.mxu1 %v8271_v62  ;;  %5205 = vmatprep.subr.bf16.mxu0 %v8272_v42  ;;  %v5236_v53 = vpack.c.bf16 %v3062_v35, %v3061_v60  ;;  %v5238_v1 = vpack.c.bf16 %v8014_v5, %v8012_v56  ;;  %v2763_v32 = vmul.f32 %v8021_v29, %v8021_v29  ;;  %v2747_v33 = vrot.slane %v2746_v58, 2  ;;  %v3036_v60 = vld [vmem:[#allocation24 + $0x2d8] sm:$0xff]  ;;  %v3066_v56 = vld [vmem:[#allocation24 + $0x3c8] sm:$0xff] }
 0x516   : > { %5233 = vmatprep.subr.bf16.mxu1 %v8273_v45  ;;  %v2772_v23 = vsub.f32 %v2756_v20, %v2764_v43  ;;  %v2755_v21 = vmul.f32 0.125, %v2732_v4  ;;  %v2677_v12 = vrot.slane %v2676_v0, 2  ;;  %v2739_v13 = vrot.slane %v2701_v36, 4  ;;  %v3020_v42 = vld [vmem:[#allocation24 + $0x258] sm:$0xff]  ;;  %v3037_v20 = vld [vmem:[#allocation24 + $0x2e0] sm:$0xff]  ;;  %v3038_v43 = vld [vmem:[#allocation24 + $0x2e8] sm:$0xff] }
 0x517   : > { %v8274_v16 = vpack.c.bf16 %v7947_v41, %v7945_v40  ;;  %v5210_v17 = vpack.c.bf16 %v3016_v7, %v3015_v63  ;;  %v5212_v46 = vpack.c.bf16 %v3034_v39, %v3033_v15  ;;  %v8044_v31 = vmul.f32 0.125, %v2686_v18  ;;  %v3067_v45 = vld [vmem:[#allocation24 + $0x3d0] sm:$0xff] }
 0x518   : > { %v2748_v22 = vadd.f32 %v2747_v33, %v2746_v58  ;;  %v8275_v50 = vpack.c.bf16 %v7927_v27, %v7925_v25  ;;  %v2780_v61 = vmax.f32 %v2772_v23, 0.0  ;;  %v2771_v34 = vsub.f32 %v2755_v21, %v2763_v32  ;;  %v3049_v27 = vld [vmem:[#allocation24 + $0x340] sm:$0xff]  ;;  %v3022_v21 = vld [vmem:[#allocation24 + $0x268] sm:$0xff] }
 0x519   : > { %5207 = vmatpush3.bf16.msra.mxu0 %v8274_v16  ;;  %v2678_v14 = vadd.f32 %v2677_v12, %v2676_v0  ;;  %v2740_v55 = vadd.f32 %v2739_v13, %v2701_v36  ;;  %v5240_v40 = vpack.c.bf16 %v3064_v44, %v3063_v2  ;;  %v5242_v41 = vpack.c.bf16 %v3048_v11, %v3047_v48  ;;  %v3050_v0 = vld [vmem:[#allocation24 + $0x348] sm:$0xff]  ;;  %v3019_v36 = vld [vmem:[#allocation24 + $0x250] sm:$0xff]  ;;  %v3021_v23 = vld [vmem:[#allocation24 + $0x260] sm:$0xff] }
 0x51a   : > { %5235 = vmatpush3.bf16.msra.mxu1 %v8275_v50  ;;  %5209 = vmatprep.subr.bf16.mxu0 %v5208_v37  ;;  %v2749_v35 = vrot.slane %v2748_v22, 1  ;;  %v2796_v5 = vadd.f32 1e-05, %v2780_v61  ;;  %v2779_v38 = vmax.f32 %v2771_v34, 0.0  ;;  %v5214_v25 = vpack.c.bf16 %v3018_v51, %v3017_v49  ;;  %v3051_v48 = vld [vmem:[#allocation24 + $0x350] sm:$0xff]  ;;  %v3040_v49 = vld [vmem:[#allocation24 + $0x2f8] sm:$0xff] }
 0x51b   : > { %5237 = vmatprep.subr.bf16.mxu1 %v5236_v53  ;;  %v2679_v26 = vrot.slane %v2678_v14, 1  ;;  %v2741_v58 = vrot.slane %v2740_v55, 2  ;;  %v5216_v63 = vpack.c.bf16 %v3036_v60, %v3035_v54  ;;  %v2766_v62 = vmul.f32 %v8044_v31, %v8044_v31  ;;  %v3068_v53 = vld [vmem:[#allocation24 + $0x3d8] sm:$0xff]  ;;  %v3069_v50 = vld [vmem:[#allocation24 + $0x3e0] sm:$0xff]  ;;  %v3070_v51 = vld [vmem:[#allocation24 + $0x3e8] sm:$0xff] }
 0x51c   : > { %v2750_v18 = vadd.f32 %v2749_v35, %v2748_v22  ;;  %5614 = vrsqrt.f32 %v2796_v5  ;;  %v2795_v37 = vadd.f32 1e-05, %v2779_v38  ;;  %v5244_v39 = vpack.c.bf16 %v3066_v56, %v3065_v30  ;;  %v3053_v61 = vld [vmem:[#allocation24 + $0x360] sm:$0xff]  ;;  %v3054_v34 = vld [vmem:[#allocation24 + $0x368] sm:$0xff]  ;;  %v3023_v30 = vld [vmem:[#allocation24 + $0x270] sm:$0xff] }
 0x51d   : > { %5211 = vmatpush3.bf16.msra.mxu0 %v5210_v17  ;;  %v2680_v7 = vadd.f32 %v2679_v26, %v2678_v14  ;;  %v2742_v15 = vadd.f32 %v2741_v58, %v2740_v55  ;;  %v5218_v33 = vpack.c.bf16 %v3020_v42, %v3019_v36  ;;  %v5220_v11 = vpack.c.bf16 %v3038_v43, %v3037_v20  ;;  %v3052_v17 = vld [vmem:[#allocation24 + $0x358] sm:$0xff]  ;;  %v3071_v56 = vld [vmem:[#allocation24 + $0x3f0] sm:$0xff] }
 0x51e   : > { %5239 = vmatpush3.bf16.msra.mxu1 %v5238_v1  ;;  %5213 = vmatprep.subr.bf16.mxu0 %v5212_v46  ;;  %v2758_v4 = vmul.f32 0.125, %v2750_v18  ;;  %5616 = vrsqrt.f32 %v2795_v37  ;;  %v5246_v1 = vpack.c.bf16 %v3050_v0, %v3049_v27  ;;  %v5248_v16 = vpack.c.bf16 %v3068_v53, %v3067_v45  ;;  %v3039_v46 = vld [vmem:[#allocation24 + $0x2f0] sm:$0xff]  ;;  %v3024_v35 = vld [vmem:[#allocation24 + $0x278] sm:$0xff]  ;;  %v3416_v27 = vld [vmem:[#allocation8 + $0x88] sm:$0xff] }
 0x51f   : > { %5241 = vmatprep.subr.bf16.mxu1 %v5240_v40  ;;  %v8051_v2 = vmul.f32 0.125, %v2680_v7  ;;  %v2743_v32 = vrot.slane %v2742_v15, 1  ;;  %v5222_v60 = vpack.c.bf16 %v3022_v21, %v3021_v23  ;;  %v2831_v14 = vrot.slane %v7873_v57, %v7886_v3  ;;  %v3072_v26 = vld [vmem:[#allocation24 + $0x3f8] sm:$0xff] }
 0x520   : > { %v2774_v44 = vsub.f32 %v2758_v4, %v2766_v62  ;;  %v5250_v40 = vpack.c.bf16 %v3052_v17, %v3051_v48  ;;  %v5252_v38 = vpack.c.bf16 %v3070_v51, %v3069_v50  ;;  %v2827_v58 = vrot.slane %v7873_v57, %v7897_v8  ;;  %v3055_v4 = vld [vmem:[#allocation24 + $0x370] sm:$0xff]  ;;  %v3056_v45 = vld [vmem:[#allocation24 + $0x378] sm:$0xff]  ;;  %v3420_v51 = vld [vmem:[#allocation8 + $0xa8] sm:$0xff] }
 0x521   : > { %5215 = vmatpush3.bf16.msra.mxu0 %v5214_v25  ;;  %v2744_v12 = vadd.f32 %v2743_v32, %v2742_v15  ;;  %v2765_v13 = vmul.f32 %v8051_v2, %v8051_v2  ;;  %v3415_v25 = vld [vmem:[#allocation8 + $0x80] sm:$0xff]  ;;  %v5226_v62 = vpack.c.bf16 %v3024_v35, %v3023_v30  ;;  %v2788_v0 = vsub.f32 %v7967_v24, %v8016_v6  ;;  %v3418_v23 = vld [vmem:[#allocation8 + $0x98] sm:$0xff]  ;;  %v3401_v17 = vld [vmem:[#allocation8 + $0x10] sm:$0xff] }
 0x522   : > { %5243 = vmatpush3.bf16.msra.mxu1 %v5242_v41  ;;  %5217 = vmatprep.subr.bf16.mxu0 %v5216_v63  ;;  %v2782_v22 = vmax.f32 %v2774_v44, 0.0  ;;  %v5224_v41 = vpack.c.bf16 %v3040_v49, %v3039_v46  ;;  %v5254_v37 = vpack.c.bf16 %v3054_v34, %v3053_v61  ;;  %v5256_v7 = vpack.c.bf16 %v3072_v26, %v3071_v56  ;;  %v3400_v44 = vld [vmem:[#allocation8 + $0x8] sm:$0xff]  ;;  %v3398_v46 = vld [vmem:[#allocation3 + $0x8] sm:$0xff]  ;;  %v3419_v50 = vld [vmem:[#allocation8 + $0xa0] sm:$0xff] }
 0x523   : > { %5245 = vmatprep.subr.bf16.mxu1 %v5244_v39  ;;  %v2757_v54 = vmul.f32 0.125, %v2744_v12  ;;  %v5260_v15 = vpack.c.bf16 %v3416_v27, %v3415_v25  ;;  %v2920_v43 = vrot.slane %v7875_v59, %v7886_v3  ;;  %v2787_v53 = vsub.f32 %v7971_v28, %v8021_v29  ;;  %v3422_v30 = vld [vmem:[#allocation8 + $0xb8] sm:$0xff]  ;;  %v3423_v27 = vld [vmem:[#allocation8 + $0xc0] sm:$0xff] }
 0x524   : > { %v2798_v55 = vadd.f32 1e-05, %v2782_v22  ;;  %v5258_v48 = vpack.c.bf16 %v3056_v45, %v3055_v4  ;;  %v2839_v3 = vrot.slane %v7873_v57, %v7900_v9  ;;  %v2790_v49 = vsub.f32 %v7976_v52, %v8044_v31  ;;  %v3406_v25 = vld [vmem:[#allocation8 + $0x38] sm:$0xff]  ;;  %v3411_v45 = vld [vmem:[#allocation8 + $0x60] sm:$0xff] }
 0x525   : > { %5219 = vmatpush3.bf16.msra.mxu0 %v5218_v33  ;;  %v2773_v5 = vsub.f32 %v2757_v54, %v2765_v13  ;;  %v3399_v33 = vld [vmem:[#allocation8] sm:$0xff]  ;;  %v2835_v54 = vrot.slane %v7873_v57, %v7903_v10  ;;  %v2928_v61 = vrot.slane %v7875_v59, %v7900_v9  ;;  %v2789_v35 = vsub.f32 %v8003_v19, %v8051_v2 }
 0x526   : > { %5247 = vmatpush3.bf16.msra.mxu1 %v5246_v1  ;;  %5221 = vmatprep.subr.bf16.mxu0 %v5220_v11  ;;  %5618 = vrsqrt.f32 %v2798_v55  ;;  %v5615_v63 = vpop.eup %5614  ;;  %v2916_v1 = vrot.slane %v7875_v59, %v7897_v8  ;;  %v3417_v11 = vld [vmem:[#allocation8 + $0x90] sm:$0xff]  ;;  %v5262_v21 = vpack.c.bf16 %v3400_v44, %v3399_v33  ;;  %v3402_v8 = vld [vmem:[#allocation8 + $0x18] sm:$0xff]  ;;  %v3403_v55 = vld [vmem:[#allocation8 + $0x20] sm:$0xff] }
 0x527   : > { %5249 = vmatprep.subr.bf16.mxu1 %v5248_v16  ;;  %v2781_v18 = vmax.f32 %v2773_v5, 0.0  ;;  %v2853_v36 = vmul.f32 %v5615_v63, %v2831_v14  ;;  %v5264_v16 = vpack.c.bf16 %v3418_v23, %v3417_v11  ;;  %v5266_v34 = vpack.c.bf16 %v3402_v8, %v3401_v17  ;;  %v3424_v63 = vld [vmem:[#allocation8 + $0xc8] sm:$0xff]  ;;  %v3413_v33 = vld [vmem:[#allocation8 + $0x70] sm:$0xff]  ;;  %v3414_v44 = vld [vmem:[#allocation8 + $0x78] sm:$0xff] }
 0x528   : > { %v5617_v42 = vpop.eup %5616  ;;  %v5268_v14 = vpack.c.bf16 %v3420_v51, %v3419_v50  ;;  %v5276_v2 = vpack.c.bf16 %v3424_v63, %v3423_v27  ;;  %v3545_v11 = vld [vmem:[#allocation14] sm:$0xff]  ;;  %v3546_v23 = vld [vmem:[#allocation14 + $0x8] sm:$0xff]  ;;  %v6345_v8 = vmov 0.0  }
 0x529   : > { %5223 = vmatpush3.bf16.msra.mxu0 %v5222_v60  ;;  %v2797_v39 = vadd.f32 1e-05, %v2781_v18  ;;  %v2879_v20 = vrot.slane %v2853_v36, %v7812_v47  ;;  %v2852_v24 = vmul.f32 %v5617_v42, %v2827_v58  ;;  %v3405_v58 = vld [vmem:[#allocation8 + $0x30] sm:$0xff]  ;;  %v3408_v36 = vld [vmem:[#allocation8 + $0x48] sm:$0xff] }
 0x52a   : > { %5251 = vmatpush3.bf16.msra.mxu1 %v5250_v40  ;;  %5225 = vmatprep.subr.bf16.mxu0 %v5224_v41  ;;  %v3404_v40 = vld [vmem:[#allocation8 + $0x28] sm:$0xff]  ;;  %v3421_v41 = vld [vmem:[#allocation8 + $0xb0] sm:$0xff] }
 0x52b   : > { %5253 = vmatprep.subr.bf16.mxu1 %v5252_v38  ;;  %5620 = vrsqrt.f32 %v2797_v39  ;;  %v2893_v6 = vmul.f32 %v2879_v20, %v2788_v0  ;;  %v2875_v32 = vrot.slane %v2852_v24, %v7812_v47  ;;  %v5270_v5 = vpack.c.bf16 %v3404_v40, %v3403_v55  ;;  %v3407_v0 = vld [vmem:[#allocation8 + $0x40] sm:$0xff]  ;;  %v3425_v42 = vld [vmem:[#allocation8 + $0xd0] sm:$0xff]  ;;  %v3428_v20 = vld [vmem:[#allocation8 + $0xe8] sm:$0xff] }
 0x52c   : > { %v2924_v38 = vrot.slane %v7875_v59, %v7903_v10  ;;  %v5272_v26 = vpack.c.bf16 %v3422_v30, %v3421_v41  ;;  %v5278_v59 = vpack.c.bf16 %v3408_v36, %v3407_v0  ;;  %v3427_v39 = vld [vmem:[#allocation8 + $0xe0] sm:$0xff]  ;;  %v3429_v24 = vld [vmem:[#allocation8 + $0xf0] sm:$0xff] }
 0x52d   : > { %5227 = vmatpush3.bf16.msra.mxu0 %v5226_v62  ;;  %v2942_v28 = vadd.f32 %v2920_v43, %v2893_v6  ;;  %v2892_v29 = vmul.f32 %v2875_v32, %v2787_v53  ;;  %v5274_v62 = vpack.c.bf16 %v3406_v25, %v3405_v58  ;;  %v5284_v4 = vpack.c.bf16 %v3428_v20, %v3427_v39  ;;  %v3412_v53 = vld [vmem:[#allocation8 + $0x68] sm:$0xff]  ;;  %v3430_v6 = vld [vmem:[#allocation8 + $0xf8] sm:$0xff] }
 0x52e   : > { %5255 = vmatpush3.bf16.msra.mxu1 %v5254_v37  ;;  %5261 = vmatprep.subr.bf16.mxu0 %v5260_v15  ;;  %v3426_v37 = vld [vmem:[#allocation8 + $0xd8] sm:$0xff]  ;;  %v5286_v32 = vpack.c.bf16 %v3412_v53, %v3411_v45  ;;  %v3550_v17 = vld [vmem:[#allocation14 + $0x28] sm:$0xff]  ;;  %v3553_v51 = vld [vmem:[#allocation14 + $0x40] sm:$0xff] }
 0x52f   : > { %5257 = vmatprep.subr.bf16.mxu1 %v5256_v7  ;;  %3284 = vmatprep.mubr.f32.mxu0 %v2942_v28  ;;  %v2941_v13 = vadd.f32 %v2916_v1, %v2892_v29  ;;  %v5280_v10 = vpack.c.bf16 %v3426_v37, %v3425_v42  ;;  %v3409_v7 = vld [vmem:[#allocation8 + $0x50] sm:$0xff]  ;;  %v3410_v15 = vld [vmem:[#allocation8 + $0x58] sm:$0xff]  ;;  %v5288_v1 = vpack.c.bf16 %v3430_v6, %v3429_v24  ;;  %v6343_v29 = vmov 0.0|0.0   ;;  %v3557_v55 = vld [vmem:[#allocation14 + $0x60] sm:$0xff] }
 0x530   : > { %v5619_v12 = vpop.eup %5618  ;;  %v5282_v43 = vpack.c.bf16 %v3410_v15, %v3409_v7  ;;  %v5293_v28 = vpack.c.bf16 %v3546_v23, %v3545_v11  ;;  %v3558_v40 = vld [vmem:[#allocation14 + $0x68] sm:$0xff]  ;;  %v3560_v41 = vld [vmem:[#allocation14 + $0x78] sm:$0xff] }
 0x531   : > { %v2855_v22 = vmul.f32 %v5619_v12, %v2839_v3  ;;  %3285 = vmatmul.mubr.f32.vlgmr.msra.gmra.mrb[2].mxu0 %v2941_v13  ;;  %v3397_v3 = vld [vmem:[#allocation3] sm:$0xff]  ;;  %v3548_v12 = vld [vmem:[#allocation14 + $0x18] sm:$0xff] }
 0x532   : > { %5259 = vmatpush3.bf16.msra.mxu1 %v5258_v48  ;;  %5263 = vmatpush3.bf16.msra.mxu0 %v5262_v21  ;;  %v5290_v48 = vpack.c.bf16 %v3414_v44, %v3413_v33  ;;  %v3547_v21 = vld [vmem:[#allocation14 + $0x10] sm:$0xff]  ;;  %v4071_v37 = vld [vmem:[#allocation9] ss:$0 sm:$0xff] }
 0x533   : > { %v2887_v60 = vrot.slane %v2855_v22, %v7812_v47  ;;  %3502 = vmatprep.mubr.f32.mxu0 %v3398_v46  ;;  %5265 = vmatprep.subr.bf16.mxu0 %v5264_v16  ;;  %v5296_v13 = vpack.c.bf16 %v3548_v12, %v3547_v21  ;;  %v3549_v16 = vld [vmem:[#allocation14 + $0x20] sm:$0xff]  ;;  %v3552_v22 = vld [vmem:[#allocation14 + $0x38] sm:$0xff] }
 0x534   : > { %5292 = vmatprep.subr.bf16.mxu1 %v6343_v29  ;;  %v5299_v46 = vpack.c.bf16 %v3550_v17, %v3549_v16 }
 0x535   : > { %v5621_v52 = vpop.eup %5620  ;;  %v2895_v31 = vmul.f32 %v2887_v60, %v2790_v49  ;;  %v3551_v49 = vld [vmem:[#allocation14 + $0x30] sm:$0xff] }
 0x536   : > { %v2854_v57 = vmul.f32 %v5621_v52, %v2835_v54  ;;  %5267 = vmatpush3.bf16.msra.mxu0 %v5266_v34  ;;  %v5302_v50 = vpack.c.bf16 %v3552_v22, %v3551_v49  ;;  %v3554_v54 = vld [vmem:[#allocation14 + $0x48] sm:$0xff]  ;;  %v3556_v34 = vld [vmem:[#allocation14 + $0x58] sm:$0xff]  ;;  %v5311_v52 = vpack.c.bf16 %v3558_v40, %v3557_v55 }
 0x537   : > { %v2944_v56 = vadd.f32 %v2928_v61, %v2895_v31  ;;  %5269 = vmatprep.subr.bf16.mxu0 %v5268_v14  ;;  %v5305_v60 = vpack.c.bf16 %v3554_v54, %v3553_v51  ;;  %v3555_v61 = vld [vmem:[#allocation14 + $0x50] sm:$0xff]  ;;  %v4072_v49 = vld [vmem:[#allocation12] ss:$0 sm:$0xff]  ;;  %v3676_v51 = vld [vmem:[#allocation29] sm:$0xff] }
 0x538   : > { %v2883_v9 = vrot.slane %v2854_v57, %v7812_v47  ;;  %v5308_v14 = vpack.c.bf16 %v3556_v34, %v3555_v61  ;;  %v3559_v31 = vld [vmem:[#allocation14 + $0x70] sm:$0xff]  ;;  %v3679_v34 = vld [vmem:[#allocation29 + $0x18] sm:$0xff]  ;;  %v3680_v55 = vld [vmem:[#allocation29 + $0x20] sm:$0xff] }
 0x539   : > { %3354 = vmatprep.mubr.f32.mxu1 %v2944_v56  ;;  %v5314_v30 = vpack.c.bf16 %v3560_v41, %v3559_v31  ;;  %v4069_v56 = vld [vmem:[#allocation25] ss:$0 sm:$0xff]  ;;  %v3677_v54 = vld [vmem:[#allocation29 + $0x8] sm:$0xff]  ;;  %v3678_v61 = vld [vmem:[#allocation29 + $0x10] sm:$0xff] }
 0x53a   : > { %v2894_v18 = vmul.f32 %v2883_v9, %v2789_v35  ;;  %5271 = vmatpush3.bf16.msra.mxu0 %v5270_v5  ;;  %v3681_v40 = vld [vmem:[#allocation29 + $0x28] sm:$0xff]  ;;  %v3682_v31 = vld [vmem:[#allocation29 + $0x30] sm:$0xff]  ;;  %v3683_v41 = vld [vmem:[#allocation29 + $0x38] sm:$0xff] }
 0x53b   : > { %5273 = vmatprep.subr.bf16.mxu0 %v5272_v26 }
 0x53c   : > { %v2943_v19 = vadd.f32 %v2924_v38, %v2894_v18 }
 0x53e   : > { %3355 = vmatmul.mubr.f32.vlgmr.msra.gmra.mrb[2].mxu1 %v2943_v19  ;;  %5275 = vmatpush3.bf16.msra.mxu0 %v5274_v62 }
 0x53f   : > { %5277 = vmatprep.subr.bf16.mxu0 %v5276_v2  ;;  %5294 = vmatpush3.bf16.msra.mxu1 %v5293_v28 }
 0x540   : > { %5295 = vmatprep.subr.bf16.mxu1 %v6343_v29  ;;  %4326 = vmatprep.mubr.msk.f32.mxu1 %vm6344_vm0, %v6345_v8 }
 0x542   : > { %5279 = vmatpush3.bf16.msra.mxu0 %v5278_v59 }
 0x543   : > { %5281 = vmatprep.subr.bf16.mxu0 %v5280_v10  ;;  %5297 = vmatpush3.bf16.msra.mxu1 %v5296_v13  ;;  %v3509_v13 = vld [vmem:[#allocation11] sm:$0x1] }
 0x544   : > { %5298 = vmatprep.subr.bf16.mxu1 %v6343_v29 }
 0x546   : > { %5283 = vmatpush3.bf16.msra.mxu0 %v5282_v43 }
 0x547   : > { %5285 = vmatprep.subr.bf16.mxu0 %v5284_v4  ;;  %5300 = vmatpush3.bf16.msra.mxu1 %v5299_v46 }
 0x548   : > { %5301 = vmatprep.subr.bf16.mxu1 %v6343_v29 }
 0x54a   : > { %5287 = vmatpush3.bf16.msra.mxu0 %v5286_v32 }
 0x54b   : > { %5289 = vmatprep.subr.bf16.mxu0 %v5288_v1  ;;  %5303 = vmatpush3.bf16.msra.mxu1 %v5302_v50 }
 0x54c   : > { %5304 = vmatprep.subr.bf16.mxu1 %v6343_v29 }
 0x54e   : > { %5291 = vmatpush3.bf16.msra.mxu0 %v5290_v48 }
 0x54f   : > { %5316 = vmatprep.subr.bf16.mxu0 %v6343_v29  ;;  %5306 = vmatpush3.bf16.msra.mxu1 %v5305_v60  ;;  %v5317_v60 = vpack.c.bf16 %v3677_v54, %v3676_v51 }
 0x550   : > { %5307 = vmatprep.subr.bf16.mxu1 %v6343_v29 }
 0x551   : > { %3503 = vmatmul.mubr.f32.vlgmr.msra.gmra.mrb[4].mxu0 %v3397_v3 }
 0x552   : > { %4361 = vmatprep.mubr.msk.f32.mxu0 %vm6344_vm0, %v6345_v8  ;;  %5318 = vmatpush3.bf16.msra.mxu0 %v5317_v60 }
 0x553   : > { %5309 = vmatpush3.bf16.msra.mxu1 %v5308_v14  ;;  %5319 = vmatprep.subr.bf16.mxu0 %v6343_v29  ;;  %v5320_v14 = vpack.c.bf16 %v3679_v34, %v3678_v61 }
 0x554   : > { %5310 = vmatprep.subr.bf16.mxu1 %v6343_v29 }
 0x556   : > { %5321 = vmatpush3.bf16.msra.mxu0 %v5320_v14 }
 0x557   : > { %5312 = vmatpush3.bf16.msra.mxu1 %v5311_v52  ;;  %5322 = vmatprep.subr.bf16.mxu0 %v6343_v29  ;;  %v5323_v52 = vpack.c.bf16 %v3681_v40, %v3680_v55  ;;  %v3361_v55 = vld [vmem:[#allocation26] sm:$0x1] }
 0x558   : > { %5313 = vmatprep.subr.bf16.mxu1 %v6343_v29 }
 0x55a   : > { %5324 = vmatpush3.bf16.msra.mxu0 %v5323_v52  ;;  %v3639_v52 = vld [vmem:[#allocation17] sm:$0x1] }
 0x55b   : > { %5315 = vmatpush3.bf16.msra.mxu1 %v5314_v30  ;;  %5325 = vmatprep.subr.bf16.mxu0 %v6343_v29  ;;  %v5326_v30 = vpack.c.bf16 %v3683_v41, %v3682_v31 }
 0x55e   : > { %5327 = vmatpush3.bf16.msra.mxu0 %v5326_v30 }
 0x55f   : > { %5328 = vmatprep.subr.bf16.mxu0 %v6343_v29 }
 0x5e2   : > { %v4117_v35 = vpop.f32.mrb[0].mxu0 }
 0x5e3   : > { %v4118_v57 = vpop.f32.mrb[1].mxu0 }
 0x5e4   : > { %v4119_v5 = vadd.f32 %v4118_v57, %v4117_v35  ;;  %v3684_v35 = vld [vmem:[#allocation29 + $0x40] sm:$0xff]  ;;  %v3685_v57 = vld [vmem:[#allocation29 + $0x48] sm:$0xff] }
 0x5e5   : > { %v4152_v38 = vpop.f32.mrb[0].mxu1 }
 0x5e6   : > { %v3147_v9 = vadd.f32 %v4119_v5, %v4069_v56  ;;  %v4153_v26 = vpop.f32.mrb[1].mxu1  ;;  %v5329_v56 = vpack.c.bf16 %v3685_v57, %v3684_v35  ;;  %v3686_v5 = vld [vmem:[#allocation29 + $0x50] sm:$0xff] }
 0x5e7   : > { %v4154_v58 = vadd.f32 %v4153_v26, %v4152_v38  ;;  %v3688_v26 = vld [vmem:[#allocation29 + $0x60] sm:$0xff] }
 0x5e8   : > { %5330 = vmatpush3.bf16.msra.mxu0 %v5329_v56 }
 0x5e9   : > { %v3217_v25 = vadd.f32 %v4154_v58, %v3147_v9  ;;  %v3687_v9 = vld [vmem:[#allocation29 + $0x58] sm:$0xff]  ;;  %5331 = vmatprep.subr.bf16.mxu0 %v6343_v29  ;;  %v3689_v58 = vld [vmem:[#allocation29 + $0x68] sm:$0xff] }
 0x5ea   : > { %v5332_v38 = vpack.c.bf16 %v3687_v9, %v3686_v5  ;;  %v4070_v9 = vld [vmem:[#allocation28] ss:$0 sm:$0xff] }
 0x5ec   : > { %5333 = vmatpush3.bf16.msra.mxu0 %v5332_v38  ;;  %v4074_v38 = vld [vmem:[#allocation18] ss:$0 sm:$0xff] }
 0x5ed   : > { %5334 = vmatprep.subr.bf16.mxu0 %v6343_v29 }
 0x604   : > { %v4187_v27 = vpop.f32.mrb[2].mxu0 }
 0x605   : > { %v4188_v63 = vpop.f32.mrb[3].mxu0 }
 0x606   : > { %v4189_v18 = vadd.f32 %v4188_v63, %v4187_v27  ;;  %v3690_v27 = vld [vmem:[#allocation29 + $0x70] sm:$0xff]  ;;  %v3691_v63 = vld [vmem:[#allocation29 + $0x78] sm:$0xff] }
 0x608   : > { %v3287_v62 = vadd.f32 %v4189_v18, %v3217_v25  ;;  %v5335_v25 = vpack.c.bf16 %v3689_v58, %v3688_v26  ;;  %v5338_v18 = vpack.c.bf16 %v3691_v63, %v3690_v27  ;;  %v4075_v63 = vld [vmem:[#allocation31] ss:$0 sm:$0xff] }
 0x60a   : > { %5336 = vmatpush3.bf16.msra.mxu0 %v5335_v25 }
 0x60b   : > { %5337 = vmatprep.subr.bf16.mxu0 %v6343_v29 }
 0x60e   : > { %5339 = vmatpush3.bf16.msra.mxu0 %v5338_v18 }
 0x611   : > { %v4222_v19 = vpop.f32.mrb[2].mxu1 }
 0x612   : > { %v4223_v2 = vpop.f32.mrb[3].mxu1 }
 0x613   : > { %v4224_v0 = vadd.f32 %v4223_v2, %v4222_v19 }
 0x615   : > { %v8092_v36 = vadd.f32 %v4224_v0, %v3287_v62 }
 0x617   : > { %v3360_v62 = vmax.f32 %v8092_v36, 0.0 }
 0x619   : > { %v3363_v19 = vrot.slane %v3360_v62, 4  ;;  %v3370_v2 = vmul.f32 %v3360_v62, %v3360_v62 }
 0x61b   : > { %v3364_v0 = vadd.f32 %v3363_v19, %v3360_v62 }
 0x624   : > { %v4257_v42 = vpop.f32.mrb[4].mxu0 }
 0x625   : > { %v4258_v59 = vpop.f32.mrb[5].mxu0 }
 0x626   : > { %v4259_v10 = vadd.f32 %v4258_v59, %v4257_v42  ;;  %v3371_v42 = vrot.slane %v3370_v2, 4 }
 0x628   : > { %v3505_v7 = vadd.f32 %v4259_v10, %v4071_v37  ;;  %v3365_v37 = vrot.slane %v3364_v0, 2  ;;  %v3372_v59 = vadd.f32 %v3371_v42, %v3370_v2 }
 0x62a   : > { %v3508_v15 = vmax.f32 %v3505_v7, 0.0  ;;  %v3366_v10 = vadd.f32 %v3365_v37, %v3364_v0  ;;  %v3373_v7 = vrot.slane %v3372_v59, 2 }
 0x62c   : > { %v3511_v39 = vrot.slane %v3508_v15, 4  ;;  %v3518_v20 = vmul.f32 %v3508_v15, %v3508_v15 }
 0x62e   : > { %v3512_v43 = vadd.f32 %v3511_v39, %v3508_v15  ;;  %v3519_v4 = vrot.slane %v3518_v20, 4  ;;  %v3374_v39 = vadd.f32 %v3373_v7, %v3372_v59 }
 0x630   : > { %v3513_v45 = vrot.slane %v3512_v43, 2  ;;  %v3520_v53 = vadd.f32 %v3519_v4, %v3518_v20  ;;  %v4073_v4 = vld [vmem:[#allocation15] ss:$0 sm:$0xff] }
 0x632   : > { %v3514_v24 = vadd.f32 %v3513_v45, %v3512_v43  ;;  %v3521_v6 = vrot.slane %v3520_v53, 2  ;;  %v3375_v43 = vrot.slane %v3374_v39, 1 }
 0x634   : > { %v3515_v32 = vrot.slane %v3514_v24, 1  ;;  %v3522_v1 = vadd.f32 %v3521_v6, %v3520_v53  ;;  %v3376_v53 = vadd.f32 %v3375_v43, %v3374_v39 }
 0x636   : > { %v3516_v33 = vadd.f32 %v3515_v32, %v3514_v24  ;;  %v3523_v44 = vrot.slane %v3522_v1, 1  ;;  %v3377_v32 = vmul.f32 0.125, %v3376_v53 }
 0x638   : > { %v3517_v48 = vmul.f32 0.125, %v3516_v33  ;;  %v3524_v3 = vadd.f32 %v3523_v44, %v3522_v1 }
 0x63a   : > { %v3525_v11 = vmul.f32 0.125, %v3524_v3  ;;  %v3526_v23 = vmul.f32 %v3517_v48, %v3517_v48  ;;  %v3529_v8 = vsub.f32 %v3508_v15, %v3517_v48  ;;  %v3367_v15 = vrot.slane %v3366_v10, 1 }
 0x63c   : > { %v3527_v28 = vsub.f32 %v3525_v11, %v3526_v23  ;;  %v3368_v20 = vadd.f32 %v3367_v15, %v3366_v10 }
 0x63e   : > { %v3528_v21 = vmax.f32 %v3527_v28, 0.0  ;;  %v3369_v45 = vmul.f32 0.125, %v3368_v20 }
 0x640   : > { %v3530_v12 = vadd.f32 1e-05, %v3528_v21  ;;  %v3378_v36 = vmul.f32 %v3369_v45, %v3369_v45  ;;  %v3381_v30 = vsub.f32 %v3360_v62, %v3369_v45 }
 0x642   : > { %5622 = vrsqrt.f32 %v3530_v12  ;;  %v3379_v48 = vsub.f32 %v3377_v32, %v3378_v36 }
 0x644   : > { %v3380_v21 = vmax.f32 %v3379_v48, 0.0 }
 0x64c   : > { %v5623_v16 = vpop.eup %5622 }
 0x64d   : > { %v3532_v17 = vmul.f32 %v5623_v16, %v3509_v13 }
 0x64f   : > { %v3536_v46 = vrot.slane %v3532_v17, %v7812_v47 }
 0x651   : > { %v3537_v22 = vmul.f32 %v3536_v46, %v3529_v8  ;;  %v3382_v8 = vadd.f32 1e-05, %v3380_v21 }
 0x653   : > { %v3544_v50 = vadd.f32 %v4072_v49, %v3537_v22  ;;  %5624 = vrsqrt.f32 %v3382_v8 }
 0x655   : > { %4327 = vmatmul.mubr.f32.vlgmr.msra.gmra.mrb[4].mxu1 %v3544_v50 }
 0x65d   : > { %v5625_v14 = vpop.eup %5624 }
 0x65e   : > { %v3384_v40 = vmul.f32 %v5625_v14, %v3361_v55 }
 0x660   : > { %v3388_v31 = vrot.slane %v3384_v40, %v7812_v47 }
 0x662   : > { %v3389_v5 = vmul.f32 %v3388_v31, %v3381_v30 }
 0x664   : > { %v3396_v58 = vadd.f32 %v4070_v9, %v3389_v5 }
 0x728   : > { %v3634_v24 = vpop.f32.mrb[4].mxu1 }
 0x729   : > { %v3635_v29 = vadd.f32 %v4073_v4, %v3634_v24  ;;  %v4328_v6 = vpop.f32.mrb[5].mxu1 }
 0x72b   : > { %v3638_v1 = vmax.f32 %v3635_v29, 0.0 }
 0x72d   : > { %v3641_v33 = vrot.slane %v3638_v1, 4  ;;  %v3648_v44 = vmul.f32 %v3638_v1, %v3638_v1 }
 0x72f   : > { %v3642_v3 = vadd.f32 %v3641_v33, %v3638_v1  ;;  %v3649_v11 = vrot.slane %v3648_v44, 4 }
 0x731   : > { %v3643_v23 = vrot.slane %v3642_v3, 2  ;;  %v3650_v28 = vadd.f32 %v3649_v11, %v3648_v44 }
 0x733   : > { %v3644_v12 = vadd.f32 %v3643_v23, %v3642_v3  ;;  %v3651_v13 = vrot.slane %v3650_v28, 2 }
 0x735   : > { %v3645_v16 = vrot.slane %v3644_v12, 1  ;;  %v3652_v17 = vadd.f32 %v3651_v13, %v3650_v28 }
 0x737   : > { %v3646_v46 = vadd.f32 %v3645_v16, %v3644_v12  ;;  %v3653_v49 = vrot.slane %v3652_v17, 1 }
 0x739   : > { %v3647_v22 = vmul.f32 0.125, %v3646_v46  ;;  %v3654_v50 = vadd.f32 %v3653_v49, %v3652_v17 }
 0x73b   : > { %v3655_v51 = vmul.f32 0.125, %v3654_v50  ;;  %v3656_v54 = vmul.f32 %v3647_v22, %v3647_v22  ;;  %v3659_v57 = vsub.f32 %v3638_v1, %v3647_v22 }
 0x73d   : > { %v3657_v60 = vsub.f32 %v3655_v51, %v3656_v54 }
 0x73f   : > { %v3658_v61 = vmax.f32 %v3657_v60, 0.0 }
 0x741   : > { %v3660_v34 = vadd.f32 1e-05, %v3658_v61 }
 0x743   : > { %5626 = vrsqrt.f32 %v3660_v34 }
 0x74d   : > { %v5627_v41 = vpop.eup %5626 }
 0x74e   : > { %v3662_v35 = vmul.f32 %v5627_v41, %v3639_v52 }
 0x750   : > { %v3666_v56 = vrot.slane %v3662_v35, %v7812_v47 }
 0x752   : > { %v3667_v26 = vmul.f32 %v3666_v56, %v3659_v57 }
 0x754   : > { %v3674_v25 = vadd.f32 %v4074_v38, %v3667_v26 }
 0x756   : > { %v3675_v27 = vadd.f32 %v3674_v25, %v3396_v58 }
 0x758   : > { %4362 = vmatmul.mubr.f32.vlgmr.msra.gmra.mrb[6].mxu0 %v3675_v27 }
 0x82b   : > { %v3765_v18 = vpop.f32.mrb[6].mxu0 }
 0x82c   : > { %v3766_v19 = vadd.f32 %v4075_v63, %v3765_v18  ;;  %v4363_v2 = vpop.f32.mrb[7].mxu0 }
 0x82e   : > { %v4076_v0 = vmul.f32 -1.442695, %v3766_v19 }
 0x830   : > { %5628 = vpow2.f32 %v4076_v0 }
 0x83a   : > { %v5629_v42 = vpop.eup %5628 }
 0x83b   : > { %v3772_v62 = vadd.f32 1.0, %v5629_v42 }
 0x83d   : > { %5630 = vrcp.f32 %v3772_v62 }
 0x847   : > { %v5631_v37 = vpop.eup %5630 }
 0x848   : > { %3775 = vst [vmem:[#allocation32] sm:$0xff] %v5631_v37 }
 0x849 PF: > { %s8276_s7 = sld [smem:[#allocation53_spill]]  ;;  %s6346_s0 = smov [#allocation32]  }
 0x84a   : > { %s3783_s5 = sshll.u32 %s6346_s0, 4  ;;  %s3784_s5 = int_to_ptr.vmem [resolvable:$true] %s3783_s5 }
 0x84b   : > { %s6196_s22 = scalar_lea.vmem %s3784_s5, 128  ;;  %p6203_p7 = scmp.lt.s32.totalorder %s3784_s5, %s3784_s5 }
 0x84c   : > { %p6197_p6 = scmp.ne.s32.totalorder %s3784_s5, %s6196_s22  ;;  %p6204_p8 = scmp.lt.s32.totalorder %s6196_s22, %s6196_s22 }
 0x84e   : > { %p6205_p13 = por %p6204_p8, %p6203_p7 }
 0x84f   : > { %p5539_p9 = scmp.eq.s32.totalorder %s8276_s7, 2 }
 0x851   : > { %p6198_p10 = pnand %p6197_p6, %p5539_p9 }
 0x853   : > { %p6199_p12 = pneg %p6198_p10 }
 0x855   : > { %p6206_p11 = pnand %p6205_p13, %p6199_p12 }
 0x857   : > { %6209 = shalt.err (!%p6206_p11)
}
 0x858   : > { %s8277_s25 = sld [smem:[#allocation68_spill]] }
 0x85e   : > { %s6210_s17 = scalar_lea.hbm %s8277_s25, 128 }
 0x85f   : > { %p6211_p0 = scmp.ne.s32.totalorder %s8277_s25, %s6210_s17  ;;  %p6216_p5 = scmp.lt.u32.totalorder %s6210_s17, %s8277_s25 }
 0x861   : > { %p6212_p4 = pnand %p6211_p0, %p5539_p9 }
 0x863   : > { %p6213_p2 = pneg %p6212_p4 }
 0x865   : > { %p6218_p3 = pnand %p6216_p5, %p6213_p2 }
 0x867   : > { %6221 = shalt.err (!%p6218_p3)
}
 0x868   : > { %5437 = dma.vmem_to_hbm [thread:$0]  (%p5539_p9), %s3784_s5, 128, %s8277_s25, [#allocation5]  }
 0x869   : > { %6299 = dma.done.wait (%p5539_p9), [#allocation5], 128  }
 0x86a   : > { %6301 = vsyncadd (%p5539_p9), [#allocation5], 4294967168 }
 0x86b PF: > { %s8278_s1 = sld [smem:[#allocation50_spill]]  ;;  %s8279_s22 = sld [smem:[#allocation51_spill]] }
 0x86c   : > { %p38_p1 = scmp.ge.s32.totalorder %s6857_s24, 5   ;;  %s8280_s23 = smov %s6869_s21 }
 0x86e   :  { %40 = sbr.rel (!%p38_p1) target bundleno = 26 (0x1a), region = 229 }
 0x875   :  { %3796 = vsyncpa [#allocation4], 1 }
 0x876   :  { %3798 = vsyncpa [#allocation4 + $0x1], 1 }
 0x877   :  { %3799 = vsyncpa [#allocation7], 1 }
 0x878   :  { %3801 = vsyncpa [#allocation7 + $0x1], 1 }
 0x879   :  { %3802 = vsyncpa [#allocation10], 1 }
 0x87a   :  { %3803 = vsyncpa [#allocation13], 1 }
 0x87b   :  { %3804 = vsyncpa [#allocation16], 1 }
 0x87c   :  { %3805 = vsyncpa [#allocation19], 1 }
 0x87d   :  { %3806 = vsyncpa [#allocation27], 1 }
 0x87e   :  { %3807 = vsyncpa [#allocation30], 1 }
 0x87f   :  { %3808 = vsyncpa [#allocation5], 1 }
 0x880   :  { %3810 = vsyncpa [#allocation5 + $0x1], 1 }

</bundles_post_ra>
